<compile_context>
chip_gen: v7x
topology: tpu7x:2x2x1
jax: 0.10.0
libtpu: 0.0.40
codegen_flags: <defaults>
</compile_context>

<pallas_src>
import jax
import jax.numpy as jnp
from jax.experimental import pallas as pl
from jax.experimental.pallas import tpu as pltpu


# ---------------------------------------------------------------------------
# Static network configuration (input_size=36, hidden_size=64)
# ---------------------------------------------------------------------------
INPUT_SIZE = 36
HIDDEN = 64
K1, C1, P1 = 5, 16, 4        # conv1: 1 -> 16, k=5, pad=0, maxpool 4
K2, C2, P2 = 3, 16, 2        # conv2: 16 -> 16, k=3, pad=1, maxpool 2
K3, C3, P3 = 3, 32, 2        # conv3: 16 -> 32, k=3, pad=1, maxpool 2

S1 = INPUT_SIZE - K1 + 1     # 32  conv1 output spatial
Q1 = S1 // P1                # 8   after pool1
S2 = Q1                      # 8   conv2 output spatial (pad=1)
Q2 = S2 // P2                # 4   after pool2
S3 = Q2                      # 4   conv3 output spatial (pad=1)
Q3 = S3 // P3                # 2   after pool3
D_IN = Q3 * Q3 * C3          # 128 flattened features (matches torch arithmetic)


# ---------------------------------------------------------------------------
# Fused kernel: one grid step == BB images.  Activation layout everywhere is
#   rows  = spatial_row * BB + image_in_block
#   lanes = spatial_col * C + channel
# so every conv is a plain 2-D row-window slice feeding a 2-D MXU matmul.
# ---------------------------------------------------------------------------
def _fused_kernel(x_ref, wb1_ref, t1_ref, wb2_ref, t2_ref, wb3_ref, t3_ref,
                  wf_ref, bf_ref, o_ref, a2_ref, a3_ref):
    f32, bf16 = jnp.float32, jnp.bfloat16
    BB = o_ref.shape[0]

    def band_conv(load_slice, wb_ref, taps):
        # sum_k  lhs_k (M, Kdim) @ band_k (Kdim, N)  -- bf16 operands, f32 acc.
        acc = None
        for ki in range(taps):
            d = jnp.dot(load_slice(ki), wb_ref[ki], preferred_element_type=f32)
            acc = d if acc is None else acc + d
        return acc

    def pool_blocks(y, H, P, C, t_row):
        # y: (H*BB, H*C).  Returns Q=H//P blocks of shape (BB, Q*C), each block
        # = relu(maxpool PxP + per-channel shift) for one pooled output row.
        Q = H // P
        blocks = []
        for ph in range(Q):
            r0 = ph * P * BB
            blk = y[r0:r0 + BB, :]
            for r in range(1, P):                              # pool over rows
                blk = jnp.maximum(blk, y[r0 + r * BB:r0 + (r + 1) * BB, :])
            cols = []
            for pw in range(Q):                                # pool over lanes
                c0 = pw * P * C
                m = blk[:, c0:c0 + C]
                for s in range(1, P):
                    m = jnp.maximum(m, blk[:, c0 + s * C:c0 + (s + 1) * C])
                cols.append(m)
            act = jnp.concatenate(cols, axis=1) + t_row        # (BB, Q*C)
            blocks.append(jnp.maximum(act, 0.0))
        return blocks

    def store_padded(dst_ref, blocks, C):
        # Write zero-padded activation (for the next conv's padding=1) with
        # full-width row-block stores only.
        Q = len(blocks)
        zlane = jnp.zeros((BB, C), f32)
        zrow = jnp.zeros((BB, (Q + 2) * C), f32)
        dst_ref[0:BB, :] = zrow
        dst_ref[(Q + 1) * BB:(Q + 2) * BB, :] = zrow
        for ph in range(Q):
            dst_ref[(1 + ph) * BB:(2 + ph) * BB, :] = jnp.concatenate(
                [zlane, blocks[ph], zlane], axis=1)

    # ---- layer 1: conv1 (5 band matmuls) + pool 4x4 + shift + ReLU ----------
    x = x_ref[...]                                             # (36*BB, 36) f32
    y1 = band_conv(lambda ki: x[ki * BB:(ki + S1) * BB, :].astype(bf16),
                   wb1_ref, K1)                                # (32*BB, 512)
    store_padded(a2_ref, pool_blocks(y1, S1, P1, C1, t1_ref[...]), C1)

    # ---- layer 2: conv2 (3 band matmuls) + pool 2x2 + shift + ReLU ----------
    y2 = band_conv(lambda ki: a2_ref[ki * BB:(ki + S2) * BB, :].astype(bf16),
                   wb2_ref, K2)                                # (8*BB, 128)
    store_padded(a3_ref, pool_blocks(y2, S2, P2, C2, t2_ref[...]), C2)

    # ---- layer 3: conv3 (3 band matmuls) + pool 2x2 + shift + ReLU ----------
    y3 = band_conv(lambda ki: a3_ref[ki * BB:(ki + S3) * BB, :].astype(bf16),
                   wb3_ref, K3)                                # (4*BB, 128)
    blocks3 = pool_blocks(y3, S3, P3, C3, t3_ref[...])         # 2 x (BB, 64)

    # ---- fc1: single (BB,128)x(128,64) matmul + bias + ReLU -----------------
    flat = jnp.concatenate(blocks3, axis=1).astype(bf16)       # (BB, 128) NHWC
    out = jnp.dot(flat, wf_ref[...], preferred_element_type=f32) + bf_ref[...]
    o_ref[...] = jnp.maximum(out, 0.0)


# ---------------------------------------------------------------------------
# Parameter preprocessing (wrapper-side, tiny XLA ops on the weights only)
# ---------------------------------------------------------------------------
def _fold_bn(w_hwio, bias, bn_stats, eps=1e-5):
    """Fold conv bias + inference BatchNorm into (scaled weights, shift)."""
    gamma, beta, mean, var = bn_stats
    inv = gamma * jax.lax.rsqrt(var + eps)
    w = w_hwio * inv                                   # scale into out-channel
    shift = beta + (bias - mean) * inv                 # additive, per channel
    return w, shift


def _band_weights(w, in_w, out_w):
    """Band matrix folding im2col of the width axis into the weights.

    w: (K, K, Ci, Co) BN-scaled HWIO weights.
    Returns (K, in_w*Ci, out_w*Co) with
      band[ki, wp*Ci+ci, ow*Co+co] = w[ki, wp-ow, ci, co]  if 0 <= wp-ow < K.
    """
    K, _, Ci, Co = w.shape
    wp = jnp.arange(in_w)[:, None]
    ow = jnp.arange(out_w)[None, :]
    kj = wp - ow
    valid = (kj >= 0) & (kj < K)
    kjc = jnp.clip(kj, 0, K - 1)
    band = w[:, kjc, :, :]                             # (K, in_w, out_w, Ci, Co)
    band = jnp.where(valid[None, :, :, None, None], band, 0.0)
    band = band.transpose(0, 1, 3, 2, 4)               # (K, in_w, Ci, out_w, Co)
    return band.reshape(K, in_w * Ci, out_w * Co)


def init_params(key):
    ks = jax.random.split(key, 11)

    def bn(k, c):
        k1, k2, k3, k4 = jax.random.split(k, 4)
        gamma = 1.0 + 0.1 * jax.random.normal(k1, (c,), jnp.float32)
        beta = 0.1 * jax.random.normal(k2, (c,), jnp.float32)
        mean = 0.1 * jax.random.normal(k3, (c,), jnp.float32)
        var = 1.0 + 0.1 * jnp.abs(jax.random.normal(k4, (c,), jnp.float32))
        return gamma, beta, mean, var

    p = {}
    p["w1"] = 0.1 * jax.random.normal(ks[0], (K1, K1, 1, C1), jnp.float32)
    p["b1"] = 0.1 * jax.random.normal(ks[1], (C1,), jnp.float32)
    p["bn1"] = bn(ks[2], C1)
    p["w2"] = 0.1 * jax.random.normal(ks[3], (K2, K2, C1, C2), jnp.float32)
    p["b2"] = 0.1 * jax.random.normal(ks[4], (C2,), jnp.float32)
    p["bn2"] = bn(ks[5], C2)
    p["w3"] = 0.1 * jax.random.normal(ks[6], (K3, K3, C2, C3), jnp.float32)
    p["b3"] = 0.1 * jax.random.normal(ks[7], (C3,), jnp.float32)
    p["bn3"] = bn(ks[8], C3)
    # fc1 weight stored in PyTorch's NCHW-flatten row order (c*H*W + h*W + w).
    p["wf"] = 0.1 * jax.random.normal(ks[9], (D_IN, HIDDEN), jnp.float32)
    p["bf"] = 0.1 * jax.random.normal(ks[10], (HIDDEN,), jnp.float32)
    return p


# ---------------------------------------------------------------------------
# Forward wrapper
# ---------------------------------------------------------------------------
def context_network_forward(phi, params, *, block_batch=8):
    """phi: (B, 1, 36, 36) float32 -> (B, HIDDEN) float32."""
    B = phi.shape[0]
    BB = min(B, block_batch)                     # images per grid step
    nb = pl.cdiv(B, BB)
    B_pad = nb * BB

    x = phi[:, 0, :, :].astype(jnp.float32)      # (B, 36, 36) raw images
    if B_pad != B:
        x = jnp.concatenate(
            [x, jnp.zeros((B_pad - B, INPUT_SIZE, INPUT_SIZE), x.dtype)], axis=0)
    # Rows grouped per grid step: row index = step*36*BB + img_row*BB + b_local.
    x2d = x.reshape(nb, BB, INPUT_SIZE, INPUT_SIZE).transpose(0, 2, 1, 3)
    x2d = x2d.reshape(nb * INPUT_SIZE * BB, INPUT_SIZE)

    # Fold BN (+ conv bias) and build band weights (im2col folded into weights).
    w1s, sh1 = _fold_bn(params["w1"], params["b1"], params["bn1"])
    w2s, sh2 = _fold_bn(params["w2"], params["b2"], params["bn2"])
    w3s, sh3 = _fold_bn(params["w3"], params["b3"], params["bn3"])

    wb1 = _band_weights(w1s, INPUT_SIZE, S1).astype(jnp.bfloat16)   # (5, 36, 512)
    wb2 = _band_weights(w2s, Q1 + 2, S2).astype(jnp.bfloat16)       # (3, 160, 128)
    wb3 = _band_weights(w3s, Q2 + 2, S3).astype(jnp.bfloat16)       # (3,  96, 128)
    t1 = jnp.tile(sh1.reshape(1, C1), (1, Q1))                      # (1, 128)
    t2 = jnp.tile(sh2.reshape(1, C2), (1, Q2))                      # (1, 64)
    t3 = jnp.tile(sh3.reshape(1, C3), (1, Q3))                      # (1, 64)

    # Permute fc1 rows from NCHW-flatten (PyTorch .view) to NHWC-flatten order.
    wf = params["wf"].reshape(C3, Q3, Q3, HIDDEN).transpose(1, 2, 0, 3)
    wf = wf.reshape(D_IN, HIDDEN).astype(jnp.bfloat16)
    bf = params["bf"].reshape(1, HIDDEN)

    full2 = lambda i: (0, 0)
    full3 = lambda i: (0, 0, 0)
    out = pl.pallas_call(
        _fused_kernel,
        out_shape=jax.ShapeDtypeStruct((B_pad, HIDDEN), jnp.float32),
        grid=(nb,),
        in_specs=[
            pl.BlockSpec((INPUT_SIZE * BB, INPUT_SIZE), lambda i: (i, 0)),
            pl.BlockSpec(wb1.shape, full3),
            pl.BlockSpec(t1.shape, full2),
            pl.BlockSpec(wb2.shape, full3),
            pl.BlockSpec(t2.shape, full2),
            pl.BlockSpec(wb3.shape, full3),
            pl.BlockSpec(t3.shape, full2),
            pl.BlockSpec(wf.shape, full2),
            pl.BlockSpec(bf.shape, full2),
        ],
        out_specs=pl.BlockSpec((BB, HIDDEN), lambda i: (i, 0)),
        scratch_shapes=[
            pltpu.VMEM(((Q1 + 2) * BB, (Q1 + 2) * C1), jnp.float32),  # padded a2
            pltpu.VMEM(((Q2 + 2) * BB, (Q2 + 2) * C2), jnp.float32),  # padded a3
        ],
        compiler_params=pltpu.CompilerParams(
            dimension_semantics=("parallel",),      # v7x: steps split across TCs
        ),
    )(x2d, wb1, t1, wb2, t2, wb3, t3, wf, bf)
    return out[:B]


# ---------------------------------------------------------------------------
# Pure-JAX reference (same synthetic params / inference-mode BN) for checking.
# ---------------------------------------------------------------------------
def _reference_forward(phi, params, eps=1e-5):
    def conv(x, w_hwio, b, pad):
        y = jax.lax.conv_general_dilated(
            x, w_hwio, window_strides=(1, 1), padding=((pad, pad), (pad, pad)),
            dimension_numbers=("NCHW", "HWIO", "NCHW"))
        return y + b.reshape(1, -1, 1, 1)

    def bn(y, stats):
        gamma, beta, mean, var = stats
        inv = (gamma * jax.lax.rsqrt(var + eps)).reshape(1, -1, 1, 1)
        return (y - mean.reshape(1, -1, 1, 1)) * inv + beta.reshape(1, -1, 1, 1)

    def pool(y, P):
        return jax.lax.reduce_window(y, -jnp.inf, jax.lax.max,
                                     (1, 1, P, P), (1, 1, P, P), "VALID")

    x = phi
    x = jax.nn.relu(pool(bn(conv(x, params["w1"], params["b1"], 0), params["bn1"]), P1))
    x = jax.nn.relu(pool(bn(conv(x, params["w2"], params["b2"], 1), params["bn2"]), P2))
    x = jax.nn.relu(pool(bn(conv(x, params["w3"], params["b3"], 1), params["bn3"]), P3))
    x = x.reshape(x.shape[0], -1)                     # NCHW flatten (torch .view)
    return jax.nn.relu(x @ params["wf"] + params["bf"])


if __name__ == "__main__":
    key = jax.random.PRNGKey(0)
    k_param, k_in = jax.random.split(key)

    B = 2
    params = init_params(k_param)
    phi = jax.random.normal(k_in, (B, 1, INPUT_SIZE, INPUT_SIZE), jnp.float32)

    out = jax.block_until_ready(jax.jit(context_network_forward)(phi, params))
    assert out.shape == (B, HIDDEN), out.shape

    ref = jax.block_until_ready(jax.jit(_reference_forward)(phi, params))
    err = float(jnp.max(jnp.abs(out - ref)))
    assert err < 8e-2, f"max abs error vs reference: {err}"   # bf16 operands
    print("KERNEL_OK")
</pallas_src>

<mosaic_0001>
module attributes {stable_mosaic.version = 11 : i64} {
  func.func @_fused_kernel(%arg0: i32, %arg1: memref<72x36xf32, #tpu.memory_space<vmem>>, %arg2: memref<5x36x512xbf16, #tpu.memory_space<vmem>>, %arg3: memref<1x128xf32, #tpu.memory_space<vmem>>, %arg4: memref<3x160x128xbf16, #tpu.memory_space<vmem>>, %arg5: memref<1x64xf32, #tpu.memory_space<vmem>>, %arg6: memref<3x96x128xbf16, #tpu.memory_space<vmem>>, %arg7: memref<1x64xf32, #tpu.memory_space<vmem>>, %arg8: memref<128x64xbf16, #tpu.memory_space<vmem>>, %arg9: memref<1x64xf32, #tpu.memory_space<vmem>>, %arg10: memref<2x64xf32, #tpu.memory_space<vmem>>, %arg11: memref<20x160xf32, #tpu.memory_space<vmem>>, %arg12: memref<12x96xf32, #tpu.memory_space<vmem>>) attributes {dimension_semantics = [#tpu.dimension_semantics<parallel>], iteration_bounds = array<i64: 1>, scalar_prefetch = 0 : i64, scratch_operands = 2 : i64, tpu.core_type = #tpu.core_type<tc>, window_params = [{transform_indices = @transform_0, window_bounds = array<i64: 72, 36>}, {pipeline_mode = #tpu.pipeline_mode<synchronous>, transform_indices = @transform_1, window_bounds = array<i64: 5, 36, 512>}, {pipeline_mode = #tpu.pipeline_mode<synchronous>, transform_indices = @transform_2, window_bounds = array<i64: 1, 128>}, {pipeline_mode = #tpu.pipeline_mode<synchronous>, transform_indices = @transform_3, window_bounds = array<i64: 3, 160, 128>}, {pipeline_mode = #tpu.pipeline_mode<synchronous>, transform_indices = @transform_4, window_bounds = array<i64: 1, 64>}, {pipeline_mode = #tpu.pipeline_mode<synchronous>, transform_indices = @transform_5, window_bounds = array<i64: 3, 96, 128>}, {pipeline_mode = #tpu.pipeline_mode<synchronous>, transform_indices = @transform_6, window_bounds = array<i64: 1, 64>}, {pipeline_mode = #tpu.pipeline_mode<synchronous>, transform_indices = @transform_7, window_bounds = array<i64: 128, 64>}, {pipeline_mode = #tpu.pipeline_mode<synchronous>, transform_indices = @transform_8, window_bounds = array<i64: 1, 64>}, {transform_indices = @transform_9, window_bounds = array<i64: 2, 64>}]} {
    %c0 = arith.constant 0 : index
    %c0_0 = arith.constant 0 : index
    %0 = vector.load %arg1[%c0, %c0_0] : memref<72x36xf32, #tpu.memory_space<vmem>>, vector<72x36xf32>
    %1 = vector.extract_strided_slice %0 {offsets = [0, 0], sizes = [64, 36], strides = [1, 1]} : vector<72x36xf32> to vector<64x36xf32>
    %2 = arith.truncf %1 : vector<64x36xf32> to vector<64x36xbf16>
    %c0_1 = arith.constant 0 : index
    %c0_2 = arith.constant 0 : index
    %c0_3 = arith.constant 0 : index
    %3 = vector.load %arg2[%c0_1, %c0_2, %c0_3] : memref<5x36x512xbf16, #tpu.memory_space<vmem>>, vector<1x36x512xbf16>
    %4 = vector.shape_cast %3 : vector<1x36x512xbf16> to vector<36x512xbf16>
    %cst = arith.constant dense<0.000000e+00> : vector<64x512xf32>
    %5 = tpu.matmul %2, %4, %cst {dimension_numbers = #tpu.dot_dimension_numbers<[1], [0], [0], [1], [0, 0, 1, 1], [], []>} : vector<64x36xbf16>, vector<36x512xbf16>, vector<64x512xf32> -> vector<64x512xf32>
    %6 = vector.extract_strided_slice %0 {offsets = [2, 0], sizes = [64, 36], strides = [1, 1]} : vector<72x36xf32> to vector<64x36xf32>
    %7 = arith.truncf %6 : vector<64x36xf32> to vector<64x36xbf16>
    %c1 = arith.constant 1 : index
    %c0_4 = arith.constant 0 : index
    %c0_5 = arith.constant 0 : index
    %8 = vector.load %arg2[%c1, %c0_4, %c0_5] : memref<5x36x512xbf16, #tpu.memory_space<vmem>>, vector<1x36x512xbf16>
    %9 = vector.shape_cast %8 : vector<1x36x512xbf16> to vector<36x512xbf16>
    %cst_6 = arith.constant dense<0.000000e+00> : vector<64x512xf32>
    %10 = tpu.matmul %7, %9, %cst_6 {dimension_numbers = #tpu.dot_dimension_numbers<[1], [0], [0], [1], [0, 0, 1, 1], [], []>} : vector<64x36xbf16>, vector<36x512xbf16>, vector<64x512xf32> -> vector<64x512xf32>
    %11 = arith.addf %5, %10 : vector<64x512xf32>
    %12 = vector.extract_strided_slice %0 {offsets = [4, 0], sizes = [64, 36], strides = [1, 1]} : vector<72x36xf32> to vector<64x36xf32>
    %13 = arith.truncf %12 : vector<64x36xf32> to vector<64x36xbf16>
    %c2 = arith.constant 2 : index
    %c0_7 = arith.constant 0 : index
    %c0_8 = arith.constant 0 : index
    %14 = vector.load %arg2[%c2, %c0_7, %c0_8] : memref<5x36x512xbf16, #tpu.memory_space<vmem>>, vector<1x36x512xbf16>
    %15 = vector.shape_cast %14 : vector<1x36x512xbf16> to vector<36x512xbf16>
    %cst_9 = arith.constant dense<0.000000e+00> : vector<64x512xf32>
    %16 = tpu.matmul %13, %15, %cst_9 {dimension_numbers = #tpu.dot_dimension_numbers<[1], [0], [0], [1], [0, 0, 1, 1], [], []>} : vector<64x36xbf16>, vector<36x512xbf16>, vector<64x512xf32> -> vector<64x512xf32>
    %17 = arith.addf %11, %16 : vector<64x512xf32>
    %18 = vector.extract_strided_slice %0 {offsets = [6, 0], sizes = [64, 36], strides = [1, 1]} : vector<72x36xf32> to vector<64x36xf32>
    %19 = arith.truncf %18 : vector<64x36xf32> to vector<64x36xbf16>
    %c3 = arith.constant 3 : index
    %c0_10 = arith.constant 0 : index
    %c0_11 = arith.constant 0 : index
    %20 = vector.load %arg2[%c3, %c0_10, %c0_11] : memref<5x36x512xbf16, #tpu.memory_space<vmem>>, vector<1x36x512xbf16>
    %21 = vector.shape_cast %20 : vector<1x36x512xbf16> to vector<36x512xbf16>
    %cst_12 = arith.constant dense<0.000000e+00> : vector<64x512xf32>
    %22 = tpu.matmul %19, %21, %cst_12 {dimension_numbers = #tpu.dot_dimension_numbers<[1], [0], [0], [1], [0, 0, 1, 1], [], []>} : vector<64x36xbf16>, vector<36x512xbf16>, vector<64x512xf32> -> vector<64x512xf32>
    %23 = arith.addf %17, %22 : vector<64x512xf32>
    %24 = vector.extract_strided_slice %0 {offsets = [8, 0], sizes = [64, 36], strides = [1, 1]} : vector<72x36xf32> to vector<64x36xf32>
    %25 = arith.truncf %24 : vector<64x36xf32> to vector<64x36xbf16>
    %c4 = arith.constant 4 : index
    %c0_13 = arith.constant 0 : index
    %c0_14 = arith.constant 0 : index
    %26 = vector.load %arg2[%c4, %c0_13, %c0_14] : memref<5x36x512xbf16, #tpu.memory_space<vmem>>, vector<1x36x512xbf16>
    %27 = vector.shape_cast %26 : vector<1x36x512xbf16> to vector<36x512xbf16>
    %cst_15 = arith.constant dense<0.000000e+00> : vector<64x512xf32>
    %28 = tpu.matmul %25, %27, %cst_15 {dimension_numbers = #tpu.dot_dimension_numbers<[1], [0], [0], [1], [0, 0, 1, 1], [], []>} : vector<64x36xbf16>, vector<36x512xbf16>, vector<64x512xf32> -> vector<64x512xf32>
    %29 = arith.addf %23, %28 : vector<64x512xf32>
    %c0_16 = arith.constant 0 : index
    %c0_17 = arith.constant 0 : index
    %30 = vector.load %arg3[%c0_16, %c0_17] : memref<1x128xf32, #tpu.memory_space<vmem>>, vector<1x128xf32>
    %31 = vector.extract_strided_slice %29 {offsets = [0, 0], sizes = [2, 512], strides = [1, 1]} : vector<64x512xf32> to vector<2x512xf32>
    %32 = vector.extract_strided_slice %29 {offsets = [2, 0], sizes = [2, 512], strides = [1, 1]} : vector<64x512xf32> to vector<2x512xf32>
    %33 = arith.maximumf %31, %32 : vector<2x512xf32>
    %34 = vector.extract_strided_slice %29 {offsets = [4, 0], sizes = [2, 512], strides = [1, 1]} : vector<64x512xf32> to vector<2x512xf32>
    %35 = arith.maximumf %33, %34 : vector<2x512xf32>
    %36 = vector.extract_strided_slice %29 {offsets = [6, 0], sizes = [2, 512], strides = [1, 1]} : vector<64x512xf32> to vector<2x512xf32>
    %37 = arith.maximumf %35, %36 : vector<2x512xf32>
    %38 = vector.extract_strided_slice %37 {offsets = [0, 0], sizes = [2, 16], strides = [1, 1]} : vector<2x512xf32> to vector<2x16xf32>
    %39 = vector.extract_strided_slice %37 {offsets = [0, 16], sizes = [2, 16], strides = [1, 1]} : vector<2x512xf32> to vector<2x16xf32>
    %40 = arith.maximumf %38, %39 : vector<2x16xf32>
    %41 = vector.extract_strided_slice %37 {offsets = [0, 32], sizes = [2, 16], strides = [1, 1]} : vector<2x512xf32> to vector<2x16xf32>
    %42 = arith.maximumf %40, %41 : vector<2x16xf32>
    %43 = vector.extract_strided_slice %37 {offsets = [0, 48], sizes = [2, 16], strides = [1, 1]} : vector<2x512xf32> to vector<2x16xf32>
    %44 = arith.maximumf %42, %43 : vector<2x16xf32>
    %45 = vector.extract_strided_slice %37 {offsets = [0, 64], sizes = [2, 16], strides = [1, 1]} : vector<2x512xf32> to vector<2x16xf32>
    %46 = vector.extract_strided_slice %37 {offsets = [0, 80], sizes = [2, 16], strides = [1, 1]} : vector<2x512xf32> to vector<2x16xf32>
    %47 = arith.maximumf %45, %46 : vector<2x16xf32>
    %48 = vector.extract_strided_slice %37 {offsets = [0, 96], sizes = [2, 16], strides = [1, 1]} : vector<2x512xf32> to vector<2x16xf32>
    %49 = arith.maximumf %47, %48 : vector<2x16xf32>
    %50 = vector.extract_strided_slice %37 {offsets = [0, 112], sizes = [2, 16], strides = [1, 1]} : vector<2x512xf32> to vector<2x16xf32>
    %51 = arith.maximumf %49, %50 : vector<2x16xf32>
    %52 = vector.extract_strided_slice %37 {offsets = [0, 128], sizes = [2, 16], strides = [1, 1]} : vector<2x512xf32> to vector<2x16xf32>
    %53 = vector.extract_strided_slice %37 {offsets = [0, 144], sizes = [2, 16], strides = [1, 1]} : vector<2x512xf32> to vector<2x16xf32>
    %54 = arith.maximumf %52, %53 : vector<2x16xf32>
    %55 = vector.extract_strided_slice %37 {offsets = [0, 160], sizes = [2, 16], strides = [1, 1]} : vector<2x512xf32> to vector<2x16xf32>
    %56 = arith.maximumf %54, %55 : vector<2x16xf32>
    %57 = vector.extract_strided_slice %37 {offsets = [0, 176], sizes = [2, 16], strides = [1, 1]} : vector<2x512xf32> to vector<2x16xf32>
    %58 = arith.maximumf %56, %57 : vector<2x16xf32>
    %59 = vector.extract_strided_slice %37 {offsets = [0, 192], sizes = [2, 16], strides = [1, 1]} : vector<2x512xf32> to vector<2x16xf32>
    %60 = vector.extract_strided_slice %37 {offsets = [0, 208], sizes = [2, 16], strides = [1, 1]} : vector<2x512xf32> to vector<2x16xf32>
    %61 = arith.maximumf %59, %60 : vector<2x16xf32>
    %62 = vector.extract_strided_slice %37 {offsets = [0, 224], sizes = [2, 16], strides = [1, 1]} : vector<2x512xf32> to vector<2x16xf32>
    %63 = arith.maximumf %61, %62 : vector<2x16xf32>
    %64 = vector.extract_strided_slice %37 {offsets = [0, 240], sizes = [2, 16], strides = [1, 1]} : vector<2x512xf32> to vector<2x16xf32>
    %65 = arith.maximumf %63, %64 : vector<2x16xf32>
    %66 = vector.extract_strided_slice %37 {offsets = [0, 256], sizes = [2, 16], strides = [1, 1]} : vector<2x512xf32> to vector<2x16xf32>
    %67 = vector.extract_strided_slice %37 {offsets = [0, 272], sizes = [2, 16], strides = [1, 1]} : vector<2x512xf32> to vector<2x16xf32>
    %68 = arith.maximumf %66, %67 : vector<2x16xf32>
    %69 = vector.extract_strided_slice %37 {offsets = [0, 288], sizes = [2, 16], strides = [1, 1]} : vector<2x512xf32> to vector<2x16xf32>
    %70 = arith.maximumf %68, %69 : vector<2x16xf32>
    %71 = vector.extract_strided_slice %37 {offsets = [0, 304], sizes = [2, 16], strides = [1, 1]} : vector<2x512xf32> to vector<2x16xf32>
    %72 = arith.maximumf %70, %71 : vector<2x16xf32>
    %73 = vector.extract_strided_slice %37 {offsets = [0, 320], sizes = [2, 16], strides = [1, 1]} : vector<2x512xf32> to vector<2x16xf32>
    %74 = vector.extract_strided_slice %37 {offsets = [0, 336], sizes = [2, 16], strides = [1, 1]} : vector<2x512xf32> to vector<2x16xf32>
    %75 = arith.maximumf %73, %74 : vector<2x16xf32>
    %76 = vector.extract_strided_slice %37 {offsets = [0, 352], sizes = [2, 16], strides = [1, 1]} : vector<2x512xf32> to vector<2x16xf32>
    %77 = arith.maximumf %75, %76 : vector<2x16xf32>
    %78 = vector.extract_strided_slice %37 {offsets = [0, 368], sizes = [2, 16], strides = [1, 1]} : vector<2x512xf32> to vector<2x16xf32>
    %79 = arith.maximumf %77, %78 : vector<2x16xf32>
    %80 = vector.extract_strided_slice %37 {offsets = [0, 384], sizes = [2, 16], strides = [1, 1]} : vector<2x512xf32> to vector<2x16xf32>
    %81 = vector.extract_strided_slice %37 {offsets = [0, 400], sizes = [2, 16], strides = [1, 1]} : vector<2x512xf32> to vector<2x16xf32>
    %82 = arith.maximumf %80, %81 : vector<2x16xf32>
    %83 = vector.extract_strided_slice %37 {offsets = [0, 416], sizes = [2, 16], strides = [1, 1]} : vector<2x512xf32> to vector<2x16xf32>
    %84 = arith.maximumf %82, %83 : vector<2x16xf32>
    %85 = vector.extract_strided_slice %37 {offsets = [0, 432], sizes = [2, 16], strides = [1, 1]} : vector<2x512xf32> to vector<2x16xf32>
    %86 = arith.maximumf %84, %85 : vector<2x16xf32>
    %87 = vector.extract_strided_slice %37 {offsets = [0, 448], sizes = [2, 16], strides = [1, 1]} : vector<2x512xf32> to vector<2x16xf32>
    %88 = vector.extract_strided_slice %37 {offsets = [0, 464], sizes = [2, 16], strides = [1, 1]} : vector<2x512xf32> to vector<2x16xf32>
    %89 = arith.maximumf %87, %88 : vector<2x16xf32>
    %90 = vector.extract_strided_slice %37 {offsets = [0, 480], sizes = [2, 16], strides = [1, 1]} : vector<2x512xf32> to vector<2x16xf32>
    %91 = arith.maximumf %89, %90 : vector<2x16xf32>
    %92 = vector.extract_strided_slice %37 {offsets = [0, 496], sizes = [2, 16], strides = [1, 1]} : vector<2x512xf32> to vector<2x16xf32>
    %93 = arith.maximumf %91, %92 : vector<2x16xf32>
    %94 = tpu.concatenate %44, %51, %58, %65, %72, %79, %86, %93 in 1 : vector<2x16xf32>, vector<2x16xf32>, vector<2x16xf32>, vector<2x16xf32>, vector<2x16xf32>, vector<2x16xf32>, vector<2x16xf32>, vector<2x16xf32> -> vector<2x128xf32>
    %95 = vector.broadcast %30 : vector<1x128xf32> to vector<2x128xf32>
    %96 = arith.addf %94, %95 : vector<2x128xf32>
    %cst_18 = arith.constant 0.000000e+00 : f32
    %97 = vector.broadcast %cst_18 : f32 to vector<2x128xf32>
    %98 = arith.maximumf %96, %97 : vector<2x128xf32>
    %99 = vector.extract_strided_slice %29 {offsets = [8, 0], sizes = [2, 512], strides = [1, 1]} : vector<64x512xf32> to vector<2x512xf32>
    %100 = vector.extract_strided_slice %29 {offsets = [10, 0], sizes = [2, 512], strides = [1, 1]} : vector<64x512xf32> to vector<2x512xf32>
    %101 = arith.maximumf %99, %100 : vector<2x512xf32>
    %102 = vector.extract_strided_slice %29 {offsets = [12, 0], sizes = [2, 512], strides = [1, 1]} : vector<64x512xf32> to vector<2x512xf32>
    %103 = arith.maximumf %101, %102 : vector<2x512xf32>
    %104 = vector.extract_strided_slice %29 {offsets = [14, 0], sizes = [2, 512], strides = [1, 1]} : vector<64x512xf32> to vector<2x512xf32>
    %105 = arith.maximumf %103, %104 : vector<2x512xf32>
    %106 = vector.extract_strided_slice %105 {offsets = [0, 0], sizes = [2, 16], strides = [1, 1]} : vector<2x512xf32> to vector<2x16xf32>
    %107 = vector.extract_strided_slice %105 {offsets = [0, 16], sizes = [2, 16], strides = [1, 1]} : vector<2x512xf32> to vector<2x16xf32>
    %108 = arith.maximumf %106, %107 : vector<2x16xf32>
    %109 = vector.extract_strided_slice %105 {offsets = [0, 32], sizes = [2, 16], strides = [1, 1]} : vector<2x512xf32> to vector<2x16xf32>
    %110 = arith.maximumf %108, %109 : vector<2x16xf32>
    %111 = vector.extract_strided_slice %105 {offsets = [0, 48], sizes = [2, 16], strides = [1, 1]} : vector<2x512xf32> to vector<2x16xf32>
    %112 = arith.maximumf %110, %111 : vector<2x16xf32>
    %113 = vector.extract_strided_slice %105 {offsets = [0, 64], sizes = [2, 16], strides = [1, 1]} : vector<2x512xf32> to vector<2x16xf32>
    %114 = vector.extract_strided_slice %105 {offsets = [0, 80], sizes = [2, 16], strides = [1, 1]} : vector<2x512xf32> to vector<2x16xf32>
    %115 = arith.maximumf %113, %114 : vector<2x16xf32>
    %116 = vector.extract_strided_slice %105 {offsets = [0, 96], sizes = [2, 16], strides = [1, 1]} : vector<2x512xf32> to vector<2x16xf32>
    %117 = arith.maximumf %115, %116 : vector<2x16xf32>
    %118 = vector.extract_strided_slice %105 {offsets = [0, 112], sizes = [2, 16], strides = [1, 1]} : vector<2x512xf32> to vector<2x16xf32>
    %119 = arith.maximumf %117, %118 : vector<2x16xf32>
    %120 = vector.extract_strided_slice %105 {offsets = [0, 128], sizes = [2, 16], strides = [1, 1]} : vector<2x512xf32> to vector<2x16xf32>
    %121 = vector.extract_strided_slice %105 {offsets = [0, 144], sizes = [2, 16], strides = [1, 1]} : vector<2x512xf32> to vector<2x16xf32>
    %122 = arith.maximumf %120, %121 : vector<2x16xf32>
    %123 = vector.extract_strided_slice %105 {offsets = [0, 160], sizes = [2, 16], strides = [1, 1]} : vector<2x512xf32> to vector<2x16xf32>
    %124 = arith.maximumf %122, %123 : vector<2x16xf32>
    %125 = vector.extract_strided_slice %105 {offsets = [0, 176], sizes = [2, 16], strides = [1, 1]} : vector<2x512xf32> to vector<2x16xf32>
    %126 = arith.maximumf %124, %125 : vector<2x16xf32>
    %127 = vector.extract_strided_slice %105 {offsets = [0, 192], sizes = [2, 16], strides = [1, 1]} : vector<2x512xf32> to vector<2x16xf32>
    %128 = vector.extract_strided_slice %105 {offsets = [0, 208], sizes = [2, 16], strides = [1, 1]} : vector<2x512xf32> to vector<2x16xf32>
    %129 = arith.maximumf %127, %128 : vector<2x16xf32>
    %130 = vector.extract_strided_slice %105 {offsets = [0, 224], sizes = [2, 16], strides = [1, 1]} : vector<2x512xf32> to vector<2x16xf32>
    %131 = arith.maximumf %129, %130 : vector<2x16xf32>
    %132 = vector.extract_strided_slice %105 {offsets = [0, 240], sizes = [2, 16], strides = [1, 1]} : vector<2x512xf32> to vector<2x16xf32>
    %133 = arith.maximumf %131, %132 : vector<2x16xf32>
    %134 = vector.extract_strided_slice %105 {offsets = [0, 256], sizes = [2, 16], strides = [1, 1]} : vector<2x512xf32> to vector<2x16xf32>
    %135 = vector.extract_strided_slice %105 {offsets = [0, 272], sizes = [2, 16], strides = [1, 1]} : vector<2x512xf32> to vector<2x16xf32>
    %136 = arith.maximumf %134, %135 : vector<2x16xf32>
    %137 = vector.extract_strided_slice %105 {offsets = [0, 288], sizes = [2, 16], strides = [1, 1]} : vector<2x512xf32> to vector<2x16xf32>
    %138 = arith.maximumf %136, %137 : vector<2x16xf32>
    %139 = vector.extract_strided_slice %105 {offsets = [0, 304], sizes = [2, 16], strides = [1, 1]} : vector<2x512xf32> to vector<2x16xf32>
    %140 = arith.maximumf %138, %139 : vector<2x16xf32>
    %141 = vector.extract_strided_slice %105 {offsets = [0, 320], sizes = [2, 16], strides = [1, 1]} : vector<2x512xf32> to vector<2x16xf32>
    %142 = vector.extract_strided_slice %105 {offsets = [0, 336], sizes = [2, 16], strides = [1, 1]} : vector<2x512xf32> to vector<2x16xf32>
    %143 = arith.maximumf %141, %142 : vector<2x16xf32>
    %144 = vector.extract_strided_slice %105 {offsets = [0, 352], sizes = [2, 16], strides = [1, 1]} : vector<2x512xf32> to vector<2x16xf32>
    %145 = arith.maximumf %143, %144 : vector<2x16xf32>
    %146 = vector.extract_strided_slice %105 {offsets = [0, 368], sizes = [2, 16], strides = [1, 1]} : vector<2x512xf32> to vector<2x16xf32>
    %147 = arith.maximumf %145, %146 : vector<2x16xf32>
    %148 = vector.extract_strided_slice %105 {offsets = [0, 384], sizes = [2, 16], strides = [1, 1]} : vector<2x512xf32> to vector<2x16xf32>
    %149 = vector.extract_strided_slice %105 {offsets = [0, 400], sizes = [2, 16], strides = [1, 1]} : vector<2x512xf32> to vector<2x16xf32>
    %150 = arith.maximumf %148, %149 : vector<2x16xf32>
    %151 = vector.extract_strided_slice %105 {offsets = [0, 416], sizes = [2, 16], strides = [1, 1]} : vector<2x512xf32> to vector<2x16xf32>
    %152 = arith.maximumf %150, %151 : vector<2x16xf32>
    %153 = vector.extract_strided_slice %105 {offsets = [0, 432], sizes = [2, 16], strides = [1, 1]} : vector<2x512xf32> to vector<2x16xf32>
    %154 = arith.maximumf %152, %153 : vector<2x16xf32>
    %155 = vector.extract_strided_slice %105 {offsets = [0, 448], sizes = [2, 16], strides = [1, 1]} : vector<2x512xf32> to vector<2x16xf32>
    %156 = vector.extract_strided_slice %105 {offsets = [0, 464], sizes = [2, 16], strides = [1, 1]} : vector<2x512xf32> to vector<2x16xf32>
    %157 = arith.maximumf %155, %156 : vector<2x16xf32>
    %158 = vector.extract_strided_slice %105 {offsets = [0, 480], sizes = [2, 16], strides = [1, 1]} : vector<2x512xf32> to vector<2x16xf32>
    %159 = arith.maximumf %157, %158 : vector<2x16xf32>
    %160 = vector.extract_strided_slice %105 {offsets = [0, 496], sizes = [2, 16], strides = [1, 1]} : vector<2x512xf32> to vector<2x16xf32>
    %161 = arith.maximumf %159, %160 : vector<2x16xf32>
    %162 = tpu.concatenate %112, %119, %126, %133, %140, %147, %154, %161 in 1 : vector<2x16xf32>, vector<2x16xf32>, vector<2x16xf32>, vector<2x16xf32>, vector<2x16xf32>, vector<2x16xf32>, vector<2x16xf32>, vector<2x16xf32> -> vector<2x128xf32>
    %163 = vector.broadcast %30 : vector<1x128xf32> to vector<2x128xf32>
    %164 = arith.addf %162, %163 : vector<2x128xf32>
    %cst_19 = arith.constant 0.000000e+00 : f32
    %165 = vector.broadcast %cst_19 : f32 to vector<2x128xf32>
    %166 = arith.maximumf %164, %165 : vector<2x128xf32>
    %167 = vector.extract_strided_slice %29 {offsets = [16, 0], sizes = [2, 512], strides = [1, 1]} : vector<64x512xf32> to vector<2x512xf32>
    %168 = vector.extract_strided_slice %29 {offsets = [18, 0], sizes = [2, 512], strides = [1, 1]} : vector<64x512xf32> to vector<2x512xf32>
    %169 = arith.maximumf %167, %168 : vector<2x512xf32>
    %170 = vector.extract_strided_slice %29 {offsets = [20, 0], sizes = [2, 512], strides = [1, 1]} : vector<64x512xf32> to vector<2x512xf32>
    %171 = arith.maximumf %169, %170 : vector<2x512xf32>
    %172 = vector.extract_strided_slice %29 {offsets = [22, 0], sizes = [2, 512], strides = [1, 1]} : vector<64x512xf32> to vector<2x512xf32>
    %173 = arith.maximumf %171, %172 : vector<2x512xf32>
    %174 = vector.extract_strided_slice %173 {offsets = [0, 0], sizes = [2, 16], strides = [1, 1]} : vector<2x512xf32> to vector<2x16xf32>
    %175 = vector.extract_strided_slice %173 {offsets = [0, 16], sizes = [2, 16], strides = [1, 1]} : vector<2x512xf32> to vector<2x16xf32>
    %176 = arith.maximumf %174, %175 : vector<2x16xf32>
    %177 = vector.extract_strided_slice %173 {offsets = [0, 32], sizes = [2, 16], strides = [1, 1]} : vector<2x512xf32> to vector<2x16xf32>
    %178 = arith.maximumf %176, %177 : vector<2x16xf32>
    %179 = vector.extract_strided_slice %173 {offsets = [0, 48], sizes = [2, 16], strides = [1, 1]} : vector<2x512xf32> to vector<2x16xf32>
    %180 = arith.maximumf %178, %179 : vector<2x16xf32>
    %181 = vector.extract_strided_slice %173 {offsets = [0, 64], sizes = [2, 16], strides = [1, 1]} : vector<2x512xf32> to vector<2x16xf32>
    %182 = vector.extract_strided_slice %173 {offsets = [0, 80], sizes = [2, 16], strides = [1, 1]} : vector<2x512xf32> to vector<2x16xf32>
    %183 = arith.maximumf %181, %182 : vector<2x16xf32>
    %184 = vector.extract_strided_slice %173 {offsets = [0, 96], sizes = [2, 16], strides = [1, 1]} : vector<2x512xf32> to vector<2x16xf32>
    %185 = arith.maximumf %183, %184 : vector<2x16xf32>
    %186 = vector.extract_strided_slice %173 {offsets = [0, 112], sizes = [2, 16], strides = [1, 1]} : vector<2x512xf32> to vector<2x16xf32>
    %187 = arith.maximumf %185, %186 : vector<2x16xf32>
    %188 = vector.extract_strided_slice %173 {offsets = [0, 128], sizes = [2, 16], strides = [1, 1]} : vector<2x512xf32> to vector<2x16xf32>
    %189 = vector.extract_strided_slice %173 {offsets = [0, 144], sizes = [2, 16], strides = [1, 1]} : vector<2x512xf32> to vector<2x16xf32>
    %190 = arith.maximumf %188, %189 : vector<2x16xf32>
    %191 = vector.extract_strided_slice %173 {offsets = [0, 160], sizes = [2, 16], strides = [1, 1]} : vector<2x512xf32> to vector<2x16xf32>
    %192 = arith.maximumf %190, %191 : vector<2x16xf32>
    %193 = vector.extract_strided_slice %173 {offsets = [0, 176], sizes = [2, 16], strides = [1, 1]} : vector<2x512xf32> to vector<2x16xf32>
    %194 = arith.maximumf %192, %193 : vector<2x16xf32>
    %195 = vector.extract_strided_slice %173 {offsets = [0, 192], sizes = [2, 16], strides = [1, 1]} : vector<2x512xf32> to vector<2x16xf32>
    %196 = vector.extract_strided_slice %173 {offsets = [0, 208], sizes = [2, 16], strides = [1, 1]} : vector<2x512xf32> to vector<2x16xf32>
    %197 = arith.maximumf %195, %196 : vector<2x16xf32>
    %198 = vector.extract_strided_slice %173 {offsets = [0, 224], sizes = [2, 16], strides = [1, 1]} : vector<2x512xf32> to vector<2x16xf32>
    %199 = arith.maximumf %197, %198 : vector<2x16xf32>
    %200 = vector.extract_strided_slice %173 {offsets = [0, 240], sizes = [2, 16], strides = [1, 1]} : vector<2x512xf32> to vector<2x16xf32>
    %201 = arith.maximumf %199, %200 : vector<2x16xf32>
    %202 = vector.extract_strided_slice %173 {offsets = [0, 256], sizes = [2, 16], strides = [1, 1]} : vector<2x512xf32> to vector<2x16xf32>
    %203 = vector.extract_strided_slice %173 {offsets = [0, 272], sizes = [2, 16], strides = [1, 1]} : vector<2x512xf32> to vector<2x16xf32>
    %204 = arith.maximumf %202, %203 : vector<2x16xf32>
    %205 = vector.extract_strided_slice %173 {offsets = [0, 288], sizes = [2, 16], strides = [1, 1]} : vector<2x512xf32> to vector<2x16xf32>
    %206 = arith.maximumf %204, %205 : vector<2x16xf32>
    %207 = vector.extract_strided_slice %173 {offsets = [0, 304], sizes = [2, 16], strides = [1, 1]} : vector<2x512xf32> to vector<2x16xf32>
    %208 = arith.maximumf %206, %207 : vector<2x16xf32>
    %209 = vector.extract_strided_slice %173 {offsets = [0, 320], sizes = [2, 16], strides = [1, 1]} : vector<2x512xf32> to vector<2x16xf32>
    %210 = vector.extract_strided_slice %173 {offsets = [0, 336], sizes = [2, 16], strides = [1, 1]} : vector<2x512xf32> to vector<2x16xf32>
    %211 = arith.maximumf %209, %210 : vector<2x16xf32>
    %212 = vector.extract_strided_slice %173 {offsets = [0, 352], sizes = [2, 16], strides = [1, 1]} : vector<2x512xf32> to vector<2x16xf32>
    %213 = arith.maximumf %211, %212 : vector<2x16xf32>
    %214 = vector.extract_strided_slice %173 {offsets = [0, 368], sizes = [2, 16], strides = [1, 1]} : vector<2x512xf32> to vector<2x16xf32>
    %215 = arith.maximumf %213, %214 : vector<2x16xf32>
    %216 = vector.extract_strided_slice %173 {offsets = [0, 384], sizes = [2, 16], strides = [1, 1]} : vector<2x512xf32> to vector<2x16xf32>
    %217 = vector.extract_strided_slice %173 {offsets = [0, 400], sizes = [2, 16], strides = [1, 1]} : vector<2x512xf32> to vector<2x16xf32>
    %218 = arith.maximumf %216, %217 : vector<2x16xf32>
    %219 = vector.extract_strided_slice %173 {offsets = [0, 416], sizes = [2, 16], strides = [1, 1]} : vector<2x512xf32> to vector<2x16xf32>
    %220 = arith.maximumf %218, %219 : vector<2x16xf32>
    %221 = vector.extract_strided_slice %173 {offsets = [0, 432], sizes = [2, 16], strides = [1, 1]} : vector<2x512xf32> to vector<2x16xf32>
    %222 = arith.maximumf %220, %221 : vector<2x16xf32>
    %223 = vector.extract_strided_slice %173 {offsets = [0, 448], sizes = [2, 16], strides = [1, 1]} : vector<2x512xf32> to vector<2x16xf32>
    %224 = vector.extract_strided_slice %173 {offsets = [0, 464], sizes = [2, 16], strides = [1, 1]} : vector<2x512xf32> to vector<2x16xf32>
    %225 = arith.maximumf %223, %224 : vector<2x16xf32>
    %226 = vector.extract_strided_slice %173 {offsets = [0, 480], sizes = [2, 16], strides = [1, 1]} : vector<2x512xf32> to vector<2x16xf32>
    %227 = arith.maximumf %225, %226 : vector<2x16xf32>
    %228 = vector.extract_strided_slice %173 {offsets = [0, 496], sizes = [2, 16], strides = [1, 1]} : vector<2x512xf32> to vector<2x16xf32>
    %229 = arith.maximumf %227, %228 : vector<2x16xf32>
    %230 = tpu.concatenate %180, %187, %194, %201, %208, %215, %222, %229 in 1 : vector<2x16xf32>, vector<2x16xf32>, vector<2x16xf32>, vector<2x16xf32>, vector<2x16xf32>, vector<2x16xf32>, vector<2x16xf32>, vector<2x16xf32> -> vector<2x128xf32>
    %231 = vector.broadcast %30 : vector<1x128xf32> to vector<2x128xf32>
    %232 = arith.addf %230, %231 : vector<2x128xf32>
    %cst_20 = arith.constant 0.000000e+00 : f32
    %233 = vector.broadcast %cst_20 : f32 to vector<2x128xf32>
    %234 = arith.maximumf %232, %233 : vector<2x128xf32>
    %235 = vector.extract_strided_slice %29 {offsets = [24, 0], sizes = [2, 512], strides = [1, 1]} : vector<64x512xf32> to vector<2x512xf32>
    %236 = vector.extract_strided_slice %29 {offsets = [26, 0], sizes = [2, 512], strides = [1, 1]} : vector<64x512xf32> to vector<2x512xf32>
    %237 = arith.maximumf %235, %236 : vector<2x512xf32>
    %238 = vector.extract_strided_slice %29 {offsets = [28, 0], sizes = [2, 512], strides = [1, 1]} : vector<64x512xf32> to vector<2x512xf32>
    %239 = arith.maximumf %237, %238 : vector<2x512xf32>
    %240 = vector.extract_strided_slice %29 {offsets = [30, 0], sizes = [2, 512], strides = [1, 1]} : vector<64x512xf32> to vector<2x512xf32>
    %241 = arith.maximumf %239, %240 : vector<2x512xf32>
    %242 = vector.extract_strided_slice %241 {offsets = [0, 0], sizes = [2, 16], strides = [1, 1]} : vector<2x512xf32> to vector<2x16xf32>
    %243 = vector.extract_strided_slice %241 {offsets = [0, 16], sizes = [2, 16], strides = [1, 1]} : vector<2x512xf32> to vector<2x16xf32>
    %244 = arith.maximumf %242, %243 : vector<2x16xf32>
    %245 = vector.extract_strided_slice %241 {offsets = [0, 32], sizes = [2, 16], strides = [1, 1]} : vector<2x512xf32> to vector<2x16xf32>
    %246 = arith.maximumf %244, %245 : vector<2x16xf32>
    %247 = vector.extract_strided_slice %241 {offsets = [0, 48], sizes = [2, 16], strides = [1, 1]} : vector<2x512xf32> to vector<2x16xf32>
    %248 = arith.maximumf %246, %247 : vector<2x16xf32>
    %249 = vector.extract_strided_slice %241 {offsets = [0, 64], sizes = [2, 16], strides = [1, 1]} : vector<2x512xf32> to vector<2x16xf32>
    %250 = vector.extract_strided_slice %241 {offsets = [0, 80], sizes = [2, 16], strides = [1, 1]} : vector<2x512xf32> to vector<2x16xf32>
    %251 = arith.maximumf %249, %250 : vector<2x16xf32>
    %252 = vector.extract_strided_slice %241 {offsets = [0, 96], sizes = [2, 16], strides = [1, 1]} : vector<2x512xf32> to vector<2x16xf32>
    %253 = arith.maximumf %251, %252 : vector<2x16xf32>
    %254 = vector.extract_strided_slice %241 {offsets = [0, 112], sizes = [2, 16], strides = [1, 1]} : vector<2x512xf32> to vector<2x16xf32>
    %255 = arith.maximumf %253, %254 : vector<2x16xf32>
    %256 = vector.extract_strided_slice %241 {offsets = [0, 128], sizes = [2, 16], strides = [1, 1]} : vector<2x512xf32> to vector<2x16xf32>
    %257 = vector.extract_strided_slice %241 {offsets = [0, 144], sizes = [2, 16], strides = [1, 1]} : vector<2x512xf32> to vector<2x16xf32>
    %258 = arith.maximumf %256, %257 : vector<2x16xf32>
    %259 = vector.extract_strided_slice %241 {offsets = [0, 160], sizes = [2, 16], strides = [1, 1]} : vector<2x512xf32> to vector<2x16xf32>
    %260 = arith.maximumf %258, %259 : vector<2x16xf32>
    %261 = vector.extract_strided_slice %241 {offsets = [0, 176], sizes = [2, 16], strides = [1, 1]} : vector<2x512xf32> to vector<2x16xf32>
    %262 = arith.maximumf %260, %261 : vector<2x16xf32>
    %263 = vector.extract_strided_slice %241 {offsets = [0, 192], sizes = [2, 16], strides = [1, 1]} : vector<2x512xf32> to vector<2x16xf32>
    %264 = vector.extract_strided_slice %241 {offsets = [0, 208], sizes = [2, 16], strides = [1, 1]} : vector<2x512xf32> to vector<2x16xf32>
    %265 = arith.maximumf %263, %264 : vector<2x16xf32>
    %266 = vector.extract_strided_slice %241 {offsets = [0, 224], sizes = [2, 16], strides = [1, 1]} : vector<2x512xf32> to vector<2x16xf32>
    %267 = arith.maximumf %265, %266 : vector<2x16xf32>
    %268 = vector.extract_strided_slice %241 {offsets = [0, 240], sizes = [2, 16], strides = [1, 1]} : vector<2x512xf32> to vector<2x16xf32>
    %269 = arith.maximumf %267, %268 : vector<2x16xf32>
    %270 = vector.extract_strided_slice %241 {offsets = [0, 256], sizes = [2, 16], strides = [1, 1]} : vector<2x512xf32> to vector<2x16xf32>
    %271 = vector.extract_strided_slice %241 {offsets = [0, 272], sizes = [2, 16], strides = [1, 1]} : vector<2x512xf32> to vector<2x16xf32>
    %272 = arith.maximumf %270, %271 : vector<2x16xf32>
    %273 = vector.extract_strided_slice %241 {offsets = [0, 288], sizes = [2, 16], strides = [1, 1]} : vector<2x512xf32> to vector<2x16xf32>
    %274 = arith.maximumf %272, %273 : vector<2x16xf32>
    %275 = vector.extract_strided_slice %241 {offsets = [0, 304], sizes = [2, 16], strides = [1, 1]} : vector<2x512xf32> to vector<2x16xf32>
    %276 = arith.maximumf %274, %275 : vector<2x16xf32>
    %277 = vector.extract_strided_slice %241 {offsets = [0, 320], sizes = [2, 16], strides = [1, 1]} : vector<2x512xf32> to vector<2x16xf32>
    %278 = vector.extract_strided_slice %241 {offsets = [0, 336], sizes = [2, 16], strides = [1, 1]} : vector<2x512xf32> to vector<2x16xf32>
    %279 = arith.maximumf %277, %278 : vector<2x16xf32>
    %280 = vector.extract_strided_slice %241 {offsets = [0, 352], sizes = [2, 16], strides = [1, 1]} : vector<2x512xf32> to vector<2x16xf32>
    %281 = arith.maximumf %279, %280 : vector<2x16xf32>
    %282 = vector.extract_strided_slice %241 {offsets = [0, 368], sizes = [2, 16], strides = [1, 1]} : vector<2x512xf32> to vector<2x16xf32>
    %283 = arith.maximumf %281, %282 : vector<2x16xf32>
    %284 = vector.extract_strided_slice %241 {offsets = [0, 384], sizes = [2, 16], strides = [1, 1]} : vector<2x512xf32> to vector<2x16xf32>
    %285 = vector.extract_strided_slice %241 {offsets = [0, 400], sizes = [2, 16], strides = [1, 1]} : vector<2x512xf32> to vector<2x16xf32>
    %286 = arith.maximumf %284, %285 : vector<2x16xf32>
    %287 = vector.extract_strided_slice %241 {offsets = [0, 416], sizes = [2, 16], strides = [1, 1]} : vector<2x512xf32> to vector<2x16xf32>
    %288 = arith.maximumf %286, %287 : vector<2x16xf32>
    %289 = vector.extract_strided_slice %241 {offsets = [0, 432], sizes = [2, 16], strides = [1, 1]} : vector<2x512xf32> to vector<2x16xf32>
    %290 = arith.maximumf %288, %289 : vector<2x16xf32>
    %291 = vector.extract_strided_slice %241 {offsets = [0, 448], sizes = [2, 16], strides = [1, 1]} : vector<2x512xf32> to vector<2x16xf32>
    %292 = vector.extract_strided_slice %241 {offsets = [0, 464], sizes = [2, 16], strides = [1, 1]} : vector<2x512xf32> to vector<2x16xf32>
    %293 = arith.maximumf %291, %292 : vector<2x16xf32>
    %294 = vector.extract_strided_slice %241 {offsets = [0, 480], sizes = [2, 16], strides = [1, 1]} : vector<2x512xf32> to vector<2x16xf32>
    %295 = arith.maximumf %293, %294 : vector<2x16xf32>
    %296 = vector.extract_strided_slice %241 {offsets = [0, 496], sizes = [2, 16], strides = [1, 1]} : vector<2x512xf32> to vector<2x16xf32>
    %297 = arith.maximumf %295, %296 : vector<2x16xf32>
    %298 = tpu.concatenate %248, %255, %262, %269, %276, %283, %290, %297 in 1 : vector<2x16xf32>, vector<2x16xf32>, vector<2x16xf32>, vector<2x16xf32>, vector<2x16xf32>, vector<2x16xf32>, vector<2x16xf32>, vector<2x16xf32> -> vector<2x128xf32>
    %299 = vector.broadcast %30 : vector<1x128xf32> to vector<2x128xf32>
    %300 = arith.addf %298, %299 : vector<2x128xf32>
    %cst_21 = arith.constant 0.000000e+00 : f32
    %301 = vector.broadcast %cst_21 : f32 to vector<2x128xf32>
    %302 = arith.maximumf %300, %301 : vector<2x128xf32>
    %303 = vector.extract_strided_slice %29 {offsets = [32, 0], sizes = [2, 512], strides = [1, 1]} : vector<64x512xf32> to vector<2x512xf32>
    %304 = vector.extract_strided_slice %29 {offsets = [34, 0], sizes = [2, 512], strides = [1, 1]} : vector<64x512xf32> to vector<2x512xf32>
    %305 = arith.maximumf %303, %304 : vector<2x512xf32>
    %306 = vector.extract_strided_slice %29 {offsets = [36, 0], sizes = [2, 512], strides = [1, 1]} : vector<64x512xf32> to vector<2x512xf32>
    %307 = arith.maximumf %305, %306 : vector<2x512xf32>
    %308 = vector.extract_strided_slice %29 {offsets = [38, 0], sizes = [2, 512], strides = [1, 1]} : vector<64x512xf32> to vector<2x512xf32>
    %309 = arith.maximumf %307, %308 : vector<2x512xf32>
    %310 = vector.extract_strided_slice %309 {offsets = [0, 0], sizes = [2, 16], strides = [1, 1]} : vector<2x512xf32> to vector<2x16xf32>
    %311 = vector.extract_strided_slice %309 {offsets = [0, 16], sizes = [2, 16], strides = [1, 1]} : vector<2x512xf32> to vector<2x16xf32>
    %312 = arith.maximumf %310, %311 : vector<2x16xf32>
    %313 = vector.extract_strided_slice %309 {offsets = [0, 32], sizes = [2, 16], strides = [1, 1]} : vector<2x512xf32> to vector<2x16xf32>
    %314 = arith.maximumf %312, %313 : vector<2x16xf32>
    %315 = vector.extract_strided_slice %309 {offsets = [0, 48], sizes = [2, 16], strides = [1, 1]} : vector<2x512xf32> to vector<2x16xf32>
    %316 = arith.maximumf %314, %315 : vector<2x16xf32>
    %317 = vector.extract_strided_slice %309 {offsets = [0, 64], sizes = [2, 16], strides = [1, 1]} : vector<2x512xf32> to vector<2x16xf32>
    %318 = vector.extract_strided_slice %309 {offsets = [0, 80], sizes = [2, 16], strides = [1, 1]} : vector<2x512xf32> to vector<2x16xf32>
    %319 = arith.maximumf %317, %318 : vector<2x16xf32>
    %320 = vector.extract_strided_slice %309 {offsets = [0, 96], sizes = [2, 16], strides = [1, 1]} : vector<2x512xf32> to vector<2x16xf32>
    %321 = arith.maximumf %319, %320 : vector<2x16xf32>
    %322 = vector.extract_strided_slice %309 {offsets = [0, 112], sizes = [2, 16], strides = [1, 1]} : vector<2x512xf32> to vector<2x16xf32>
    %323 = arith.maximumf %321, %322 : vector<2x16xf32>
    %324 = vector.extract_strided_slice %309 {offsets = [0, 128], sizes = [2, 16], strides = [1, 1]} : vector<2x512xf32> to vector<2x16xf32>
    %325 = vector.extract_strided_slice %309 {offsets = [0, 144], sizes = [2, 16], strides = [1, 1]} : vector<2x512xf32> to vector<2x16xf32>
    %326 = arith.maximumf %324, %325 : vector<2x16xf32>
    %327 = vector.extract_strided_slice %309 {offsets = [0, 160], sizes = [2, 16], strides = [1, 1]} : vector<2x512xf32> to vector<2x16xf32>
    %328 = arith.maximumf %326, %327 : vector<2x16xf32>
    %329 = vector.extract_strided_slice %309 {offsets = [0, 176], sizes = [2, 16], strides = [1, 1]} : vector<2x512xf32> to vector<2x16xf32>
    %330 = arith.maximumf %328, %329 : vector<2x16xf32>
    %331 = vector.extract_strided_slice %309 {offsets = [0, 192], sizes = [2, 16], strides = [1, 1]} : vector<2x512xf32> to vector<2x16xf32>
    %332 = vector.extract_strided_slice %309 {offsets = [0, 208], sizes = [2, 16], strides = [1, 1]} : vector<2x512xf32> to vector<2x16xf32>
    %333 = arith.maximumf %331, %332 : vector<2x16xf32>
    %334 = vector.extract_strided_slice %309 {offsets = [0, 224], sizes = [2, 16], strides = [1, 1]} : vector<2x512xf32> to vector<2x16xf32>
    %335 = arith.maximumf %333, %334 : vector<2x16xf32>
    %336 = vector.extract_strided_slice %309 {offsets = [0, 240], sizes = [2, 16], strides = [1, 1]} : vector<2x512xf32> to vector<2x16xf32>
    %337 = arith.maximumf %335, %336 : vector<2x16xf32>
    %338 = vector.extract_strided_slice %309 {offsets = [0, 256], sizes = [2, 16], strides = [1, 1]} : vector<2x512xf32> to vector<2x16xf32>
    %339 = vector.extract_strided_slice %309 {offsets = [0, 272], sizes = [2, 16], strides = [1, 1]} : vector<2x512xf32> to vector<2x16xf32>
    %340 = arith.maximumf %338, %339 : vector<2x16xf32>
    %341 = vector.extract_strided_slice %309 {offsets = [0, 288], sizes = [2, 16], strides = [1, 1]} : vector<2x512xf32> to vector<2x16xf32>
    %342 = arith.maximumf %340, %341 : vector<2x16xf32>
    %343 = vector.extract_strided_slice %309 {offsets = [0, 304], sizes = [2, 16], strides = [1, 1]} : vector<2x512xf32> to vector<2x16xf32>
    %344 = arith.maximumf %342, %343 : vector<2x16xf32>
    %345 = vector.extract_strided_slice %309 {offsets = [0, 320], sizes = [2, 16], strides = [1, 1]} : vector<2x512xf32> to vector<2x16xf32>
    %346 = vector.extract_strided_slice %309 {offsets = [0, 336], sizes = [2, 16], strides = [1, 1]} : vector<2x512xf32> to vector<2x16xf32>
    %347 = arith.maximumf %345, %346 : vector<2x16xf32>
    %348 = vector.extract_strided_slice %309 {offsets = [0, 352], sizes = [2, 16], strides = [1, 1]} : vector<2x512xf32> to vector<2x16xf32>
    %349 = arith.maximumf %347, %348 : vector<2x16xf32>
    %350 = vector.extract_strided_slice %309 {offsets = [0, 368], sizes = [2, 16], strides = [1, 1]} : vector<2x512xf32> to vector<2x16xf32>
    %351 = arith.maximumf %349, %350 : vector<2x16xf32>
    %352 = vector.extract_strided_slice %309 {offsets = [0, 384], sizes = [2, 16], strides = [1, 1]} : vector<2x512xf32> to vector<2x16xf32>
    %353 = vector.extract_strided_slice %309 {offsets = [0, 400], sizes = [2, 16], strides = [1, 1]} : vector<2x512xf32> to vector<2x16xf32>
    %354 = arith.maximumf %352, %353 : vector<2x16xf32>
    %355 = vector.extract_strided_slice %309 {offsets = [0, 416], sizes = [2, 16], strides = [1, 1]} : vector<2x512xf32> to vector<2x16xf32>
    %356 = arith.maximumf %354, %355 : vector<2x16xf32>
    %357 = vector.extract_strided_slice %309 {offsets = [0, 432], sizes = [2, 16], strides = [1, 1]} : vector<2x512xf32> to vector<2x16xf32>
    %358 = arith.maximumf %356, %357 : vector<2x16xf32>
    %359 = vector.extract_strided_slice %309 {offsets = [0, 448], sizes = [2, 16], strides = [1, 1]} : vector<2x512xf32> to vector<2x16xf32>
    %360 = vector.extract_strided_slice %309 {offsets = [0, 464], sizes = [2, 16], strides = [1, 1]} : vector<2x512xf32> to vector<2x16xf32>
    %361 = arith.maximumf %359, %360 : vector<2x16xf32>
    %362 = vector.extract_strided_slice %309 {offsets = [0, 480], sizes = [2, 16], strides = [1, 1]} : vector<2x512xf32> to vector<2x16xf32>
    %363 = arith.maximumf %361, %362 : vector<2x16xf32>
    %364 = vector.extract_strided_slice %309 {offsets = [0, 496], sizes = [2, 16], strides = [1, 1]} : vector<2x512xf32> to vector<2x16xf32>
    %365 = arith.maximumf %363, %364 : vector<2x16xf32>
    %366 = tpu.concatenate %316, %323, %330, %337, %344, %351, %358, %365 in 1 : vector<2x16xf32>, vector<2x16xf32>, vector<2x16xf32>, vector<2x16xf32>, vector<2x16xf32>, vector<2x16xf32>, vector<2x16xf32>, vector<2x16xf32> -> vector<2x128xf32>
    %367 = vector.broadcast %30 : vector<1x128xf32> to vector<2x128xf32>
    %368 = arith.addf %366, %367 : vector<2x128xf32>
    %cst_22 = arith.constant 0.000000e+00 : f32
    %369 = vector.broadcast %cst_22 : f32 to vector<2x128xf32>
    %370 = arith.maximumf %368, %369 : vector<2x128xf32>
    %371 = vector.extract_strided_slice %29 {offsets = [40, 0], sizes = [2, 512], strides = [1, 1]} : vector<64x512xf32> to vector<2x512xf32>
    %372 = vector.extract_strided_slice %29 {offsets = [42, 0], sizes = [2, 512], strides = [1, 1]} : vector<64x512xf32> to vector<2x512xf32>
    %373 = arith.maximumf %371, %372 : vector<2x512xf32>
    %374 = vector.extract_strided_slice %29 {offsets = [44, 0], sizes = [2, 512], strides = [1, 1]} : vector<64x512xf32> to vector<2x512xf32>
    %375 = arith.maximumf %373, %374 : vector<2x512xf32>
    %376 = vector.extract_strided_slice %29 {offsets = [46, 0], sizes = [2, 512], strides = [1, 1]} : vector<64x512xf32> to vector<2x512xf32>
    %377 = arith.maximumf %375, %376 : vector<2x512xf32>
    %378 = vector.extract_strided_slice %377 {offsets = [0, 0], sizes = [2, 16], strides = [1, 1]} : vector<2x512xf32> to vector<2x16xf32>
    %379 = vector.extract_strided_slice %377 {offsets = [0, 16], sizes = [2, 16], strides = [1, 1]} : vector<2x512xf32> to vector<2x16xf32>
    %380 = arith.maximumf %378, %379 : vector<2x16xf32>
    %381 = vector.extract_strided_slice %377 {offsets = [0, 32], sizes = [2, 16], strides = [1, 1]} : vector<2x512xf32> to vector<2x16xf32>
    %382 = arith.maximumf %380, %381 : vector<2x16xf32>
    %383 = vector.extract_strided_slice %377 {offsets = [0, 48], sizes = [2, 16], strides = [1, 1]} : vector<2x512xf32> to vector<2x16xf32>
    %384 = arith.maximumf %382, %383 : vector<2x16xf32>
    %385 = vector.extract_strided_slice %377 {offsets = [0, 64], sizes = [2, 16], strides = [1, 1]} : vector<2x512xf32> to vector<2x16xf32>
    %386 = vector.extract_strided_slice %377 {offsets = [0, 80], sizes = [2, 16], strides = [1, 1]} : vector<2x512xf32> to vector<2x16xf32>
    %387 = arith.maximumf %385, %386 : vector<2x16xf32>
    %388 = vector.extract_strided_slice %377 {offsets = [0, 96], sizes = [2, 16], strides = [1, 1]} : vector<2x512xf32> to vector<2x16xf32>
    %389 = arith.maximumf %387, %388 : vector<2x16xf32>
    %390 = vector.extract_strided_slice %377 {offsets = [0, 112], sizes = [2, 16], strides = [1, 1]} : vector<2x512xf32> to vector<2x16xf32>
    %391 = arith.maximumf %389, %390 : vector<2x16xf32>
    %392 = vector.extract_strided_slice %377 {offsets = [0, 128], sizes = [2, 16], strides = [1, 1]} : vector<2x512xf32> to vector<2x16xf32>
    %393 = vector.extract_strided_slice %377 {offsets = [0, 144], sizes = [2, 16], strides = [1, 1]} : vector<2x512xf32> to vector<2x16xf32>
    %394 = arith.maximumf %392, %393 : vector<2x16xf32>
    %395 = vector.extract_strided_slice %377 {offsets = [0, 160], sizes = [2, 16], strides = [1, 1]} : vector<2x512xf32> to vector<2x16xf32>
    %396 = arith.maximumf %394, %395 : vector<2x16xf32>
    %397 = vector.extract_strided_slice %377 {offsets = [0, 176], sizes = [2, 16], strides = [1, 1]} : vector<2x512xf32> to vector<2x16xf32>
    %398 = arith.maximumf %396, %397 : vector<2x16xf32>
    %399 = vector.extract_strided_slice %377 {offsets = [0, 192], sizes = [2, 16], strides = [1, 1]} : vector<2x512xf32> to vector<2x16xf32>
    %400 = vector.extract_strided_slice %377 {offsets = [0, 208], sizes = [2, 16], strides = [1, 1]} : vector<2x512xf32> to vector<2x16xf32>
    %401 = arith.maximumf %399, %400 : vector<2x16xf32>
    %402 = vector.extract_strided_slice %377 {offsets = [0, 224], sizes = [2, 16], strides = [1, 1]} : vector<2x512xf32> to vector<2x16xf32>
    %403 = arith.maximumf %401, %402 : vector<2x16xf32>
    %404 = vector.extract_strided_slice %377 {offsets = [0, 240], sizes = [2, 16], strides = [1, 1]} : vector<2x512xf32> to vector<2x16xf32>
    %405 = arith.maximumf %403, %404 : vector<2x16xf32>
    %406 = vector.extract_strided_slice %377 {offsets = [0, 256], sizes = [2, 16], strides = [1, 1]} : vector<2x512xf32> to vector<2x16xf32>
    %407 = vector.extract_strided_slice %377 {offsets = [0, 272], sizes = [2, 16], strides = [1, 1]} : vector<2x512xf32> to vector<2x16xf32>
    %408 = arith.maximumf %406, %407 : vector<2x16xf32>
    %409 = vector.extract_strided_slice %377 {offsets = [0, 288], sizes = [2, 16], strides = [1, 1]} : vector<2x512xf32> to vector<2x16xf32>
    %410 = arith.maximumf %408, %409 : vector<2x16xf32>
    %411 = vector.extract_strided_slice %377 {offsets = [0, 304], sizes = [2, 16], strides = [1, 1]} : vector<2x512xf32> to vector<2x16xf32>
    %412 = arith.maximumf %410, %411 : vector<2x16xf32>
    %413 = vector.extract_strided_slice %377 {offsets = [0, 320], sizes = [2, 16], strides = [1, 1]} : vector<2x512xf32> to vector<2x16xf32>
    %414 = vector.extract_strided_slice %377 {offsets = [0, 336], sizes = [2, 16], strides = [1, 1]} : vector<2x512xf32> to vector<2x16xf32>
    %415 = arith.maximumf %413, %414 : vector<2x16xf32>
    %416 = vector.extract_strided_slice %377 {offsets = [0, 352], sizes = [2, 16], strides = [1, 1]} : vector<2x512xf32> to vector<2x16xf32>
    %417 = arith.maximumf %415, %416 : vector<2x16xf32>
    %418 = vector.extract_strided_slice %377 {offsets = [0, 368], sizes = [2, 16], strides = [1, 1]} : vector<2x512xf32> to vector<2x16xf32>
    %419 = arith.maximumf %417, %418 : vector<2x16xf32>
    %420 = vector.extract_strided_slice %377 {offsets = [0, 384], sizes = [2, 16], strides = [1, 1]} : vector<2x512xf32> to vector<2x16xf32>
    %421 = vector.extract_strided_slice %377 {offsets = [0, 400], sizes = [2, 16], strides = [1, 1]} : vector<2x512xf32> to vector<2x16xf32>
    %422 = arith.maximumf %420, %421 : vector<2x16xf32>
    %423 = vector.extract_strided_slice %377 {offsets = [0, 416], sizes = [2, 16], strides = [1, 1]} : vector<2x512xf32> to vector<2x16xf32>
    %424 = arith.maximumf %422, %423 : vector<2x16xf32>
    %425 = vector.extract_strided_slice %377 {offsets = [0, 432], sizes = [2, 16], strides = [1, 1]} : vector<2x512xf32> to vector<2x16xf32>
    %426 = arith.maximumf %424, %425 : vector<2x16xf32>
    %427 = vector.extract_strided_slice %377 {offsets = [0, 448], sizes = [2, 16], strides = [1, 1]} : vector<2x512xf32> to vector<2x16xf32>
    %428 = vector.extract_strided_slice %377 {offsets = [0, 464], sizes = [2, 16], strides = [1, 1]} : vector<2x512xf32> to vector<2x16xf32>
    %429 = arith.maximumf %427, %428 : vector<2x16xf32>
    %430 = vector.extract_strided_slice %377 {offsets = [0, 480], sizes = [2, 16], strides = [1, 1]} : vector<2x512xf32> to vector<2x16xf32>
    %431 = arith.maximumf %429, %430 : vector<2x16xf32>
    %432 = vector.extract_strided_slice %377 {offsets = [0, 496], sizes = [2, 16], strides = [1, 1]} : vector<2x512xf32> to vector<2x16xf32>
    %433 = arith.maximumf %431, %432 : vector<2x16xf32>
    %434 = tpu.concatenate %384, %391, %398, %405, %412, %419, %426, %433 in 1 : vector<2x16xf32>, vector<2x16xf32>, vector<2x16xf32>, vector<2x16xf32>, vector<2x16xf32>, vector<2x16xf32>, vector<2x16xf32>, vector<2x16xf32> -> vector<2x128xf32>
    %435 = vector.broadcast %30 : vector<1x128xf32> to vector<2x128xf32>
    %436 = arith.addf %434, %435 : vector<2x128xf32>
    %cst_23 = arith.constant 0.000000e+00 : f32
    %437 = vector.broadcast %cst_23 : f32 to vector<2x128xf32>
    %438 = arith.maximumf %436, %437 : vector<2x128xf32>
    %439 = vector.extract_strided_slice %29 {offsets = [48, 0], sizes = [2, 512], strides = [1, 1]} : vector<64x512xf32> to vector<2x512xf32>
    %440 = vector.extract_strided_slice %29 {offsets = [50, 0], sizes = [2, 512], strides = [1, 1]} : vector<64x512xf32> to vector<2x512xf32>
    %441 = arith.maximumf %439, %440 : vector<2x512xf32>
    %442 = vector.extract_strided_slice %29 {offsets = [52, 0], sizes = [2, 512], strides = [1, 1]} : vector<64x512xf32> to vector<2x512xf32>
    %443 = arith.maximumf %441, %442 : vector<2x512xf32>
    %444 = vector.extract_strided_slice %29 {offsets = [54, 0], sizes = [2, 512], strides = [1, 1]} : vector<64x512xf32> to vector<2x512xf32>
    %445 = arith.maximumf %443, %444 : vector<2x512xf32>
    %446 = vector.extract_strided_slice %445 {offsets = [0, 0], sizes = [2, 16], strides = [1, 1]} : vector<2x512xf32> to vector<2x16xf32>
    %447 = vector.extract_strided_slice %445 {offsets = [0, 16], sizes = [2, 16], strides = [1, 1]} : vector<2x512xf32> to vector<2x16xf32>
    %448 = arith.maximumf %446, %447 : vector<2x16xf32>
    %449 = vector.extract_strided_slice %445 {offsets = [0, 32], sizes = [2, 16], strides = [1, 1]} : vector<2x512xf32> to vector<2x16xf32>
    %450 = arith.maximumf %448, %449 : vector<2x16xf32>
    %451 = vector.extract_strided_slice %445 {offsets = [0, 48], sizes = [2, 16], strides = [1, 1]} : vector<2x512xf32> to vector<2x16xf32>
    %452 = arith.maximumf %450, %451 : vector<2x16xf32>
    %453 = vector.extract_strided_slice %445 {offsets = [0, 64], sizes = [2, 16], strides = [1, 1]} : vector<2x512xf32> to vector<2x16xf32>
    %454 = vector.extract_strided_slice %445 {offsets = [0, 80], sizes = [2, 16], strides = [1, 1]} : vector<2x512xf32> to vector<2x16xf32>
    %455 = arith.maximumf %453, %454 : vector<2x16xf32>
    %456 = vector.extract_strided_slice %445 {offsets = [0, 96], sizes = [2, 16], strides = [1, 1]} : vector<2x512xf32> to vector<2x16xf32>
    %457 = arith.maximumf %455, %456 : vector<2x16xf32>
    %458 = vector.extract_strided_slice %445 {offsets = [0, 112], sizes = [2, 16], strides = [1, 1]} : vector<2x512xf32> to vector<2x16xf32>
    %459 = arith.maximumf %457, %458 : vector<2x16xf32>
    %460 = vector.extract_strided_slice %445 {offsets = [0, 128], sizes = [2, 16], strides = [1, 1]} : vector<2x512xf32> to vector<2x16xf32>
    %461 = vector.extract_strided_slice %445 {offsets = [0, 144], sizes = [2, 16], strides = [1, 1]} : vector<2x512xf32> to vector<2x16xf32>
    %462 = arith.maximumf %460, %461 : vector<2x16xf32>
    %463 = vector.extract_strided_slice %445 {offsets = [0, 160], sizes = [2, 16], strides = [1, 1]} : vector<2x512xf32> to vector<2x16xf32>
    %464 = arith.maximumf %462, %463 : vector<2x16xf32>
    %465 = vector.extract_strided_slice %445 {offsets = [0, 176], sizes = [2, 16], strides = [1, 1]} : vector<2x512xf32> to vector<2x16xf32>
    %466 = arith.maximumf %464, %465 : vector<2x16xf32>
    %467 = vector.extract_strided_slice %445 {offsets = [0, 192], sizes = [2, 16], strides = [1, 1]} : vector<2x512xf32> to vector<2x16xf32>
    %468 = vector.extract_strided_slice %445 {offsets = [0, 208], sizes = [2, 16], strides = [1, 1]} : vector<2x512xf32> to vector<2x16xf32>
    %469 = arith.maximumf %467, %468 : vector<2x16xf32>
    %470 = vector.extract_strided_slice %445 {offsets = [0, 224], sizes = [2, 16], strides = [1, 1]} : vector<2x512xf32> to vector<2x16xf32>
    %471 = arith.maximumf %469, %470 : vector<2x16xf32>
    %472 = vector.extract_strided_slice %445 {offsets = [0, 240], sizes = [2, 16], strides = [1, 1]} : vector<2x512xf32> to vector<2x16xf32>
    %473 = arith.maximumf %471, %472 : vector<2x16xf32>
    %474 = vector.extract_strided_slice %445 {offsets = [0, 256], sizes = [2, 16], strides = [1, 1]} : vector<2x512xf32> to vector<2x16xf32>
    %475 = vector.extract_strided_slice %445 {offsets = [0, 272], sizes = [2, 16], strides = [1, 1]} : vector<2x512xf32> to vector<2x16xf32>
    %476 = arith.maximumf %474, %475 : vector<2x16xf32>
    %477 = vector.extract_strided_slice %445 {offsets = [0, 288], sizes = [2, 16], strides = [1, 1]} : vector<2x512xf32> to vector<2x16xf32>
    %478 = arith.maximumf %476, %477 : vector<2x16xf32>
    %479 = vector.extract_strided_slice %445 {offsets = [0, 304], sizes = [2, 16], strides = [1, 1]} : vector<2x512xf32> to vector<2x16xf32>
    %480 = arith.maximumf %478, %479 : vector<2x16xf32>
    %481 = vector.extract_strided_slice %445 {offsets = [0, 320], sizes = [2, 16], strides = [1, 1]} : vector<2x512xf32> to vector<2x16xf32>
    %482 = vector.extract_strided_slice %445 {offsets = [0, 336], sizes = [2, 16], strides = [1, 1]} : vector<2x512xf32> to vector<2x16xf32>
    %483 = arith.maximumf %481, %482 : vector<2x16xf32>
    %484 = vector.extract_strided_slice %445 {offsets = [0, 352], sizes = [2, 16], strides = [1, 1]} : vector<2x512xf32> to vector<2x16xf32>
    %485 = arith.maximumf %483, %484 : vector<2x16xf32>
    %486 = vector.extract_strided_slice %445 {offsets = [0, 368], sizes = [2, 16], strides = [1, 1]} : vector<2x512xf32> to vector<2x16xf32>
    %487 = arith.maximumf %485, %486 : vector<2x16xf32>
    %488 = vector.extract_strided_slice %445 {offsets = [0, 384], sizes = [2, 16], strides = [1, 1]} : vector<2x512xf32> to vector<2x16xf32>
    %489 = vector.extract_strided_slice %445 {offsets = [0, 400], sizes = [2, 16], strides = [1, 1]} : vector<2x512xf32> to vector<2x16xf32>
    %490 = arith.maximumf %488, %489 : vector<2x16xf32>
    %491 = vector.extract_strided_slice %445 {offsets = [0, 416], sizes = [2, 16], strides = [1, 1]} : vector<2x512xf32> to vector<2x16xf32>
    %492 = arith.maximumf %490, %491 : vector<2x16xf32>
    %493 = vector.extract_strided_slice %445 {offsets = [0, 432], sizes = [2, 16], strides = [1, 1]} : vector<2x512xf32> to vector<2x16xf32>
    %494 = arith.maximumf %492, %493 : vector<2x16xf32>
    %495 = vector.extract_strided_slice %445 {offsets = [0, 448], sizes = [2, 16], strides = [1, 1]} : vector<2x512xf32> to vector<2x16xf32>
    %496 = vector.extract_strided_slice %445 {offsets = [0, 464], sizes = [2, 16], strides = [1, 1]} : vector<2x512xf32> to vector<2x16xf32>
    %497 = arith.maximumf %495, %496 : vector<2x16xf32>
    %498 = vector.extract_strided_slice %445 {offsets = [0, 480], sizes = [2, 16], strides = [1, 1]} : vector<2x512xf32> to vector<2x16xf32>
    %499 = arith.maximumf %497, %498 : vector<2x16xf32>
    %500 = vector.extract_strided_slice %445 {offsets = [0, 496], sizes = [2, 16], strides = [1, 1]} : vector<2x512xf32> to vector<2x16xf32>
    %501 = arith.maximumf %499, %500 : vector<2x16xf32>
    %502 = tpu.concatenate %452, %459, %466, %473, %480, %487, %494, %501 in 1 : vector<2x16xf32>, vector<2x16xf32>, vector<2x16xf32>, vector<2x16xf32>, vector<2x16xf32>, vector<2x16xf32>, vector<2x16xf32>, vector<2x16xf32> -> vector<2x128xf32>
    %503 = vector.broadcast %30 : vector<1x128xf32> to vector<2x128xf32>
    %504 = arith.addf %502, %503 : vector<2x128xf32>
    %cst_24 = arith.constant 0.000000e+00 : f32
    %505 = vector.broadcast %cst_24 : f32 to vector<2x128xf32>
    %506 = arith.maximumf %504, %505 : vector<2x128xf32>
    %507 = vector.extract_strided_slice %29 {offsets = [56, 0], sizes = [2, 512], strides = [1, 1]} : vector<64x512xf32> to vector<2x512xf32>
    %508 = vector.extract_strided_slice %29 {offsets = [58, 0], sizes = [2, 512], strides = [1, 1]} : vector<64x512xf32> to vector<2x512xf32>
    %509 = arith.maximumf %507, %508 : vector<2x512xf32>
    %510 = vector.extract_strided_slice %29 {offsets = [60, 0], sizes = [2, 512], strides = [1, 1]} : vector<64x512xf32> to vector<2x512xf32>
    %511 = arith.maximumf %509, %510 : vector<2x512xf32>
    %512 = vector.extract_strided_slice %29 {offsets = [62, 0], sizes = [2, 512], strides = [1, 1]} : vector<64x512xf32> to vector<2x512xf32>
    %513 = arith.maximumf %511, %512 : vector<2x512xf32>
    %514 = vector.extract_strided_slice %513 {offsets = [0, 0], sizes = [2, 16], strides = [1, 1]} : vector<2x512xf32> to vector<2x16xf32>
    %515 = vector.extract_strided_slice %513 {offsets = [0, 16], sizes = [2, 16], strides = [1, 1]} : vector<2x512xf32> to vector<2x16xf32>
    %516 = arith.maximumf %514, %515 : vector<2x16xf32>
    %517 = vector.extract_strided_slice %513 {offsets = [0, 32], sizes = [2, 16], strides = [1, 1]} : vector<2x512xf32> to vector<2x16xf32>
    %518 = arith.maximumf %516, %517 : vector<2x16xf32>
    %519 = vector.extract_strided_slice %513 {offsets = [0, 48], sizes = [2, 16], strides = [1, 1]} : vector<2x512xf32> to vector<2x16xf32>
    %520 = arith.maximumf %518, %519 : vector<2x16xf32>
    %521 = vector.extract_strided_slice %513 {offsets = [0, 64], sizes = [2, 16], strides = [1, 1]} : vector<2x512xf32> to vector<2x16xf32>
    %522 = vector.extract_strided_slice %513 {offsets = [0, 80], sizes = [2, 16], strides = [1, 1]} : vector<2x512xf32> to vector<2x16xf32>
    %523 = arith.maximumf %521, %522 : vector<2x16xf32>
    %524 = vector.extract_strided_slice %513 {offsets = [0, 96], sizes = [2, 16], strides = [1, 1]} : vector<2x512xf32> to vector<2x16xf32>
    %525 = arith.maximumf %523, %524 : vector<2x16xf32>
    %526 = vector.extract_strided_slice %513 {offsets = [0, 112], sizes = [2, 16], strides = [1, 1]} : vector<2x512xf32> to vector<2x16xf32>
    %527 = arith.maximumf %525, %526 : vector<2x16xf32>
    %528 = vector.extract_strided_slice %513 {offsets = [0, 128], sizes = [2, 16], strides = [1, 1]} : vector<2x512xf32> to vector<2x16xf32>
    %529 = vector.extract_strided_slice %513 {offsets = [0, 144], sizes = [2, 16], strides = [1, 1]} : vector<2x512xf32> to vector<2x16xf32>
    %530 = arith.maximumf %528, %529 : vector<2x16xf32>
    %531 = vector.extract_strided_slice %513 {offsets = [0, 160], sizes = [2, 16], strides = [1, 1]} : vector<2x512xf32> to vector<2x16xf32>
    %532 = arith.maximumf %530, %531 : vector<2x16xf32>
    %533 = vector.extract_strided_slice %513 {offsets = [0, 176], sizes = [2, 16], strides = [1, 1]} : vector<2x512xf32> to vector<2x16xf32>
    %534 = arith.maximumf %532, %533 : vector<2x16xf32>
    %535 = vector.extract_strided_slice %513 {offsets = [0, 192], sizes = [2, 16], strides = [1, 1]} : vector<2x512xf32> to vector<2x16xf32>
    %536 = vector.extract_strided_slice %513 {offsets = [0, 208], sizes = [2, 16], strides = [1, 1]} : vector<2x512xf32> to vector<2x16xf32>
    %537 = arith.maximumf %535, %536 : vector<2x16xf32>
    %538 = vector.extract_strided_slice %513 {offsets = [0, 224], sizes = [2, 16], strides = [1, 1]} : vector<2x512xf32> to vector<2x16xf32>
    %539 = arith.maximumf %537, %538 : vector<2x16xf32>
    %540 = vector.extract_strided_slice %513 {offsets = [0, 240], sizes = [2, 16], strides = [1, 1]} : vector<2x512xf32> to vector<2x16xf32>
    %541 = arith.maximumf %539, %540 : vector<2x16xf32>
    %542 = vector.extract_strided_slice %513 {offsets = [0, 256], sizes = [2, 16], strides = [1, 1]} : vector<2x512xf32> to vector<2x16xf32>
    %543 = vector.extract_strided_slice %513 {offsets = [0, 272], sizes = [2, 16], strides = [1, 1]} : vector<2x512xf32> to vector<2x16xf32>
    %544 = arith.maximumf %542, %543 : vector<2x16xf32>
    %545 = vector.extract_strided_slice %513 {offsets = [0, 288], sizes = [2, 16], strides = [1, 1]} : vector<2x512xf32> to vector<2x16xf32>
    %546 = arith.maximumf %544, %545 : vector<2x16xf32>
    %547 = vector.extract_strided_slice %513 {offsets = [0, 304], sizes = [2, 16], strides = [1, 1]} : vector<2x512xf32> to vector<2x16xf32>
    %548 = arith.maximumf %546, %547 : vector<2x16xf32>
    %549 = vector.extract_strided_slice %513 {offsets = [0, 320], sizes = [2, 16], strides = [1, 1]} : vector<2x512xf32> to vector<2x16xf32>
    %550 = vector.extract_strided_slice %513 {offsets = [0, 336], sizes = [2, 16], strides = [1, 1]} : vector<2x512xf32> to vector<2x16xf32>
    %551 = arith.maximumf %549, %550 : vector<2x16xf32>
    %552 = vector.extract_strided_slice %513 {offsets = [0, 352], sizes = [2, 16], strides = [1, 1]} : vector<2x512xf32> to vector<2x16xf32>
    %553 = arith.maximumf %551, %552 : vector<2x16xf32>
    %554 = vector.extract_strided_slice %513 {offsets = [0, 368], sizes = [2, 16], strides = [1, 1]} : vector<2x512xf32> to vector<2x16xf32>
    %555 = arith.maximumf %553, %554 : vector<2x16xf32>
    %556 = vector.extract_strided_slice %513 {offsets = [0, 384], sizes = [2, 16], strides = [1, 1]} : vector<2x512xf32> to vector<2x16xf32>
    %557 = vector.extract_strided_slice %513 {offsets = [0, 400], sizes = [2, 16], strides = [1, 1]} : vector<2x512xf32> to vector<2x16xf32>
    %558 = arith.maximumf %556, %557 : vector<2x16xf32>
    %559 = vector.extract_strided_slice %513 {offsets = [0, 416], sizes = [2, 16], strides = [1, 1]} : vector<2x512xf32> to vector<2x16xf32>
    %560 = arith.maximumf %558, %559 : vector<2x16xf32>
    %561 = vector.extract_strided_slice %513 {offsets = [0, 432], sizes = [2, 16], strides = [1, 1]} : vector<2x512xf32> to vector<2x16xf32>
    %562 = arith.maximumf %560, %561 : vector<2x16xf32>
    %563 = vector.extract_strided_slice %513 {offsets = [0, 448], sizes = [2, 16], strides = [1, 1]} : vector<2x512xf32> to vector<2x16xf32>
    %564 = vector.extract_strided_slice %513 {offsets = [0, 464], sizes = [2, 16], strides = [1, 1]} : vector<2x512xf32> to vector<2x16xf32>
    %565 = arith.maximumf %563, %564 : vector<2x16xf32>
    %566 = vector.extract_strided_slice %513 {offsets = [0, 480], sizes = [2, 16], strides = [1, 1]} : vector<2x512xf32> to vector<2x16xf32>
    %567 = arith.maximumf %565, %566 : vector<2x16xf32>
    %568 = vector.extract_strided_slice %513 {offsets = [0, 496], sizes = [2, 16], strides = [1, 1]} : vector<2x512xf32> to vector<2x16xf32>
    %569 = arith.maximumf %567, %568 : vector<2x16xf32>
    %570 = tpu.concatenate %520, %527, %534, %541, %548, %555, %562, %569 in 1 : vector<2x16xf32>, vector<2x16xf32>, vector<2x16xf32>, vector<2x16xf32>, vector<2x16xf32>, vector<2x16xf32>, vector<2x16xf32>, vector<2x16xf32> -> vector<2x128xf32>
    %571 = vector.broadcast %30 : vector<1x128xf32> to vector<2x128xf32>
    %572 = arith.addf %570, %571 : vector<2x128xf32>
    %cst_25 = arith.constant 0.000000e+00 : f32
    %573 = vector.broadcast %cst_25 : f32 to vector<2x128xf32>
    %574 = arith.maximumf %572, %573 : vector<2x128xf32>
    %cst_26 = arith.constant 0.000000e+00 : f32
    %575 = vector.broadcast %cst_26 : f32 to vector<2x16xf32>
    %cst_27 = arith.constant 0.000000e+00 : f32
    %576 = vector.broadcast %cst_27 : f32 to vector<2x160xf32>
    %c0_28 = arith.constant 0 : index
    %c0_29 = arith.constant 0 : index
    %577 = vector.load %arg11[%c0_28, %c0_29] : memref<20x160xf32, #tpu.memory_space<vmem>>, vector<2x160xf32>
    tpu.vector_store %arg11[%c0_28, %c0_29], %576 {strides = array<i32>} : memref<20x160xf32, #tpu.memory_space<vmem>>, vector<2x160xf32>,
    %c18 = arith.constant 18 : index
    %c0_30 = arith.constant 0 : index
    %578 = vector.load %arg11[%c18, %c0_30] : memref<20x160xf32, #tpu.memory_space<vmem>>, vector<2x160xf32>
    tpu.vector_store %arg11[%c18, %c0_30], %576 {strides = array<i32>} : memref<20x160xf32, #tpu.memory_space<vmem>>, vector<2x160xf32>,
    %579 = tpu.concatenate %575, %98, %575 in 1 : vector<2x16xf32>, vector<2x128xf32>, vector<2x16xf32> -> vector<2x160xf32>
    %c2_31 = arith.constant 2 : index
    %c0_32 = arith.constant 0 : index
    %580 = vector.load %arg11[%c2_31, %c0_32] : memref<20x160xf32, #tpu.memory_space<vmem>>, vector<2x160xf32>
    tpu.vector_store %arg11[%c2_31, %c0_32], %579 {strides = array<i32>} : memref<20x160xf32, #tpu.memory_space<vmem>>, vector<2x160xf32>,
    %581 = tpu.concatenate %575, %166, %575 in 1 : vector<2x16xf32>, vector<2x128xf32>, vector<2x16xf32> -> vector<2x160xf32>
    %c4_33 = arith.constant 4 : index
    %c0_34 = arith.constant 0 : index
    %582 = vector.load %arg11[%c4_33, %c0_34] : memref<20x160xf32, #tpu.memory_space<vmem>>, vector<2x160xf32>
    tpu.vector_store %arg11[%c4_33, %c0_34], %581 {strides = array<i32>} : memref<20x160xf32, #tpu.memory_space<vmem>>, vector<2x160xf32>,
    %583 = tpu.concatenate %575, %234, %575 in 1 : vector<2x16xf32>, vector<2x128xf32>, vector<2x16xf32> -> vector<2x160xf32>
    %c6 = arith.constant 6 : index
    %c0_35 = arith.constant 0 : index
    %584 = vector.load %arg11[%c6, %c0_35] : memref<20x160xf32, #tpu.memory_space<vmem>>, vector<2x160xf32>
    tpu.vector_store %arg11[%c6, %c0_35], %583 {strides = array<i32>} : memref<20x160xf32, #tpu.memory_space<vmem>>, vector<2x160xf32>,
    %585 = tpu.concatenate %575, %302, %575 in 1 : vector<2x16xf32>, vector<2x128xf32>, vector<2x16xf32> -> vector<2x160xf32>
    %c8 = arith.constant 8 : index
    %c0_36 = arith.constant 0 : index
    %586 = vector.load %arg11[%c8, %c0_36] : memref<20x160xf32, #tpu.memory_space<vmem>>, vector<2x160xf32>
    tpu.vector_store %arg11[%c8, %c0_36], %585 {strides = array<i32>} : memref<20x160xf32, #tpu.memory_space<vmem>>, vector<2x160xf32>,
    %587 = tpu.concatenate %575, %370, %575 in 1 : vector<2x16xf32>, vector<2x128xf32>, vector<2x16xf32> -> vector<2x160xf32>
    %c10 = arith.constant 10 : index
    %c0_37 = arith.constant 0 : index
    %588 = vector.load %arg11[%c10, %c0_37] : memref<20x160xf32, #tpu.memory_space<vmem>>, vector<2x160xf32>
    tpu.vector_store %arg11[%c10, %c0_37], %587 {strides = array<i32>} : memref<20x160xf32, #tpu.memory_space<vmem>>, vector<2x160xf32>,
    %589 = tpu.concatenate %575, %438, %575 in 1 : vector<2x16xf32>, vector<2x128xf32>, vector<2x16xf32> -> vector<2x160xf32>
    %c12 = arith.constant 12 : index
    %c0_38 = arith.constant 0 : index
    %590 = vector.load %arg11[%c12, %c0_38] : memref<20x160xf32, #tpu.memory_space<vmem>>, vector<2x160xf32>
    tpu.vector_store %arg11[%c12, %c0_38], %589 {strides = array<i32>} : memref<20x160xf32, #tpu.memory_space<vmem>>, vector<2x160xf32>,
    %591 = tpu.concatenate %575, %506, %575 in 1 : vector<2x16xf32>, vector<2x128xf32>, vector<2x16xf32> -> vector<2x160xf32>
    %c14 = arith.constant 14 : index
    %c0_39 = arith.constant 0 : index
    %592 = vector.load %arg11[%c14, %c0_39] : memref<20x160xf32, #tpu.memory_space<vmem>>, vector<2x160xf32>
    tpu.vector_store %arg11[%c14, %c0_39], %591 {strides = array<i32>} : memref<20x160xf32, #tpu.memory_space<vmem>>, vector<2x160xf32>,
    %593 = tpu.concatenate %575, %574, %575 in 1 : vector<2x16xf32>, vector<2x128xf32>, vector<2x16xf32> -> vector<2x160xf32>
    %c16 = arith.constant 16 : index
    %c0_40 = arith.constant 0 : index
    %594 = vector.load %arg11[%c16, %c0_40] : memref<20x160xf32, #tpu.memory_space<vmem>>, vector<2x160xf32>
    tpu.vector_store %arg11[%c16, %c0_40], %593 {strides = array<i32>} : memref<20x160xf32, #tpu.memory_space<vmem>>, vector<2x160xf32>,
    %c0_41 = arith.constant 0 : index
    %c0_42 = arith.constant 0 : index
    %595 = vector.load %arg11[%c0_41, %c0_42] : memref<20x160xf32, #tpu.memory_space<vmem>>, vector<16x160xf32>
    %596 = arith.truncf %595 : vector<16x160xf32> to vector<16x160xbf16>
    %c0_43 = arith.constant 0 : index
    %c0_44 = arith.constant 0 : index
    %c0_45 = arith.constant 0 : index
    %597 = vector.load %arg4[%c0_43, %c0_44, %c0_45] : memref<3x160x128xbf16, #tpu.memory_space<vmem>>, vector<1x160x128xbf16>
    %598 = vector.shape_cast %597 : vector<1x160x128xbf16> to vector<160x128xbf16>
    %cst_46 = arith.constant dense<0.000000e+00> : vector<16x128xf32>
    %599 = tpu.matmul %596, %598, %cst_46 {dimension_numbers = #tpu.dot_dimension_numbers<[1], [0], [0], [1], [0, 0, 1, 1], [], []>} : vector<16x160xbf16>, vector<160x128xbf16>, vector<16x128xf32> -> vector<16x128xf32>
    %c2_47 = arith.constant 2 : index
    %c0_48 = arith.constant 0 : index
    %600 = vector.load %arg11[%c2_47, %c0_48] : memref<20x160xf32, #tpu.memory_space<vmem>>, vector<16x160xf32>
    %601 = arith.truncf %600 : vector<16x160xf32> to vector<16x160xbf16>
    %c1_49 = arith.constant 1 : index
    %c0_50 = arith.constant 0 : index
    %c0_51 = arith.constant 0 : index
    %602 = vector.load %arg4[%c1_49, %c0_50, %c0_51] : memref<3x160x128xbf16, #tpu.memory_space<vmem>>, vector<1x160x128xbf16>
    %603 = vector.shape_cast %602 : vector<1x160x128xbf16> to vector<160x128xbf16>
    %cst_52 = arith.constant dense<0.000000e+00> : vector<16x128xf32>
    %604 = tpu.matmul %601, %603, %cst_52 {dimension_numbers = #tpu.dot_dimension_numbers<[1], [0], [0], [1], [0, 0, 1, 1], [], []>} : vector<16x160xbf16>, vector<160x128xbf16>, vector<16x128xf32> -> vector<16x128xf32>
    %605 = arith.addf %599, %604 : vector<16x128xf32>
    %c4_53 = arith.constant 4 : index
    %c0_54 = arith.constant 0 : index
    %606 = vector.load %arg11[%c4_53, %c0_54] : memref<20x160xf32, #tpu.memory_space<vmem>>, vector<16x160xf32>
    %607 = arith.truncf %606 : vector<16x160xf32> to vector<16x160xbf16>
    %c2_55 = arith.constant 2 : index
    %c0_56 = arith.constant 0 : index
    %c0_57 = arith.constant 0 : index
    %608 = vector.load %arg4[%c2_55, %c0_56, %c0_57] : memref<3x160x128xbf16, #tpu.memory_space<vmem>>, vector<1x160x128xbf16>
    %609 = vector.shape_cast %608 : vector<1x160x128xbf16> to vector<160x128xbf16>
    %cst_58 = arith.constant dense<0.000000e+00> : vector<16x128xf32>
    %610 = tpu.matmul %607, %609, %cst_58 {dimension_numbers = #tpu.dot_dimension_numbers<[1], [0], [0], [1], [0, 0, 1, 1], [], []>} : vector<16x160xbf16>, vector<160x128xbf16>, vector<16x128xf32> -> vector<16x128xf32>
    %611 = arith.addf %605, %610 : vector<16x128xf32>
    %c0_59 = arith.constant 0 : index
    %c0_60 = arith.constant 0 : index
    %612 = vector.load %arg5[%c0_59, %c0_60] : memref<1x64xf32, #tpu.memory_space<vmem>>, vector<1x64xf32>
    %613 = vector.extract_strided_slice %611 {offsets = [0, 0], sizes = [2, 128], strides = [1, 1]} : vector<16x128xf32> to vector<2x128xf32>
    %614 = vector.extract_strided_slice %611 {offsets = [2, 0], sizes = [2, 128], strides = [1, 1]} : vector<16x128xf32> to vector<2x128xf32>
    %615 = arith.maximumf %613, %614 : vector<2x128xf32>
    %616 = vector.extract_strided_slice %615 {offsets = [0, 0], sizes = [2, 16], strides = [1, 1]} : vector<2x128xf32> to vector<2x16xf32>
    %617 = vector.extract_strided_slice %615 {offsets = [0, 16], sizes = [2, 16], strides = [1, 1]} : vector<2x128xf32> to vector<2x16xf32>
    %618 = arith.maximumf %616, %617 : vector<2x16xf32>
    %619 = vector.extract_strided_slice %615 {offsets = [0, 32], sizes = [2, 16], strides = [1, 1]} : vector<2x128xf32> to vector<2x16xf32>
    %620 = vector.extract_strided_slice %615 {offsets = [0, 48], sizes = [2, 16], strides = [1, 1]} : vector<2x128xf32> to vector<2x16xf32>
    %621 = arith.maximumf %619, %620 : vector<2x16xf32>
    %622 = vector.extract_strided_slice %615 {offsets = [0, 64], sizes = [2, 16], strides = [1, 1]} : vector<2x128xf32> to vector<2x16xf32>
    %623 = vector.extract_strided_slice %615 {offsets = [0, 80], sizes = [2, 16], strides = [1, 1]} : vector<2x128xf32> to vector<2x16xf32>
    %624 = arith.maximumf %622, %623 : vector<2x16xf32>
    %625 = vector.extract_strided_slice %615 {offsets = [0, 96], sizes = [2, 16], strides = [1, 1]} : vector<2x128xf32> to vector<2x16xf32>
    %626 = vector.extract_strided_slice %615 {offsets = [0, 112], sizes = [2, 16], strides = [1, 1]} : vector<2x128xf32> to vector<2x16xf32>
    %627 = arith.maximumf %625, %626 : vector<2x16xf32>
    %628 = tpu.concatenate %618, %621, %624, %627 in 1 : vector<2x16xf32>, vector<2x16xf32>, vector<2x16xf32>, vector<2x16xf32> -> vector<2x64xf32>
    %629 = vector.broadcast %612 : vector<1x64xf32> to vector<2x64xf32>
    %630 = arith.addf %628, %629 : vector<2x64xf32>
    %cst_61 = arith.constant 0.000000e+00 : f32
    %631 = vector.broadcast %cst_61 : f32 to vector<2x64xf32>
    %632 = arith.maximumf %630, %631 : vector<2x64xf32>
    %633 = vector.extract_strided_slice %611 {offsets = [4, 0], sizes = [2, 128], strides = [1, 1]} : vector<16x128xf32> to vector<2x128xf32>
    %634 = vector.extract_strided_slice %611 {offsets = [6, 0], sizes = [2, 128], strides = [1, 1]} : vector<16x128xf32> to vector<2x128xf32>
    %635 = arith.maximumf %633, %634 : vector<2x128xf32>
    %636 = vector.extract_strided_slice %635 {offsets = [0, 0], sizes = [2, 16], strides = [1, 1]} : vector<2x128xf32> to vector<2x16xf32>
    %637 = vector.extract_strided_slice %635 {offsets = [0, 16], sizes = [2, 16], strides = [1, 1]} : vector<2x128xf32> to vector<2x16xf32>
    %638 = arith.maximumf %636, %637 : vector<2x16xf32>
    %639 = vector.extract_strided_slice %635 {offsets = [0, 32], sizes = [2, 16], strides = [1, 1]} : vector<2x128xf32> to vector<2x16xf32>
    %640 = vector.extract_strided_slice %635 {offsets = [0, 48], sizes = [2, 16], strides = [1, 1]} : vector<2x128xf32> to vector<2x16xf32>
    %641 = arith.maximumf %639, %640 : vector<2x16xf32>
    %642 = vector.extract_strided_slice %635 {offsets = [0, 64], sizes = [2, 16], strides = [1, 1]} : vector<2x128xf32> to vector<2x16xf32>
    %643 = vector.extract_strided_slice %635 {offsets = [0, 80], sizes = [2, 16], strides = [1, 1]} : vector<2x128xf32> to vector<2x16xf32>
    %644 = arith.maximumf %642, %643 : vector<2x16xf32>
    %645 = vector.extract_strided_slice %635 {offsets = [0, 96], sizes = [2, 16], strides = [1, 1]} : vector<2x128xf32> to vector<2x16xf32>
    %646 = vector.extract_strided_slice %635 {offsets = [0, 112], sizes = [2, 16], strides = [1, 1]} : vector<2x128xf32> to vector<2x16xf32>
    %647 = arith.maximumf %645, %646 : vector<2x16xf32>
    %648 = tpu.concatenate %638, %641, %644, %647 in 1 : vector<2x16xf32>, vector<2x16xf32>, vector<2x16xf32>, vector<2x16xf32> -> vector<2x64xf32>
    %649 = vector.broadcast %612 : vector<1x64xf32> to vector<2x64xf32>
    %650 = arith.addf %648, %649 : vector<2x64xf32>
    %cst_62 = arith.constant 0.000000e+00 : f32
    %651 = vector.broadcast %cst_62 : f32 to vector<2x64xf32>
    %652 = arith.maximumf %650, %651 : vector<2x64xf32>
    %653 = vector.extract_strided_slice %611 {offsets = [8, 0], sizes = [2, 128], strides = [1, 1]} : vector<16x128xf32> to vector<2x128xf32>
    %654 = vector.extract_strided_slice %611 {offsets = [10, 0], sizes = [2, 128], strides = [1, 1]} : vector<16x128xf32> to vector<2x128xf32>
    %655 = arith.maximumf %653, %654 : vector<2x128xf32>
    %656 = vector.extract_strided_slice %655 {offsets = [0, 0], sizes = [2, 16], strides = [1, 1]} : vector<2x128xf32> to vector<2x16xf32>
    %657 = vector.extract_strided_slice %655 {offsets = [0, 16], sizes = [2, 16], strides = [1, 1]} : vector<2x128xf32> to vector<2x16xf32>
    %658 = arith.maximumf %656, %657 : vector<2x16xf32>
    %659 = vector.extract_strided_slice %655 {offsets = [0, 32], sizes = [2, 16], strides = [1, 1]} : vector<2x128xf32> to vector<2x16xf32>
    %660 = vector.extract_strided_slice %655 {offsets = [0, 48], sizes = [2, 16], strides = [1, 1]} : vector<2x128xf32> to vector<2x16xf32>
    %661 = arith.maximumf %659, %660 : vector<2x16xf32>
    %662 = vector.extract_strided_slice %655 {offsets = [0, 64], sizes = [2, 16], strides = [1, 1]} : vector<2x128xf32> to vector<2x16xf32>
    %663 = vector.extract_strided_slice %655 {offsets = [0, 80], sizes = [2, 16], strides = [1, 1]} : vector<2x128xf32> to vector<2x16xf32>
    %664 = arith.maximumf %662, %663 : vector<2x16xf32>
    %665 = vector.extract_strided_slice %655 {offsets = [0, 96], sizes = [2, 16], strides = [1, 1]} : vector<2x128xf32> to vector<2x16xf32>
    %666 = vector.extract_strided_slice %655 {offsets = [0, 112], sizes = [2, 16], strides = [1, 1]} : vector<2x128xf32> to vector<2x16xf32>
    %667 = arith.maximumf %665, %666 : vector<2x16xf32>
    %668 = tpu.concatenate %658, %661, %664, %667 in 1 : vector<2x16xf32>, vector<2x16xf32>, vector<2x16xf32>, vector<2x16xf32> -> vector<2x64xf32>
    %669 = vector.broadcast %612 : vector<1x64xf32> to vector<2x64xf32>
    %670 = arith.addf %668, %669 : vector<2x64xf32>
    %cst_63 = arith.constant 0.000000e+00 : f32
    %671 = vector.broadcast %cst_63 : f32 to vector<2x64xf32>
    %672 = arith.maximumf %670, %671 : vector<2x64xf32>
    %673 = vector.extract_strided_slice %611 {offsets = [12, 0], sizes = [2, 128], strides = [1, 1]} : vector<16x128xf32> to vector<2x128xf32>
    %674 = vector.extract_strided_slice %611 {offsets = [14, 0], sizes = [2, 128], strides = [1, 1]} : vector<16x128xf32> to vector<2x128xf32>
    %675 = arith.maximumf %673, %674 : vector<2x128xf32>
    %676 = vector.extract_strided_slice %675 {offsets = [0, 0], sizes = [2, 16], strides = [1, 1]} : vector<2x128xf32> to vector<2x16xf32>
    %677 = vector.extract_strided_slice %675 {offsets = [0, 16], sizes = [2, 16], strides = [1, 1]} : vector<2x128xf32> to vector<2x16xf32>
    %678 = arith.maximumf %676, %677 : vector<2x16xf32>
    %679 = vector.extract_strided_slice %675 {offsets = [0, 32], sizes = [2, 16], strides = [1, 1]} : vector<2x128xf32> to vector<2x16xf32>
    %680 = vector.extract_strided_slice %675 {offsets = [0, 48], sizes = [2, 16], strides = [1, 1]} : vector<2x128xf32> to vector<2x16xf32>
    %681 = arith.maximumf %679, %680 : vector<2x16xf32>
    %682 = vector.extract_strided_slice %675 {offsets = [0, 64], sizes = [2, 16], strides = [1, 1]} : vector<2x128xf32> to vector<2x16xf32>
    %683 = vector.extract_strided_slice %675 {offsets = [0, 80], sizes = [2, 16], strides = [1, 1]} : vector<2x128xf32> to vector<2x16xf32>
    %684 = arith.maximumf %682, %683 : vector<2x16xf32>
    %685 = vector.extract_strided_slice %675 {offsets = [0, 96], sizes = [2, 16], strides = [1, 1]} : vector<2x128xf32> to vector<2x16xf32>
    %686 = vector.extract_strided_slice %675 {offsets = [0, 112], sizes = [2, 16], strides = [1, 1]} : vector<2x128xf32> to vector<2x16xf32>
    %687 = arith.maximumf %685, %686 : vector<2x16xf32>
    %688 = tpu.concatenate %678, %681, %684, %687 in 1 : vector<2x16xf32>, vector<2x16xf32>, vector<2x16xf32>, vector<2x16xf32> -> vector<2x64xf32>
    %689 = vector.broadcast %612 : vector<1x64xf32> to vector<2x64xf32>
    %690 = arith.addf %688, %689 : vector<2x64xf32>
    %cst_64 = arith.constant 0.000000e+00 : f32
    %691 = vector.broadcast %cst_64 : f32 to vector<2x64xf32>
    %692 = arith.maximumf %690, %691 : vector<2x64xf32>
    %cst_65 = arith.constant 0.000000e+00 : f32
    %693 = vector.broadcast %cst_65 : f32 to vector<2x16xf32>
    %cst_66 = arith.constant 0.000000e+00 : f32
    %694 = vector.broadcast %cst_66 : f32 to vector<2x96xf32>
    %c0_67 = arith.constant 0 : index
    %c0_68 = arith.constant 0 : index
    %695 = vector.load %arg12[%c0_67, %c0_68] : memref<12x96xf32, #tpu.memory_space<vmem>>, vector<2x96xf32>
    tpu.vector_store %arg12[%c0_67, %c0_68], %694 {strides = array<i32>} : memref<12x96xf32, #tpu.memory_space<vmem>>, vector<2x96xf32>,
    %c10_69 = arith.constant 10 : index
    %c0_70 = arith.constant 0 : index
    %696 = vector.load %arg12[%c10_69, %c0_70] : memref<12x96xf32, #tpu.memory_space<vmem>>, vector<2x96xf32>
    tpu.vector_store %arg12[%c10_69, %c0_70], %694 {strides = array<i32>} : memref<12x96xf32, #tpu.memory_space<vmem>>, vector<2x96xf32>,
    %697 = tpu.concatenate %693, %632, %693 in 1 : vector<2x16xf32>, vector<2x64xf32>, vector<2x16xf32> -> vector<2x96xf32>
    %c2_71 = arith.constant 2 : index
    %c0_72 = arith.constant 0 : index
    %698 = vector.load %arg12[%c2_71, %c0_72] : memref<12x96xf32, #tpu.memory_space<vmem>>, vector<2x96xf32>
    tpu.vector_store %arg12[%c2_71, %c0_72], %697 {strides = array<i32>} : memref<12x96xf32, #tpu.memory_space<vmem>>, vector<2x96xf32>,
    %699 = tpu.concatenate %693, %652, %693 in 1 : vector<2x16xf32>, vector<2x64xf32>, vector<2x16xf32> -> vector<2x96xf32>
    %c4_73 = arith.constant 4 : index
    %c0_74 = arith.constant 0 : index
    %700 = vector.load %arg12[%c4_73, %c0_74] : memref<12x96xf32, #tpu.memory_space<vmem>>, vector<2x96xf32>
    tpu.vector_store %arg12[%c4_73, %c0_74], %699 {strides = array<i32>} : memref<12x96xf32, #tpu.memory_space<vmem>>, vector<2x96xf32>,
    %701 = tpu.concatenate %693, %672, %693 in 1 : vector<2x16xf32>, vector<2x64xf32>, vector<2x16xf32> -> vector<2x96xf32>
    %c6_75 = arith.constant 6 : index
    %c0_76 = arith.constant 0 : index
    %702 = vector.load %arg12[%c6_75, %c0_76] : memref<12x96xf32, #tpu.memory_space<vmem>>, vector<2x96xf32>
    tpu.vector_store %arg12[%c6_75, %c0_76], %701 {strides = array<i32>} : memref<12x96xf32, #tpu.memory_space<vmem>>, vector<2x96xf32>,
    %703 = tpu.concatenate %693, %692, %693 in 1 : vector<2x16xf32>, vector<2x64xf32>, vector<2x16xf32> -> vector<2x96xf32>
    %c8_77 = arith.constant 8 : index
    %c0_78 = arith.constant 0 : index
    %704 = vector.load %arg12[%c8_77, %c0_78] : memref<12x96xf32, #tpu.memory_space<vmem>>, vector<2x96xf32>
    tpu.vector_store %arg12[%c8_77, %c0_78], %703 {strides = array<i32>} : memref<12x96xf32, #tpu.memory_space<vmem>>, vector<2x96xf32>,
    %c0_79 = arith.constant 0 : index
    %c0_80 = arith.constant 0 : index
    %705 = vector.load %arg12[%c0_79, %c0_80] : memref<12x96xf32, #tpu.memory_space<vmem>>, vector<8x96xf32>
    %706 = arith.truncf %705 : vector<8x96xf32> to vector<8x96xbf16>
    %c0_81 = arith.constant 0 : index
    %c0_82 = arith.constant 0 : index
    %c0_83 = arith.constant 0 : index
    %707 = vector.load %arg6[%c0_81, %c0_82, %c0_83] : memref<3x96x128xbf16, #tpu.memory_space<vmem>>, vector<1x96x128xbf16>
    %708 = vector.shape_cast %707 : vector<1x96x128xbf16> to vector<96x128xbf16>
    %cst_84 = arith.constant dense<0.000000e+00> : vector<8x128xf32>
    %709 = tpu.matmul %706, %708, %cst_84 {dimension_numbers = #tpu.dot_dimension_numbers<[1], [0], [0], [1], [0, 0, 1, 1], [], []>} : vector<8x96xbf16>, vector<96x128xbf16>, vector<8x128xf32> -> vector<8x128xf32>
    %c2_85 = arith.constant 2 : index
    %c0_86 = arith.constant 0 : index
    %710 = vector.load %arg12[%c2_85, %c0_86] : memref<12x96xf32, #tpu.memory_space<vmem>>, vector<8x96xf32>
    %711 = arith.truncf %710 : vector<8x96xf32> to vector<8x96xbf16>
    %c1_87 = arith.constant 1 : index
    %c0_88 = arith.constant 0 : index
    %c0_89 = arith.constant 0 : index
    %712 = vector.load %arg6[%c1_87, %c0_88, %c0_89] : memref<3x96x128xbf16, #tpu.memory_space<vmem>>, vector<1x96x128xbf16>
    %713 = vector.shape_cast %712 : vector<1x96x128xbf16> to vector<96x128xbf16>
    %cst_90 = arith.constant dense<0.000000e+00> : vector<8x128xf32>
    %714 = tpu.matmul %711, %713, %cst_90 {dimension_numbers = #tpu.dot_dimension_numbers<[1], [0], [0], [1], [0, 0, 1, 1], [], []>} : vector<8x96xbf16>, vector<96x128xbf16>, vector<8x128xf32> -> vector<8x128xf32>
    %715 = arith.addf %709, %714 : vector<8x128xf32>
    %c4_91 = arith.constant 4 : index
    %c0_92 = arith.constant 0 : index
    %716 = vector.load %arg12[%c4_91, %c0_92] : memref<12x96xf32, #tpu.memory_space<vmem>>, vector<8x96xf32>
    %717 = arith.truncf %716 : vector<8x96xf32> to vector<8x96xbf16>
    %c2_93 = arith.constant 2 : index
    %c0_94 = arith.constant 0 : index
    %c0_95 = arith.constant 0 : index
    %718 = vector.load %arg6[%c2_93, %c0_94, %c0_95] : memref<3x96x128xbf16, #tpu.memory_space<vmem>>, vector<1x96x128xbf16>
    %719 = vector.shape_cast %718 : vector<1x96x128xbf16> to vector<96x128xbf16>
    %cst_96 = arith.constant dense<0.000000e+00> : vector<8x128xf32>
    %720 = tpu.matmul %717, %719, %cst_96 {dimension_numbers = #tpu.dot_dimension_numbers<[1], [0], [0], [1], [0, 0, 1, 1], [], []>} : vector<8x96xbf16>, vector<96x128xbf16>, vector<8x128xf32> -> vector<8x128xf32>
    %721 = arith.addf %715, %720 : vector<8x128xf32>
    %c0_97 = arith.constant 0 : index
    %c0_98 = arith.constant 0 : index
    %722 = vector.load %arg7[%c0_97, %c0_98] : memref<1x64xf32, #tpu.memory_space<vmem>>, vector<1x64xf32>
    %723 = vector.extract_strided_slice %721 {offsets = [0, 0], sizes = [2, 128], strides = [1, 1]} : vector<8x128xf32> to vector<2x128xf32>
    %724 = vector.extract_strided_slice %721 {offsets = [2, 0], sizes = [2, 128], strides = [1, 1]} : vector<8x128xf32> to vector<2x128xf32>
    %725 = arith.maximumf %723, %724 : vector<2x128xf32>
    %726 = vector.extract_strided_slice %725 {offsets = [0, 0], sizes = [2, 32], strides = [1, 1]} : vector<2x128xf32> to vector<2x32xf32>
    %727 = vector.extract_strided_slice %725 {offsets = [0, 32], sizes = [2, 32], strides = [1, 1]} : vector<2x128xf32> to vector<2x32xf32>
    %728 = arith.maximumf %726, %727 : vector<2x32xf32>
    %729 = vector.extract_strided_slice %725 {offsets = [0, 64], sizes = [2, 32], strides = [1, 1]} : vector<2x128xf32> to vector<2x32xf32>
    %730 = vector.extract_strided_slice %725 {offsets = [0, 96], sizes = [2, 32], strides = [1, 1]} : vector<2x128xf32> to vector<2x32xf32>
    %731 = arith.maximumf %729, %730 : vector<2x32xf32>
    %732 = tpu.concatenate %728, %731 in 1 : vector<2x32xf32>, vector<2x32xf32> -> vector<2x64xf32>
    %733 = vector.broadcast %722 : vector<1x64xf32> to vector<2x64xf32>
    %734 = arith.addf %732, %733 : vector<2x64xf32>
    %cst_99 = arith.constant 0.000000e+00 : f32
    %735 = vector.broadcast %cst_99 : f32 to vector<2x64xf32>
    %736 = arith.maximumf %734, %735 : vector<2x64xf32>
    %737 = vector.extract_strided_slice %721 {offsets = [4, 0], sizes = [2, 128], strides = [1, 1]} : vector<8x128xf32> to vector<2x128xf32>
    %738 = vector.extract_strided_slice %721 {offsets = [6, 0], sizes = [2, 128], strides = [1, 1]} : vector<8x128xf32> to vector<2x128xf32>
    %739 = arith.maximumf %737, %738 : vector<2x128xf32>
    %740 = vector.extract_strided_slice %739 {offsets = [0, 0], sizes = [2, 32], strides = [1, 1]} : vector<2x128xf32> to vector<2x32xf32>
    %741 = vector.extract_strided_slice %739 {offsets = [0, 32], sizes = [2, 32], strides = [1, 1]} : vector<2x128xf32> to vector<2x32xf32>
    %742 = arith.maximumf %740, %741 : vector<2x32xf32>
    %743 = vector.extract_strided_slice %739 {offsets = [0, 64], sizes = [2, 32], strides = [1, 1]} : vector<2x128xf32> to vector<2x32xf32>
    %744 = vector.extract_strided_slice %739 {offsets = [0, 96], sizes = [2, 32], strides = [1, 1]} : vector<2x128xf32> to vector<2x32xf32>
    %745 = arith.maximumf %743, %744 : vector<2x32xf32>
    %746 = tpu.concatenate %742, %745 in 1 : vector<2x32xf32>, vector<2x32xf32> -> vector<2x64xf32>
    %747 = vector.broadcast %722 : vector<1x64xf32> to vector<2x64xf32>
    %748 = arith.addf %746, %747 : vector<2x64xf32>
    %cst_100 = arith.constant 0.000000e+00 : f32
    %749 = vector.broadcast %cst_100 : f32 to vector<2x64xf32>
    %750 = arith.maximumf %748, %749 : vector<2x64xf32>
    %751 = tpu.concatenate %736, %750 in 1 : vector<2x64xf32>, vector<2x64xf32> -> vector<2x128xf32>
    %752 = arith.truncf %751 : vector<2x128xf32> to vector<2x128xbf16>
    %c0_101 = arith.constant 0 : index
    %c0_102 = arith.constant 0 : index
    %753 = vector.load %arg8[%c0_101, %c0_102] : memref<128x64xbf16, #tpu.memory_space<vmem>>, vector<128x64xbf16>
    %cst_103 = arith.constant dense<0.000000e+00> : vector<2x64xf32>
    %754 = tpu.matmul %752, %753, %cst_103 {dimension_numbers = #tpu.dot_dimension_numbers<[1], [0], [0], [1], [0, 0, 1, 1], [], []>} : vector<2x128xbf16>, vector<128x64xbf16>, vector<2x64xf32> -> vector<2x64xf32>
    %c0_104 = arith.constant 0 : index
    %c0_105 = arith.constant 0 : index
    %755 = vector.load %arg9[%c0_104, %c0_105] : memref<1x64xf32, #tpu.memory_space<vmem>>, vector<1x64xf32>
    %756 = vector.broadcast %755 : vector<1x64xf32> to vector<2x64xf32>
    %757 = arith.addf %754, %756 : vector<2x64xf32>
    %cst_106 = arith.constant 0.000000e+00 : f32
    %758 = vector.broadcast %cst_106 : f32 to vector<2x64xf32>
    %759 = arith.maximumf %757, %758 : vector<2x64xf32>
    %c0_107 = arith.constant 0 : index
    %c0_108 = arith.constant 0 : index
    %760 = vector.load %arg10[%c0_107, %c0_108] : memref<2x64xf32, #tpu.memory_space<vmem>>, vector<2x64xf32>
    tpu.vector_store %arg10[%c0_107, %c0_108], %759 {strides = array<i32>} : memref<2x64xf32, #tpu.memory_space<vmem>>, vector<2x64xf32>,
    return
  }
  func.func @transform_0(%arg0: i32) -> (i32, i32) {
    %c0_i32 = arith.constant 0 : i32
    %c0_i32_0 = arith.constant 0 : i32
    return %arg0, %c0_i32 : i32, i32
  }
  func.func @transform_1(%arg0: i32) -> (i32, i32, i32) {
    %c0_i32 = arith.constant 0 : i32
    %c0_i32_0 = arith.constant 0 : i32
    %c0_i32_1 = arith.constant 0 : i32
    %c0_i32_2 = arith.constant 0 : i32
    return %c0_i32, %c0_i32_0, %c0_i32_1 : i32, i32, i32
  }
  func.func @transform_2(%arg0: i32) -> (i32, i32) {
    %c0_i32 = arith.constant 0 : i32
    %c0_i32_0 = arith.constant 0 : i32
    %c0_i32_1 = arith.constant 0 : i32
    return %c0_i32, %c0_i32_0 : i32, i32
  }
  func.func @transform_3(%arg0: i32) -> (i32, i32, i32) {
    %c0_i32 = arith.constant 0 : i32
    %c0_i32_0 = arith.constant 0 : i32
    %c0_i32_1 = arith.constant 0 : i32
    %c0_i32_2 = arith.constant 0 : i32
    return %c0_i32, %c0_i32_0, %c0_i32_1 : i32, i32, i32
  }
  func.func @transform_4(%arg0: i32) -> (i32, i32) {
    %c0_i32 = arith.constant 0 : i32
    %c0_i32_0 = arith.constant 0 : i32
    %c0_i32_1 = arith.constant 0 : i32
    return %c0_i32, %c0_i32_0 : i32, i32
  }
  func.func @transform_5(%arg0: i32) -> (i32, i32, i32) {
    %c0_i32 = arith.constant 0 : i32
    %c0_i32_0 = arith.constant 0 : i32
    %c0_i32_1 = arith.constant 0 : i32
    %c0_i32_2 = arith.constant 0 : i32
    return %c0_i32, %c0_i32_0, %c0_i32_1 : i32, i32, i32
  }
  func.func @transform_6(%arg0: i32) -> (i32, i32) {
    %c0_i32 = arith.constant 0 : i32
    %c0_i32_0 = arith.constant 0 : i32
    %c0_i32_1 = arith.constant 0 : i32
    return %c0_i32, %c0_i32_0 : i32, i32
  }
  func.func @transform_7(%arg0: i32) -> (i32, i32) {
    %c0_i32 = arith.constant 0 : i32
    %c0_i32_0 = arith.constant 0 : i32
    %c0_i32_1 = arith.constant 0 : i32
    return %c0_i32, %c0_i32_0 : i32, i32
  }
  func.func @transform_8(%arg0: i32) -> (i32, i32) {
    %c0_i32 = arith.constant 0 : i32
    %c0_i32_0 = arith.constant 0 : i32
    %c0_i32_1 = arith.constant 0 : i32
    return %c0_i32, %c0_i32_0 : i32, i32
  }
  func.func @transform_9(%arg0: i32) -> (i32, i32) {
    %c0_i32 = arith.constant 0 : i32
    %c0_i32_0 = arith.constant 0 : i32
    return %arg0, %c0_i32 : i32, i32
  }
}

</mosaic_0001>

<bundles_post_ra>
// kernel: context_network_forward.1
= control target key start
LH: loop header
LB: loop body
LE: loop exit
PB: predicated region body
PF: predicated region fallthrough
CT: control target
= control target key end

     0   :  { %v5670_v2 = vmov 0   ;;  %vm147_vm0 = vcmask 1041408   ;;  %vm74_vm1 = vcmask 1046528   ;;  %vm537_vm2 = vcmask 1045504   ;;  %s5660_s0 = inlined_call_operand.vmem [shape: f32[72,36], index: 0, kind: input, shape index: {}]   ;;  %s5661_s1 = inlined_call_operand.vmem [shape: bf16[5,36,512], index: 1, kind: input, shape index: {}]   ;;  %s5662_s2 = inlined_call_operand.vmem [shape: f32[1,128], index: 2, kind: input, shape index: {}]   ;;  %s5663_s3 = inlined_call_operand.vmem [shape: bf16[3,160,128], index: 3, kind: input, shape index: {}]   ;;  %s5664_s4 = inlined_call_operand.vmem [shape: f32[1,64], index: 4, kind: input, shape index: {}]   ;;  %s5665_s5 = inlined_call_operand.vmem [shape: bf16[3,96,128], index: 5, kind: input, shape index: {}]   ;;  %s5666_s6 = inlined_call_operand.vmem [shape: f32[1,64], index: 6, kind: input, shape index: {}]   ;;  %s5667_s7 = inlined_call_operand.vmem [shape: bf16[128,64], index: 7, kind: input, shape index: {}]   ;;  %s5668_s8 = inlined_call_operand.vmem [shape: f32[1,64], index: 8, kind: input, shape index: {}]   ;;  %s5669_s9 = inlined_call_operand.hbm [shape: f32[2,64], index: 9, kind: output, shape index: {}]  }
   0x1   :  { %v3948_v0 = vld [vmem:[%s5661_s1 + $0x54] ss:$16 sps:$4 sm:$0xff]   ;;  %v3950_v1 = vld [vmem:[%s5661_s1 + $0x5c] ss:$16 sps:$4 sm:$0xff]   ;;  %192 = vmatprep.mubr.bf16.mxu0 %v5670_v2  ;;  %265 = vmatprep.mubr.bf16.mxu1 %v5670_v2  ;;  %v3952_v3 = vld [vmem:[%s5661_s1 + $0x50] ss:$16 sps:$4 sm:$0xff]  }
   0x2   :  { %160 = vmatprep.subr.bf16.mxu0 %v3948_v0  ;;  %v3953_v4 = vld [vmem:[%s5661_s1 + $0x58] ss:$16 sps:$4 sm:$0xff]   ;;  %233 = vmatprep.subr.bf16.mxu1 %v3950_v1  ;;  %v3954_v5 = vld [vmem:[%s5661_s1 + $0x74] ss:$16 sps:$4 sm:$0xff]   ;;  %v3956_v6 = vld [vmem:[%s5661_s1 + $0x7c] ss:$16 sps:$4 sm:$0xff]  }
   0x3   :  { %161 = vmatpush1.bf16.msra.mxu0 %v3952_v3  ;;  %234 = vmatpush1.bf16.msra.mxu1 %v3953_v4  ;;  %v3958_v7 = vld [vmem:[%s5661_s1 + $0x70] ss:$16 sps:$4 sm:$0xff]   ;;  %v3959_v8 = vld [vmem:[%s5661_s1 + $0x78] ss:$16 sps:$4 sm:$0xff]   ;;  %v3966_v23 = vld [vmem:[%s5661_s1 + $0x4] ss:$16 sps:$4 sm:$0xff]  }
   0x4   :  { %162 = vmatprep.subr.bf16.mxu0 %v3954_v5  ;;  %v3423_v9 = vld [vmem:[%s5661_s1 + $0x90] sm:$0x33]  ;;  %v3424_v10 = vld [vmem:[%s5661_s1 + $0x98] sm:$0x33]  ;;  %235 = vmatprep.subr.bf16.mxu1 %v3956_v6  ;;  %v34_v15 = vld [vmem:[%s5660_s0] sm:$0xff]  ;;  %vm810_vm3 = vcmask 1044480  }
   0x5   :  { %v3434_v11 = vcombine.high %v3423_v9, %v3423_v9  ;;  %v3436_v12 = vcombine.high %v3424_v10, %v3424_v10  ;;  %v3433_v13 = vcombine.low %v3423_v9, %v3423_v9  ;;  %v3435_v14 = vcombine.low %v3424_v10, %v3424_v10  ;;  %v35_v16 = vld [vmem:[%s5660_s0 + $0x8] sm:$0xff]  ;;  %v36_v17 = vld [vmem:[%s5660_s0 + $0x10] sm:$0xff]  ;;  %v37_v18 = vld [vmem:[%s5660_s0 + $0x18] sm:$0xff] }
   0x6   :  { %v4213_v19 = vpack.c.bf16 %v35_v16, %v34_v15  ;;  %v4217_v22 = vpack.c.bf16 %v37_v18, %v36_v17  ;;  %v4222_v24 = vpack.c.bf16 %v36_v17, %v35_v16  ;;  %v38_v26 = vld [vmem:[%s5660_s0 + $0x20] sm:$0xff]  ;;  %v4233_v27 = vld [vmem:[%s5660_s0 + $0x28] sm:$0xff]  ;;  %vm134_vm4 = vcmask 293888   ;;  %v40_v37 = vld [vmem:[%s5660_s0 + $0x30] sm:$0xff] }
   0x7   :  { %163 = vmatpush1.bf16.msra.mxu0 %v3958_v7  ;;  %236 = vmatpush1.bf16.msra.mxu1 %v3959_v8  ;;  %v149_v20 = vsel %vm147_vm0, %v3433_v13, 0  ;;  %v155_v21 = vsel %vm147_vm0, %v3435_v14, 0  ;;  %v4239_v31 = vpack.c.bf16 %v4233_v27, %v38_v26  ;;  %v3964_v32 = vld [vmem:[%s5661_s1] ss:$16 sps:$4 sm:$0xff]   ;;  %v3972_v36 = vld [vmem:[%s5661_s1 + $0xc] ss:$16 sps:$4 sm:$0xff]   ;;  %v4301_v56 = vpack.c.bf16 %v38_v26, %v37_v18 }
   0x8   :  { %3437 = vmatprep.subr.msk.bf16.mxu0 %vm147_vm0, %v3434_v11  ;;  %3442 = vmatprep.subr.msk.bf16.mxu1 %vm147_vm0, %v3436_v12  ;;  %v75_v25 = vrot.slane %v4213_v19, 1  ;;  %v538_v28 = vrot.slane %v4213_v19, 2  ;;  %v811_v29 = vrot.slane %v4213_v19, 3  ;;  %v76_v30 = vrot.slane %v4217_v22, 1  ;;  %v4256_v38 = vld [vmem:[%s5660_s0 + $0x38] sm:$0xff]  ;;  %v42_v47 = vld [vmem:[%s5660_s0 + $0x40] sm:$0xff] }
   0x9   :  { %v539_v33 = vrot.slane %v4217_v22, 2  ;;  %v812_v34 = vrot.slane %v4217_v22, 3  ;;  %v541_v39 = vrot.slane %v4239_v31, 2  ;;  %v3969_v40 = vld [vmem:[%s5661_s1 + $0x24] ss:$16 sps:$4 sm:$0xff]   ;;  %v4263_v41 = vpack.c.bf16 %v4256_v38, %v40_v37 }
   0xa   :  { %v77_v35 = vsel %vm74_vm1, %v75_v25, %v76_v30  ;;  %v814_v44 = vrot.slane %v4239_v31, 3  ;;  %v3970_v45 = vld [vmem:[%s5661_s1 + $0x8] ss:$16 sps:$4 sm:$0xff]   ;;  %v55_v46 = vld [vmem:[%s5661_s1 + $0x40] sm:$0x33]  ;;  %v78_v52 = vrot.slane %v4239_v31, 1  ;;  %v57_v54 = vpack.c.bf16 %v42_v47, %v42_v47 }
   0xb   :  { %165 = vmatpush1.bf16.msra.mxu0 %v149_v20  ;;  %238 = vmatpush1.bf16.msra.mxu1 %v155_v21  ;;  %v4266_v42 = vsel %vm537_vm2, %v538_v28, %v539_v33  ;;  %v4269_v43 = vsel %vm810_vm3, %v811_v29, %v812_v34  ;;  %v4282_v48 = vsel %vm537_vm2, %v539_v33, %v541_v39  ;;  %v3977_v49 = vld [vmem:[%s5661_s1 + $0x2c] ss:$16 sps:$4 sm:$0xff]   ;;  %v543_v50 = vrot.slane %v4263_v41, 2  ;;  %v3967_v53 = vld [vmem:[%s5661_s1 + $0x20] ss:$16 sps:$4 sm:$0xff]  }
   0xc   :  { %380 = vmatprep.subr.bf16.mxu0 %v3966_v23  ;;  %453 = vmatprep.subr.bf16.mxu1 %v3972_v36  ;;  %v4291_v51 = vsel %vm810_vm3, %v812_v34, %v814_v44  ;;  %v56_v55 = vld [vmem:[%s5661_s1 + $0x48] sm:$0x33]  ;;  %v3456_v57 = vcombine.high %v55_v46, %v55_v46  ;;  %v3455_v59 = vcombine.low %v55_v46, %v55_v46  ;;  %v545_v61 = vrot.slane %v57_v54, 2  ;;  %v3982_v7 = vld [vmem:[%s5661_s1 + $0xa4] ss:$16 sps:$4 sm:$0xff]  }
   0xd   :  { %v4305_v58 = vsel %vm537_vm2, %v541_v39, %v543_v50  ;;  %v3975_v60 = vld [vmem:[%s5661_s1 + $0x28] ss:$16 sps:$4 sm:$0xff]   ;;  %v3457_v62 = vcombine.low %v56_v55, %v56_v55  ;;  %v816_v63 = vrot.slane %v4263_v41, 3  ;;  %v79_v0 = vsel %vm74_vm1, %v76_v30, %v78_v52  ;;  %v3988_v10 = vld [vmem:[%s5661_s1 + $0xac] ss:$16 sps:$4 sm:$0xff]  }
   0xe   :  { %3438 = vmatmul.mubr.msk.bf16.vlgmr.msra.gmra.mrb[0].mxu0 %vm134_vm4, %v77_v35  ;;  %3443 = vmatmul.mubr.msk.bf16.vlgmr.msra.gmra.mrb[0].mxu1 %vm134_vm4, %v77_v35  ;;  %v4313_v1 = vsel %vm537_vm2, %v543_v50, %v545_v61  ;;  %v818_v3 = vrot.slane %v57_v54, 3  ;;  %v3458_v4 = vcombine.high %v56_v55, %v56_v55  ;;  %v369_v6 = vsel %vm147_vm0, %v3455_v59, 0  ;;  %v3477_v14 = vld [vmem:[%s5661_s1 + $0xe0] sm:$0x33]  ;;  %v3478_v15 = vld [vmem:[%s5661_s1 + $0xe8] sm:$0x33] }
   0xf   :  { %381 = vmatpush1.bf16.msra.mxu0 %v3964_v32  ;;  %202 = vmatprep.mubr.bf16.mxu0 %v5670_v2  ;;  %v4317_v5 = vsel %vm810_vm3, %v814_v44, %v816_v63  ;;  %v375_v9 = vsel %vm147_vm0, %v3457_v62, 0  ;;  %v80_v11 = vrot.slane %v4263_v41, 1  ;;  %v4336_v12 = vpack.c.bf16 %v40_v37, %v4233_v27  ;;  %v3980_v26 = vld [vmem:[%s5661_s1 + $0xa0] ss:$16 sps:$4 sm:$0xff]   ;;  %v3985_v27 = vld [vmem:[%s5661_s1 + $0xc4] ss:$16 sps:$4 sm:$0xff]  }
  0x10   :  { %275 = vmatprep.mubr.bf16.mxu1 %v5670_v2  ;;  %382 = vmatprep.subr.bf16.mxu0 %v3969_v40  ;;  %v4324_v8 = vsel %vm810_vm3, %v816_v63, %v818_v3  ;;  %v82_v16 = vrot.slane %v57_v54, 1  ;;  %v3487_v17 = vcombine.low %v3477_v14, %v3477_v14  ;;  %v3489_v18 = vcombine.low %v3478_v15, %v3478_v15  ;;  %v3986_v28 = vld [vmem:[%s5661_s1 + $0xa8] ss:$16 sps:$4 sm:$0xff]   ;;  %v3993_v29 = vld [vmem:[%s5661_s1 + $0xcc] ss:$16 sps:$4 sm:$0xff]  }
  0x11   :  { %454 = vmatpush1.bf16.msra.mxu1 %v3970_v45  ;;  %v81_v13 = vsel %vm74_vm1, %v78_v52, %v80_v11  ;;  %v4351_v20 = vpack.c.bf16 %v42_v47, %v4256_v38  ;;  %v3983_v30 = vld [vmem:[%s5661_s1 + $0xc0] ss:$16 sps:$4 sm:$0xff]   ;;  %v3991_v32 = vld [vmem:[%s5661_s1 + $0xc8] ss:$16 sps:$4 sm:$0xff]   ;;  %v3488_v33 = vcombine.high %v3477_v14, %v3477_v14  ;;  %v3998_v34 = vld [vmem:[%s5661_s1 + $0xf4] ss:$16 sps:$4 sm:$0xff]  }
  0x12   :  { %455 = vmatprep.subr.bf16.mxu1 %v3977_v49  ;;  %v83_v21 = vsel %vm74_vm1, %v80_v11, %v82_v16  ;;  %v610_v23 = vsel %vm147_vm0, %v3487_v17, 0  ;;  %v616_v25 = vsel %vm147_vm0, %v3489_v18, 0  ;;  %v4004_v35 = vld [vmem:[%s5661_s1 + $0xfc] ss:$16 sps:$4 sm:$0xff]  }
  0x13   :  { %383 = vmatpush1.bf16.msra.mxu0 %v3967_v53 }
  0x14   :  { %3459 = vmatprep.subr.msk.bf16.mxu0 %vm147_vm0, %v3456_v57 }
  0x15   :  { %456 = vmatpush1.bf16.msra.mxu1 %v3975_v60 }
  0x16   :  { %3439 = vmatmul.mubr.msk.bf16.gmra.mrb[4].mxu0 %vm134_vm4, %v79_v0  ;;  %3444 = vmatmul.mubr.msk.bf16.gmra.mrb[4].mxu1 %vm134_vm4, %v79_v0 }
  0x17   :  { %212 = vmatprep.mubr.bf16.mxu0 %v5670_v2  ;;  %285 = vmatprep.mubr.bf16.mxu1 %v5670_v2 }
  0x18   :  { %385 = vmatpush1.bf16.msra.mxu0 %v369_v6  ;;  %3464 = vmatprep.subr.msk.bf16.mxu1 %vm147_vm0, %v3458_v4 }
  0x19   :  { %458 = vmatpush1.bf16.msra.mxu1 %v375_v9  ;;  %621 = vmatprep.subr.bf16.mxu0 %v3982_v7 }
  0x1a   :  { %694 = vmatprep.subr.bf16.mxu1 %v3988_v10 }
  0x1e   :  { %3440 = vmatmul.mubr.msk.bf16.gmra.mrb[8].mxu0 %vm134_vm4, %v81_v13  ;;  %3445 = vmatmul.mubr.msk.bf16.gmra.mrb[8].mxu1 %vm134_vm4, %v81_v13 }
  0x1f   :  { %222 = vmatprep.mubr.bf16.mxu0 %v5670_v2  ;;  %295 = vmatprep.mubr.bf16.mxu1 %v5670_v2 }
  0x26   :  { %3441 = vmatmul.mubr.msk.bf16.gmra.mrb[12].mxu0 %vm134_vm4, %v83_v21  ;;  %3446 = vmatmul.mubr.msk.bf16.gmra.mrb[12].mxu1 %vm134_vm4, %v83_v21 }
  0x27   :  { %412 = vmatprep.mubr.bf16.mxu0 %v5670_v2  ;;  %485 = vmatprep.mubr.bf16.mxu1 %v5670_v2 }
  0x2e   :  { %3460 = vmatmul.mubr.msk.bf16.vlgmr.msra.gmra.mrb[0].mxu0 %vm134_vm4, %v4213_v19  ;;  %3465 = vmatmul.mubr.msk.bf16.vlgmr.msra.gmra.mrb[0].mxu1 %vm134_vm4, %v4213_v19  ;;  %v3490_v19 = vcombine.high %v3478_v15, %v3478_v15 }
  0x2f   :  { %622 = vmatpush1.bf16.msra.mxu0 %v3980_v26  ;;  %422 = vmatprep.mubr.bf16.mxu0 %v5670_v2 }
  0x30   :  { %495 = vmatprep.mubr.bf16.mxu1 %v5670_v2  ;;  %623 = vmatprep.subr.bf16.mxu0 %v3985_v27 }
  0x31   :  { %695 = vmatpush1.bf16.msra.mxu1 %v3986_v28 }
  0x32   :  { %696 = vmatprep.subr.bf16.mxu1 %v3993_v29 }
  0x33   :  { %624 = vmatpush1.bf16.msra.mxu0 %v3983_v30 }
  0x34   :  { %3491 = vmatprep.subr.msk.bf16.mxu0 %vm147_vm0, %v3488_v33 }
  0x35   :  { %697 = vmatpush1.bf16.msra.mxu1 %v3991_v32 }
  0x36   :  { %3461 = vmatmul.mubr.msk.bf16.gmra.mrb[4].mxu0 %vm134_vm4, %v4217_v22  ;;  %3466 = vmatmul.mubr.msk.bf16.gmra.mrb[4].mxu1 %vm134_vm4, %v4217_v22 }
  0x37   :  { %432 = vmatprep.mubr.bf16.mxu0 %v5670_v2  ;;  %505 = vmatprep.mubr.bf16.mxu1 %v5670_v2 }
  0x38   :  { %626 = vmatpush1.bf16.msra.mxu0 %v610_v23  ;;  %3496 = vmatprep.subr.msk.bf16.mxu1 %vm147_vm0, %v3490_v19 }
  0x39   :  { %699 = vmatpush1.bf16.msra.mxu1 %v616_v25  ;;  %894 = vmatprep.subr.bf16.mxu0 %v3998_v34 }
  0x3a   :  { %967 = vmatprep.subr.bf16.mxu1 %v4004_v35 }
  0x3e   :  { %3462 = vmatmul.mubr.msk.bf16.gmra.mrb[8].mxu0 %vm134_vm4, %v4239_v31  ;;  %3467 = vmatmul.mubr.msk.bf16.gmra.mrb[8].mxu1 %vm134_vm4, %v4239_v31 }
  0x3f   :  { %442 = vmatprep.mubr.bf16.mxu0 %v5670_v2  ;;  %515 = vmatprep.mubr.bf16.mxu1 %v5670_v2 }
  0x46   :  { %3463 = vmatmul.mubr.msk.bf16.gmra.mrb[12].mxu0 %vm134_vm4, %v4263_v41  ;;  %3468 = vmatmul.mubr.msk.bf16.gmra.mrb[12].mxu1 %vm134_vm4, %v4263_v41 }
  0x47   :  { %14 = vsyncpa [#allocation5], 0  ;;  %653 = vmatprep.mubr.bf16.mxu0 %v5670_v2  ;;  %726 = vmatprep.mubr.bf16.mxu1 %v5670_v2  ;;  %v3996_v22 = vld [vmem:[%s5661_s1 + $0xf0] ss:$16 sps:$4 sm:$0xff]   ;;  %v4001_v31 = vld [vmem:[%s5661_s1 + $0x114] ss:$16 sps:$4 sm:$0xff]  }
  0x48   :  { %v4002_v36 = vld [vmem:[%s5661_s1 + $0xf8] ss:$16 sps:$4 sm:$0xff]   ;;  %v3509_v37 = vld [vmem:[%s5661_s1 + $0x130] sm:$0x33]  ;;  %v4009_v38 = vld [vmem:[%s5661_s1 + $0x11c] ss:$16 sps:$4 sm:$0xff]  }
  0x49   :  { %v3999_v39 = vld [vmem:[%s5661_s1 + $0x110] ss:$16 sps:$4 sm:$0xff]   ;;  %v3510_v40 = vld [vmem:[%s5661_s1 + $0x138] sm:$0x33]  ;;  %v3520_v41 = vcombine.high %v3509_v37, %v3509_v37  ;;  %v4014_v49 = vld [vmem:[%s5661_s1 + $0x144] ss:$16 sps:$4 sm:$0xff]  }
  0x4a   :  { %v4007_v44 = vld [vmem:[%s5661_s1 + $0x118] ss:$16 sps:$4 sm:$0xff]   ;;  %v3521_v45 = vcombine.low %v3510_v40, %v3510_v40  ;;  %v3522_v46 = vcombine.high %v3510_v40, %v3510_v40  ;;  %v4020_v52 = vld [vmem:[%s5661_s1 + $0x14c] ss:$16 sps:$4 sm:$0xff]   ;;  %v4017_v53 = vld [vmem:[%s5661_s1 + $0x164] ss:$16 sps:$4 sm:$0xff]  }
  0x4b   :  { %v4018_v54 = vld [vmem:[%s5661_s1 + $0x148] ss:$16 sps:$4 sm:$0xff]   ;;  %v3541_v55 = vld [vmem:[%s5661_s1 + $0x180] sm:$0x33]  ;;  %v4025_v57 = vld [vmem:[%s5661_s1 + $0x16c] ss:$16 sps:$4 sm:$0xff]  }
  0x4c   :  { %v889_v50 = vsel %vm147_vm0, %v3521_v45, 0  ;;  %v3542_v59 = vld [vmem:[%s5661_s1 + $0x188] sm:$0x33]  ;;  %v3552_v60 = vcombine.high %v3541_v55, %v3541_v55  ;;  %s4110_s0 = smov 96   ;;  %s4111_s19 = smov 80   ;;  %vm2365_vm5 = vcmask 257026  }
  0x4d   :  { %v4023_v61 = vld [vmem:[%s5661_s1 + $0x168] ss:$16 sps:$4 sm:$0xff]   ;;  %v3553_v62 = vcombine.low %v3542_v59, %v3542_v59  ;;  %v3554_v63 = vcombine.high %v3542_v59, %v3542_v59  ;;  %s4112_s20 = smov 64   ;;  %s4113_s21 = smov 16   ;;  %vm1457_vm6 = vcmask 130048   ;;  %vm1459_vm7 = vcmask 261120  }
  0x4e   :  { %3492 = vmatmul.mubr.msk.bf16.vlgmr.msra.gmra.mrb[0].mxu0 %vm134_vm4, %v4266_v42  ;;  %3497 = vmatmul.mubr.msk.bf16.vlgmr.msra.gmra.mrb[0].mxu1 %vm134_vm4, %v4266_v42  ;;  %v3519_v42 = vcombine.low %v3509_v37, %v3509_v37  ;;  %s4114_s22 = smov 32   ;;  %s4115_s23 = smov 48   ;;  %vm1461_vm8 = vcmask 392192   ;;  %vm1463_vm9 = vcmask 523264   ;;  %vm1465_vm10 = vcmask 654336  }
  0x4f   :  { %895 = vmatpush1.bf16.msra.mxu0 %v3996_v22  ;;  %663 = vmatprep.mubr.bf16.mxu0 %v5670_v2  ;;  %vm1467_vm11 = vcmask 785408   ;;  %vm1469_vm12 = vcmask 916480   ;;  %vm2362_vm13 = vcmask 254976   ;;  %vm2394_vm14 = vcmask 259076   ;;  %s4118_s12 = smov [#allocation4]  }
  0x50   :  { %736 = vmatprep.mubr.bf16.mxu1 %v5670_v2  ;;  %896 = vmatprep.subr.bf16.mxu0 %v4001_v31  ;;  %v883_v47 = vsel %vm147_vm0, %v3519_v42, 0  ;;  %vm2409_vm15 = vcmask 261126  }
  0x51   :  { %968 = vmatpush1.bf16.msra.mxu1 %v4002_v36 }
  0x52   :  { %969 = vmatprep.subr.bf16.mxu1 %v4009_v38 }
  0x53   :  { %897 = vmatpush1.bf16.msra.mxu0 %v3999_v39 }
  0x54   :  { %3523 = vmatprep.subr.msk.bf16.mxu0 %vm147_vm0, %v3520_v41 }
  0x55   :  { %970 = vmatpush1.bf16.msra.mxu1 %v4007_v44 }
  0x56   :  { %3493 = vmatmul.mubr.msk.bf16.gmra.mrb[4].mxu0 %vm134_vm4, %v4282_v48  ;;  %3498 = vmatmul.mubr.msk.bf16.gmra.mrb[4].mxu1 %vm134_vm4, %v4282_v48  ;;  %v4012_v48 = vld [vmem:[%s5661_s1 + $0x140] ss:$16 sps:$4 sm:$0xff]  }
  0x57   :  { %673 = vmatprep.mubr.bf16.mxu0 %v5670_v2  ;;  %746 = vmatprep.mubr.bf16.mxu1 %v5670_v2 }
  0x58   :  { %899 = vmatpush1.bf16.msra.mxu0 %v883_v47  ;;  %3528 = vmatprep.subr.msk.bf16.mxu1 %vm147_vm0, %v3522_v46 }
  0x59   :  { %972 = vmatpush1.bf16.msra.mxu1 %v889_v50  ;;  %1161 = vmatprep.subr.bf16.mxu0 %v4014_v49 }
  0x5a   :  { %1234 = vmatprep.subr.bf16.mxu1 %v4020_v52 }
  0x5e   :  { %3494 = vmatmul.mubr.msk.bf16.gmra.mrb[8].mxu0 %vm134_vm4, %v4305_v58  ;;  %3499 = vmatmul.mubr.msk.bf16.gmra.mrb[8].mxu1 %vm134_vm4, %v4305_v58  ;;  %v4015_v58 = vld [vmem:[%s5661_s1 + $0x160] ss:$16 sps:$4 sm:$0xff]   ;;  %s4109_s1 = smov 112  }
  0x5f   :  { %683 = vmatprep.mubr.bf16.mxu0 %v5670_v2  ;;  %756 = vmatprep.mubr.bf16.mxu1 %v5670_v2 }
  0x66   :  { %3495 = vmatmul.mubr.msk.bf16.gmra.mrb[12].mxu0 %vm134_vm4, %v4313_v1  ;;  %3500 = vmatmul.mubr.msk.bf16.gmra.mrb[12].mxu1 %vm134_vm4, %v4313_v1  ;;  %v1156_v1 = vsel %vm147_vm0, %v3553_v62, 0 }
  0x67   :  { %926 = vmatprep.mubr.bf16.mxu0 %v5670_v2  ;;  %999 = vmatprep.mubr.bf16.mxu1 %v5670_v2 }
  0x6e   :  { %3524 = vmatmul.mubr.msk.bf16.vlgmr.msra.gmra.mrb[0].mxu0 %vm134_vm4, %v4269_v43  ;;  %3529 = vmatmul.mubr.msk.bf16.vlgmr.msra.gmra.mrb[0].mxu1 %vm134_vm4, %v4269_v43  ;;  %v3551_v43 = vcombine.low %v3541_v55, %v3541_v55 }
  0x6f   :  { %1162 = vmatpush1.bf16.msra.mxu0 %v4012_v48  ;;  %936 = vmatprep.mubr.bf16.mxu0 %v5670_v2 }
  0x70   :  { %1009 = vmatprep.mubr.bf16.mxu1 %v5670_v2  ;;  %1163 = vmatprep.subr.bf16.mxu0 %v4017_v53  ;;  %v1150_v0 = vsel %vm147_vm0, %v3551_v43, 0 }
  0x71   :  { %1235 = vmatpush1.bf16.msra.mxu1 %v4018_v54 }
  0x72   :  { %1236 = vmatprep.subr.bf16.mxu1 %v4025_v57 }
  0x73   :  { %1164 = vmatpush1.bf16.msra.mxu0 %v4015_v58 }
  0x74   :  { %3555 = vmatprep.subr.msk.bf16.mxu0 %vm147_vm0, %v3552_v60 }
  0x75   :  { %1237 = vmatpush1.bf16.msra.mxu1 %v4023_v61 }
  0x76   :  { %3525 = vmatmul.mubr.msk.bf16.gmra.mrb[4].mxu0 %vm134_vm4, %v4291_v51  ;;  %3530 = vmatmul.mubr.msk.bf16.gmra.mrb[4].mxu1 %vm134_vm4, %v4291_v51 }
  0x77   :  { %946 = vmatprep.mubr.bf16.mxu0 %v5670_v2  ;;  %1019 = vmatprep.mubr.bf16.mxu1 %v5670_v2 }
  0x78   :  { %1166 = vmatpush1.bf16.msra.mxu0 %v1150_v0  ;;  %3560 = vmatprep.subr.msk.bf16.mxu1 %vm147_vm0, %v3554_v63  ;;  %vm2944_vm0 = vcmask 779264  }
  0x79   :  { %1239 = vmatpush1.bf16.msra.mxu1 %v1156_v1  ;;  %2598 = vmatprep.subr.bf16.mxu0 %v5670_v2 }
  0x7e   :  { %3526 = vmatmul.mubr.msk.bf16.gmra.mrb[8].mxu0 %vm134_vm4, %v4317_v5  ;;  %3531 = vmatmul.mubr.msk.bf16.gmra.mrb[8].mxu1 %vm134_vm4, %v4317_v5 }
  0x7f   :  { %956 = vmatprep.mubr.bf16.mxu0 %v5670_v2  ;;  %1029 = vmatprep.mubr.bf16.mxu1 %v5670_v2 }
  0x86   :  { %3527 = vmatmul.mubr.msk.bf16.gmra.mrb[12].mxu0 %vm134_vm4, %v4324_v8  ;;  %3532 = vmatmul.mubr.msk.bf16.gmra.mrb[12].mxu1 %vm134_vm4, %v4324_v8 }
  0x87   :  { %1193 = vmatprep.mubr.bf16.mxu0 %v5670_v2  ;;  %1266 = vmatprep.mubr.bf16.mxu1 %v5670_v2 }
  0x8e   :  { %3556 = vmatmul.mubr.msk.bf16.vlgmr.msra.gmra.mrb[0].mxu0 %vm134_vm4, %v4222_v24  ;;  %3561 = vmatmul.mubr.msk.bf16.vlgmr.msra.gmra.mrb[0].mxu1 %vm134_vm4, %v4222_v24 }
  0x8f   :  { %1203 = vmatprep.mubr.bf16.mxu0 %v5670_v2  ;;  %1276 = vmatprep.mubr.bf16.mxu1 %v5670_v2 }
  0x96   :  { %3557 = vmatmul.mubr.msk.bf16.gmra.mrb[4].mxu0 %vm134_vm4, %v4301_v56  ;;  %3562 = vmatmul.mubr.msk.bf16.gmra.mrb[4].mxu1 %vm134_vm4, %v4301_v56 }
  0x97   :  { %1213 = vmatprep.mubr.bf16.mxu0 %v5670_v2  ;;  %1286 = vmatprep.mubr.bf16.mxu1 %v5670_v2 }
  0x9e   :  { %3558 = vmatmul.mubr.msk.bf16.gmra.mrb[8].mxu0 %vm134_vm4, %v4336_v12  ;;  %3563 = vmatmul.mubr.msk.bf16.gmra.mrb[8].mxu1 %vm134_vm4, %v4336_v12 }
  0x9f   :  { %1223 = vmatprep.mubr.bf16.mxu0 %v5670_v2  ;;  %1296 = vmatprep.mubr.bf16.mxu1 %v5670_v2 }
  0xa6   :  { %3559 = vmatmul.mubr.msk.bf16.gmra.mrb[12].mxu0 %vm134_vm4, %v4351_v20  ;;  %3564 = vmatmul.mubr.msk.bf16.gmra.mrb[12].mxu1 %vm134_vm4, %v4351_v20 }
 0x161   :  { %v1195_v24 = vpop.f32.mrb[0].mxu0  ;;  %v1268_v51 = vpop.f32.mrb[0].mxu1 }
 0x162   :  { %v1346_v56 = vrot.slane %v1268_v51, 2  ;;  %v4543_v3 = vpop.f32.mrb[1].mxu0  ;;  %v1270_v4 = vpop.f32.mrb[1].mxu1  ;;  %v1344_v5 = vrot.slane %v1195_v24, 2  ;;  %v1358_v12 = vrot.slane %v1268_v51, 4  ;;  %v1356_v13 = vrot.slane %v1195_v24, 4 }
 0x163   :  { %v4545_v6 = vpop.f32.mrb[2].mxu0  ;;  %v4547_v7 = vpop.f32.mrb[2].mxu1  ;;  %v1370_v21 = vrot.slane %v1268_v51, 6  ;;  %v1347_v26 = vrot.slane %v1270_v4, 2  ;;  %v1368_v29 = vrot.slane %v1195_v24, 6  ;;  %v1359_v35 = vrot.slane %v1270_v4, 4 }
 0x164   :  { %v4549_v8 = vpop.f32.mrb[3].mxu0  ;;  %v4551_v9 = vpop.f32.mrb[3].mxu1  ;;  %v1354_v10 = vmax.f32 %v1268_v51, %v1346_v56  ;;  %v1352_v11 = vmax.f32 %v1195_v24, %v1344_v5  ;;  %v1483_v36 = vrot.slane %v4545_v6, 2  ;;  %v1371_v42 = vrot.slane %v1270_v4, 6 }
 0x165   :  { %v1355_v33 = vmax.f32 %v1270_v4, %v1347_v26  ;;  %v1345_v44 = vrot.slane %v4543_v3, 2  ;;  %v1485_v46 = vrot.slane %v4547_v7, 2  ;;  %v1495_v49 = vrot.slane %v4545_v6, 4 }
 0x166   :  { %v1366_v14 = vmax.f32 %v1354_v10, %v1358_v12  ;;  %v1364_v20 = vmax.f32 %v1352_v11, %v1356_v13  ;;  %v1491_v45 = vmax.f32 %v4545_v6, %v1483_v36  ;;  %v1357_v61 = vrot.slane %v4543_v3, 4 }
 0x167   :  { %v1367_v39 = vmax.f32 %v1355_v33, %v1359_v35  ;;  %v1353_v54 = vmax.f32 %v4543_v3, %v1345_v44  ;;  %v1493_v59 = vmax.f32 %v4547_v7, %v1485_v46  ;;  %v1507_v62 = vrot.slane %v4545_v6, 6 }
 0x168   :  { %v4569_v30 = vmax.f32 %v1366_v14, %v1370_v21  ;;  %v4573_v32 = vmax.f32 %v1364_v20, %v1368_v29  ;;  %v1503_v55 = vmax.f32 %v1491_v45, %v1495_v49  ;;  %v1497_v63 = vrot.slane %v4547_v7, 4 }
 0x169   :  { %v4553_v15 = vpop.f32.mrb[4].mxu0  ;;  %v4555_v16 = vpop.f32.mrb[4].mxu1  ;;  %v4601_v47 = vmax.f32 %v1367_v39, %v1371_v42  ;;  %v1365_v0 = vmax.f32 %v1353_v54, %v1357_v61  ;;  %v1484_v51 = vrot.slane %v4549_v8, 2  ;;  %v1369_v56 = vrot.slane %v4543_v3, 6 }
 0x16a   :  { %v4557_v17 = vpop.f32.mrb[5].mxu1  ;;  %v4559_v18 = vpop.f32.mrb[5].mxu0  ;;  %1407 = vrot.lane.b32.xlu1 %v4569_v30, %s4109_s1  ;;  %1381 = vrot.lane.b32.xlu0 %v4573_v32, %s4109_s1  ;;  %v4631_v1 = vmax.f32 %v1503_v55, %v1507_v62  ;;  %v1505_v24 = vmax.f32 %v1493_v59, %v1497_v63  ;;  %v1509_v4 = vrot.slane %v4547_v7, 6  ;;  %v1496_v11 = vrot.slane %v4549_v8, 4 }
 0x16b   :  { %v4561_v23 = vpop.f32.mrb[6].mxu0  ;;  %v4563_v25 = vpop.f32.mrb[6].mxu1  ;;  %v4638_v5 = vmax.f32 %v1365_v0, %v1369_v56  ;;  %v1492_v6 = vmax.f32 %v4549_v8, %v1484_v51  ;;  %v1486_v12 = vrot.slane %v4551_v9, 2  ;;  %v1508_v7 = vrot.slane %v4549_v8, 6 }
 0x16c   :  { %v4565_v27 = vpop.f32.mrb[7].mxu0  ;;  %v4567_v28 = vpop.f32.mrb[7].mxu1  ;;  %v4641_v10 = vmax.f32 %v1505_v24, %v1509_v4  ;;  %v1498_v20 = vrot.slane %v4551_v9, 4  ;;  %v1510_v8 = vrot.slane %v4551_v9, 6  ;;  %v1609_v26 = vrot.slane %v4553_v15, 2 }
 0x16d   :  { %v1504_v3 = vmax.f32 %v1492_v6, %v1496_v11  ;;  %v1494_v13 = vmax.f32 %v4551_v9, %v1486_v12  ;;  %v1611_v35 = vrot.slane %v4555_v16, 2  ;;  %v1621_v9 = vrot.slane %v4553_v15, 4 }
 0x16e   :  { %1411 = vrot.lane.b32.xlu1 %v4569_v30, %s4110_s0  ;;  %1385 = vrot.lane.b32.xlu0 %v4573_v32, %s4110_s0  ;;  %v1617_v33 = vmax.f32 %v4553_v15, %v1609_v26  ;;  %v1633_v42 = vrot.slane %v4553_v15, 6  ;;  %v1623_v44 = vrot.slane %v4555_v16, 4  ;;  %v1612_v46 = vrot.slane %v4557_v17, 2 }
 0x16f   :  { %v4655_v14 = vmax.f32 %v1504_v3, %v1508_v7  ;;  %v1506_v21 = vmax.f32 %v1494_v13, %v1498_v20  ;;  %v1619_v39 = vmax.f32 %v4555_v16, %v1611_v35  ;;  %v1635_v54 = vrot.slane %v4555_v16, 6 }
 0x170   :  { %v1629_v36 = vmax.f32 %v1617_v33, %v1621_v9  ;;  %v1620_v15 = vmax.f32 %v4557_v17, %v1612_v46  ;;  %v1735_v55 = vrot.slane %v4561_v23, 2  ;;  %v1624_v61 = vrot.slane %v4557_v17, 4 }
 0x171   :  { %v4577_v34 = vpop.f32.mrb[8].mxu0  ;;  %v4579_v19 = vpop.f32.mrb[8].mxu1  ;;  %v4668_v29 = vmax.f32 %v1506_v21, %v1510_v8  ;;  %v1631_v45 = vmax.f32 %v1619_v39, %v1623_v44  ;;  %v1610_v62 = vrot.slane %v4559_v18, 2  ;;  %v1636_v0 = vrot.slane %v4557_v17, 6 }
 0x172   :  { %v4581_v22 = vpop.f32.mrb[9].mxu1  ;;  %v4583_v31 = vpop.f32.mrb[9].mxu0  ;;  %1389 = vrot.lane.b32.xlu0 %v4573_v32, %s4111_s19  ;;  %1424 = vrot.lane.b32.xlu1 %v4601_v47, %s4110_s0  ;;  %v4689_v49 = vmax.f32 %v1629_v36, %v1633_v42  ;;  %v1632_v16 = vmax.f32 %v1620_v15, %v1624_v61  ;;  %v1743_v63 = vmax.f32 %v4561_v23, %v1735_v55  ;;  %v1747_v24 = vrot.slane %v4561_v23, 4 }
 0x173   :  { %v4588_v37 = vpop.f32.mrb[10].mxu0  ;;  %v4590_v38 = vpop.f32.mrb[10].mxu1  ;;  %v4698_v59 = vmax.f32 %v1631_v45, %v1635_v54  ;;  %v1618_v51 = vmax.f32 %v4559_v18, %v1610_v62  ;;  %v1737_v4 = vrot.slane %v4563_v25, 2  ;;  %v1622_v11 = vrot.slane %v4559_v18, 4 }
 0x174   :  { %v4592_v40 = vpop.f32.mrb[11].mxu0  ;;  %v4594_v41 = vpop.f32.mrb[11].mxu1  ;;  %v1755_v56 = vmax.f32 %v1743_v63, %v1747_v24  ;;  %v4715_v6 = vmax.f32 %v1632_v16, %v1636_v0  ;;  %v1759_v3 = vrot.slane %v4561_v23, 6  ;;  %v1634_v13 = vrot.slane %v4559_v18, 6 }
 0x175   :  { %v1630_v17 = vmax.f32 %v1618_v51, %v1622_v11  ;;  %v1745_v12 = vmax.f32 %v4563_v25, %v1737_v4  ;;  %v1749_v20 = vrot.slane %v4563_v25, 4  ;;  %v1736_v8 = vrot.slane %v4565_v27, 2 }
 0x176   :  { %1415 = vrot.lane.b32.xlu0 %v4569_v30, %s4111_s19  ;;  %1524 = vrot.lane.b32.xlu1 %v4631_v1, %s4110_s0  ;;  %v4724_v7 = vmax.f32 %v1755_v56, %v1759_v3  ;;  %v1761_v26 = vrot.slane %v4563_v25, 6  ;;  %v1861_v33 = vrot.slane %v4577_v34, 2  ;;  %v1748_v9 = vrot.slane %v4565_v27, 4 }
 0x177   :  { %v4732_v21 = vmax.f32 %v1630_v17, %v1634_v13  ;;  %v1757_v23 = vmax.f32 %v1745_v12, %v1749_v20  ;;  %v1744_v18 = vmax.f32 %v4565_v27, %v1736_v8  ;;  %v1863_v39 = vrot.slane %v4579_v19, 2 }
 0x178   :  { %v1869_v25 = vmax.f32 %v4577_v34, %v1861_v33  ;;  %v1760_v42 = vrot.slane %v4565_v27, 6  ;;  %v1873_v44 = vrot.slane %v4577_v34, 4  ;;  %v1862_v54 = vrot.slane %v4583_v31, 2 }
 0x179   :  { %v4606_v50 = vpop.f32.mrb[12].mxu0  ;;  %v4608_v52 = vpop.f32.mrb[12].mxu1  ;;  %v4742_v35 = vmax.f32 %v1757_v23, %v1761_v26  ;;  %v1756_v36 = vmax.f32 %v1744_v18, %v1748_v9  ;;  %v1871_v46 = vmax.f32 %v4579_v19, %v1863_v39  ;;  %v1885_v55 = vrot.slane %v4577_v34, 6 }
 0x17a   :  { %v4612_v48 = vpop.f32.mrb[13].mxu1  ;;  %v4614_v53 = vpop.f32.mrb[13].mxu0  ;;  %1394 = vrot.lane.b32.xlu0 %v4638_v5, %s4109_s1  ;;  %1546 = vrot.lane.b32.xlu1 %v4641_v10, %s4109_s1  ;;  %v1881_v45 = vmax.f32 %v1869_v25, %v1873_v44  ;;  %v1875_v61 = vrot.slane %v4579_v19, 4  ;;  %v1870_v62 = vmax.f32 %v4583_v31, %v1862_v54  ;;  %v1887_v63 = vrot.slane %v4579_v19, 6 }
 0x17b   :  { %v4617_v57 = vpop.f32.mrb[14].mxu0  ;;  %v4619_v58 = vpop.f32.mrb[14].mxu1  ;;  %v4759_v15 = vmax.f32 %v1756_v36, %v1760_v42  ;;  %v1874_v0 = vrot.slane %v4583_v31, 4  ;;  %v1886_v51 = vrot.slane %v4583_v31, 6  ;;  %v1738_v56 = vrot.slane %v4567_v28, 2 }
 0x17c   :  { %v4622_v60 = vpop.f32.mrb[15].mxu0  ;;  %v4624_v43 = vpop.f32.mrb[15].mxu1  ;;  %v1883_v27 = vmax.f32 %v1871_v46, %v1875_v61  ;;  %v4768_v16 = vmax.f32 %v1881_v45, %v1885_v55  ;;  %v1864_v19 = vrot.slane %v4581_v22, 2  ;;  %v1750_v31 = vrot.slane %v4567_v28, 4 }
 0x17d   :  { %v1882_v34 = vmax.f32 %v1870_v62, %v1874_v0  ;;  %v1746_v11 = vmax.f32 %v4567_v28, %v1738_v56  ;;  %v1876_v17 = vrot.slane %v4581_v22, 4  ;;  %v1987_v20 = vrot.slane %v4588_v37, 2 }
 0x17e   :  { %1398 = vrot.lane.b32.xlu0 %v4638_v5, %s4110_s0  ;;  %1528 = vrot.lane.b32.xlu1 %v4631_v1, %s4111_s19  ;;  %v4776_v24 = vmax.f32 %v1883_v27, %v1887_v63  ;;  %v1872_v3 = vmax.f32 %v4581_v22, %v1864_v19  ;;  %v1762_v23 = vrot.slane %v4567_v28, 6  ;;  %v1888_v8 = vrot.slane %v4581_v22, 6 }
 0x17f   :  { %v4785_v4 = vmax.f32 %v1882_v34, %v1886_v51  ;;  %v1758_v12 = vmax.f32 %v1746_v11, %v1750_v31  ;;  %v1995_v18 = vmax.f32 %v4588_v37, %v1987_v20  ;;  %v1999_v9 = vrot.slane %v4588_v37, 4 }
 0x180   :  { %v1884_v13 = vmax.f32 %v1872_v3, %v1876_v17  ;;  %v1989_v22 = vrot.slane %v4590_v38, 2  ;;  %v2011_v36 = vrot.slane %v4588_v37, 6  ;;  %v2001_v44 = vrot.slane %v4590_v38, 4 }
 0x181   :  { %v4806_v26 = vmax.f32 %v1758_v12, %v1762_v23  ;;  %v2007_v28 = vmax.f32 %v1995_v18, %v1999_v9  ;;  %v1988_v46 = vrot.slane %v4592_v40, 2  ;;  %v2013_v54 = vrot.slane %v4590_v38, 6 }
 0x182   :  { %1402 = vrot.lane.b32.xlu0 %v4638_v5, %s4111_s19  ;;  %1533 = vrot.lane.b32.xlu1 %v4655_v14, %s4109_s1  ;;  %v4809_v33 = vmax.f32 %v1884_v13, %v1888_v8  ;;  %v1997_v25 = vmax.f32 %v4590_v38, %v1989_v22  ;;  %v2113_v62 = vrot.slane %v4606_v50, 2  ;;  %v2000_v0 = vrot.slane %v4592_v40, 4 }
 0x183   :  { %v4823_v39 = vmax.f32 %v2007_v28, %v2011_v36  ;;  %v1996_v27 = vmax.f32 %v4592_v40, %v1988_v46  ;;  %v2115_v56 = vrot.slane %v4608_v52, 2  ;;  %v2012_v11 = vrot.slane %v4592_v40, 6 }
 0x184   :  { %5682 = vst [vmem:[#allocation7_spill] sm:$0xff] %v4809_v33  ;;  %v2009_v37 = vmax.f32 %v1997_v25, %v2001_v44  ;;  %v2121_v51 = vmax.f32 %v4606_v50, %v2113_v62  ;;  %v2125_v3 = vrot.slane %v4606_v50, 4  ;;  %v2114_v12 = vrot.slane %v4614_v53, 2 }
 0x185   :  { %5683 = vst [vmem:[#allocation8_spill] sm:$0xff] %v4823_v39  ;;  %v2008_v34 = vmax.f32 %v1996_v27, %v2000_v0  ;;  %v2123_v17 = vmax.f32 %v4608_v52, %v2115_v56  ;;  %v2137_v23 = vrot.slane %v4606_v50, 6  ;;  %v2127_v40 = vrot.slane %v4608_v52, 4 }
 0x186   :  { %1420 = vrot.lane.b32.xlu0 %v4601_v47, %s4109_s1  ;;  %1541 = vrot.lane.b32.xlu1 %v4655_v14, %s4111_s19  ;;  %v4846_v63 = vmax.f32 %v2009_v37, %v2013_v54  ;;  %v2133_v31 = vmax.f32 %v2121_v51, %v2125_v3  ;;  %v2122_v9 = vmax.f32 %v4614_v53, %v2114_v12  ;;  %v2139_v22 = vrot.slane %v4608_v52, 6 }
 0x187   :  { %v4867_v13 = vmax.f32 %v2008_v34, %v2012_v11  ;;  %v2135_v18 = vmax.f32 %v2123_v17, %v2127_v40  ;;  %v2126_v36 = vrot.slane %v4614_v53, 4  ;;  %v2138_v46 = vrot.slane %v4614_v53, 6 }
 0x188   :  { %5684 = vst [vmem:[#allocation9_spill] sm:$0xff] %v4846_v63  ;;  %v4880_v28 = vmax.f32 %v2133_v31, %v2137_v23  ;;  %v1990_v52 = vrot.slane %v4594_v41, 2  ;;  %v2116_v27 = vrot.slane %v4612_v48, 2  ;;  %v2002_v11 = vrot.slane %v4594_v41, 4 }
 0x189   :  { %5685 = vst [vmem:[#allocation10_spill] sm:$0xff] %v4867_v13  ;;  %v2134_v25 = vmax.f32 %v2122_v9, %v2126_v36  ;;  %v4892_v37 = vmax.f32 %v2135_v18, %v2139_v22  ;;  %v2128_v3 = vrot.slane %v4612_v48, 4  ;;  %v2239_v23 = vrot.slane %v4617_v57, 2 }
 0x18a   :  { %1428 = vrot.lane.b32.xlu0 %v4601_v47, %s4111_s19  ;;  %1559 = vrot.lane.b32.xlu1 %v4668_v29, %s4109_s1  ;;  %5686 = vst [vmem:[#allocation11_spill] sm:$0xff] %v4880_v28  ;;  %v1998_v53 = vmax.f32 %v4594_v41, %v1990_v52  ;;  %v2124_v51 = vmax.f32 %v4612_v48, %v2116_v27  ;;  %v2014_v18 = vrot.slane %v4594_v41, 6  ;;  %v2140_v9 = vrot.slane %v4612_v48, 6 }
 0x18b   :  { %5687 = vst [vmem:[#allocation12_spill] sm:$0xff] %v4892_v37  ;;  %v4905_v0 = vmax.f32 %v2134_v25, %v2138_v46  ;;  %v2247_v25 = vmax.f32 %v4617_v57, %v2239_v23  ;;  %v2251_v41 = vrot.slane %v4617_v57, 4 }
 0x18c   :  { %v2010_v31 = vmax.f32 %v1998_v53, %v2002_v11  ;;  %v2136_v12 = vmax.f32 %v2124_v51, %v2128_v3  ;;  %v2241_v53 = vrot.slane %v4619_v58, 2  ;;  %v2263_v11 = vrot.slane %v4617_v57, 6 }
 0x18d   :  { %5688 = vst [vmem:[#allocation13_spill] sm:$0xff] %v4905_v0  ;;  %v2259_v27 = vmax.f32 %v2247_v25, %v2251_v41  ;;  %v2240_v25 = vrot.slane %v4622_v60, 2 }
 0x18e   :  { %1520 = vrot.lane.b32.xlu0 %v4631_v1, %s4109_s1  ;;  %1563 = vrot.lane.b32.xlu1 %v4668_v29, %s4110_s0  ;;  %v4936_v36 = vmax.f32 %v2010_v31, %v2014_v18  ;;  %v4941_v52 = vmax.f32 %v2136_v12, %v2140_v9  ;;  %v2249_v31 = vmax.f32 %v4619_v58, %v2241_v53  ;;  %v2253_v18 = vrot.slane %v4619_v58, 4 }
 0x18f   :  { %v4961_v23 = vmax.f32 %v2259_v27, %v2263_v11  ;;  %v2265_v27 = vrot.slane %v4619_v58, 6  ;;  %v2248_v11 = vmax.f32 %v4622_v60, %v2240_v25 }
 0x190   :  { %5689 = vst [vmem:[#allocation14_spill] sm:$0xff] %v4936_v36  ;;  %5690 = vst [vmem:[#allocation15_spill] sm:$0xff] %v4941_v52  ;;  %v2261_v9 = vmax.f32 %v2249_v31, %v2253_v18  ;;  %v2252_v31 = vrot.slane %v4622_v60, 4 }
 0x191   :  { %5691 = vst [vmem:[#allocation16_spill] sm:$0xff] %v4961_v23 }
 0x192   :  { %1550 = vrot.lane.b32.xlu0 %v4641_v10, %s4110_s0  ;;  %1567 = vrot.lane.b32.xlu1 %v4668_v29, %s4111_s19  ;;  %v2260_v18 = vmax.f32 %v2248_v11, %v2252_v31  ;;  %v2254_v11 = vrot.slane %v4624_v43, 4 }
 0x196   :  { %1554 = vrot.lane.b32.xlu0 %v4641_v10, %s4111_s19  ;;  %1646 = vrot.lane.b32.xlu1 %v4689_v49, %s4109_s1 }
 0x19a   :  { %1537 = vrot.lane.b32.xlu0 %v4655_v14, %s4110_s0  ;;  %1672 = vrot.lane.b32.xlu1 %v4698_v59, %s4109_s1 }
 0x19e   :  { %1650 = vrot.lane.b32.xlu0 %v4689_v49, %s4110_s0  ;;  %1676 = vrot.lane.b32.xlu1 %v4698_v59, %s4110_s0 }
 0x1a2   :  { %1654 = vrot.lane.b32.xlu0 %v4689_v49, %s4111_s19  ;;  %1689 = vrot.lane.b32.xlu1 %v4715_v6, %s4110_s0 }
 0x1a6   :  { %1680 = vrot.lane.b32.xlu0 %v4698_v59, %s4111_s19  ;;  %1772 = vrot.lane.b32.xlu1 %v4724_v7, %s4109_s1 }
 0x1aa   :  { %1659 = vrot.lane.b32.xlu0 %v4732_v21, %s4109_s1  ;;  %1776 = vrot.lane.b32.xlu1 %v4724_v7, %s4110_s0 }
 0x1ae   :  { %1663 = vrot.lane.b32.xlu0 %v4732_v21, %s4110_s0  ;;  %1802 = vrot.lane.b32.xlu1 %v4742_v35, %s4110_s0 }
 0x1b2   :  { %1667 = vrot.lane.b32.xlu0 %v4732_v21, %s4111_s19  ;;  %1806 = vrot.lane.b32.xlu1 %v4742_v35, %s4111_s19 }
 0x1b6   :  { %1685 = vrot.lane.b32.xlu0 %v4715_v6, %s4109_s1  ;;  %1789 = vrot.lane.b32.xlu1 %v4759_v15, %s4110_s0 }
 0x1ba   :  { %1693 = vrot.lane.b32.xlu0 %v4715_v6, %s4111_s19  ;;  %1898 = vrot.lane.b32.xlu1 %v4768_v16, %s4109_s1 }
 0x1be   :  { %1798 = vrot.lane.b32.xlu0 %v4742_v35, %s4109_s1  ;;  %1932 = vrot.lane.b32.xlu1 %v4776_v24, %s4111_s19 }
 0x1c2   :  { %1780 = vrot.lane.b32.xlu0 %v4724_v7, %s4111_s19  ;;  %1911 = vrot.lane.b32.xlu1 %v4785_v4, %s4109_s1 }
 0x1c6   :  { %1785 = vrot.lane.b32.xlu0 %v4759_v15, %s4109_s1  ;;  %1915 = vrot.lane.b32.xlu1 %v4785_v4, %s4110_s0 }
 0x1ca   :  { %1793 = vrot.lane.b32.xlu0 %v4759_v15, %s4111_s19  ;;  %1919 = vrot.lane.b32.xlu1 %v4785_v4, %s4111_s19 }
 0x1ce   :  { %1811 = vrot.lane.b32.xlu0 %v4806_v26, %s4109_s1  ;;  %1937 = vrot.lane.b32.xlu1 %v4809_v33, %s4109_s1 }
 0x1d2   :  { %1815 = vrot.lane.b32.xlu0 %v4806_v26, %s4110_s0  ;;  %1945 = vrot.lane.b32.xlu1 %v4809_v33, %s4111_s19 }
 0x1d6   :  { %1819 = vrot.lane.b32.xlu0 %v4806_v26, %s4111_s19  ;;  %2028 = vrot.lane.b32.xlu1 %v4823_v39, %s4110_s0 }
 0x1da   :  { %1902 = vrot.lane.b32.xlu0 %v4768_v16, %s4110_s0  ;;  %2032 = vrot.lane.b32.xlu1 %v4823_v39, %s4111_s19 }
 0x1dc   :  { %v4827_v42 = vpop.permute.xlu1 %1407  ;;  %v4832_v45 = vpop.permute.xlu0 %1381 }
 0x1de   :  { %1924 = vrot.lane.b32.xlu0 %v4776_v24, %s4109_s1  ;;  %2054 = vrot.lane.b32.xlu1 %v4846_v63, %s4110_s0 }
 0x1e0   :  { %v4840_v55 = vpop.permute.xlu1 %1411  ;;  %v4842_v61 = vpop.permute.xlu0 %1385 }
 0x1e2   :  { %1906 = vrot.lane.b32.xlu0 %v4768_v16, %s4111_s19  ;;  %2058 = vrot.lane.b32.xlu1 %v4846_v63, %s4111_s19 }
 0x1e4   :  { %v4853_v38 = vpop.permute.xlu0 %1389  ;;  %v4859_v19 = vpop.permute.xlu1 %1424 }
 0x1e6   :  { %1928 = vrot.lane.b32.xlu0 %v4776_v24, %s4110_s0  ;;  %2041 = vrot.lane.b32.xlu1 %v4867_v13, %s4110_s0 }
 0x1e8   :  { %v4871_v20 = vpop.permute.xlu0 %1415  ;;  %v4877_v8 = vpop.permute.xlu1 %1524 }
 0x1ea   :  { %1941 = vrot.lane.b32.xlu0 %v4809_v33, %s4110_s0  ;;  %2150 = vrot.lane.b32.xlu1 %v4880_v28, %s4109_s1 }
 0x1ec   :  { %v4888_v50 = vpop.permute.xlu0 %1394  ;;  %v4890_v44 = vpop.permute.xlu1 %1546 }
 0x1ee   :  { %2024 = vrot.lane.b32.xlu0 %v4823_v39, %s4109_s1  ;;  %2184 = vrot.lane.b32.xlu1 %v4892_v37, %s4111_s19 }
 0x1f0   :  { %v4900_v54 = vpop.permute.xlu0 %1398  ;;  %v4903_v62 = vpop.permute.xlu1 %1528 }
 0x1f2   :  { %2050 = vrot.lane.b32.xlu0 %v4846_v63, %s4109_s1  ;;  %2163 = vrot.lane.b32.xlu1 %v4905_v0, %s4109_s1 }
 0x1f4   :  { %v4912_v34 = vpop.permute.xlu0 %1402  ;;  %v4915_v56 = vpop.permute.xlu1 %1533 }
 0x1f6   :  { %2037 = vrot.lane.b32.xlu0 %v4867_v13, %s4109_s1  ;;  %2167 = vrot.lane.b32.xlu1 %v4905_v0, %s4110_s0 }
 0x1f8   :  { %v4923_v17 = vpop.permute.xlu0 %1420  ;;  %v4926_v40 = vpop.permute.xlu1 %1541 }
 0x1fa   :  { %2045 = vrot.lane.b32.xlu0 %v4867_v13, %s4111_s19  ;;  %2171 = vrot.lane.b32.xlu1 %v4905_v0, %s4111_s19  ;;  %v4983_v0 = vmax.f32 %v2261_v9, %v2265_v27  ;;  %v2264_v9 = vrot.slane %v4622_v60, 6 }
 0x1fc   :  { %v4934_v22 = vpop.permute.xlu0 %1428  ;;  %v4939_v46 = vpop.permute.xlu1 %1559  ;;  %v5005_v13 = vmax.f32 %v2260_v18, %v2264_v9 }
 0x1fe   :  { %2063 = vrot.lane.b32.xlu0 %v4936_v36, %s4109_s1  ;;  %2189 = vrot.lane.b32.xlu1 %v4941_v52, %s4109_s1 }
 0x200   :  { %v1521_v48 = vpop.permute.xlu0 %1520  ;;  %v4949_v51 = vpop.permute.xlu1 %1563 }
 0x202   :  { %2067 = vrot.lane.b32.xlu0 %v4936_v36, %s4110_s0  ;;  %2197 = vrot.lane.b32.xlu1 %v4941_v52, %s4111_s19 }
 0x204   :  { %v4956_v3 = vpop.permute.xlu0 %1550  ;;  %v4959_v12 = vpop.permute.xlu1 %1567 }
 0x206   :  { %2071 = vrot.lane.b32.xlu0 %v4936_v36, %s4111_s19  ;;  %2276 = vrot.lane.b32.xlu1 %v4961_v23, %s4109_s1  ;;  %v2242_v36 = vrot.slane %v4624_v43, 2 }
 0x208   :  { %v4968_v57 = vpop.permute.xlu0 %1554  ;;  %v4971_v41 = vpop.permute.xlu1 %1646  ;;  %v2250_v27 = vmax.f32 %v4624_v43, %v2242_v36  ;;  %v2266_v36 = vrot.slane %v4624_v43, 6 }
 0x20a   :  { %2154 = vrot.lane.b32.xlu0 %v4880_v28, %s4110_s0  ;;  %2280 = vrot.lane.b32.xlu1 %v4961_v23, %s4110_s0  ;;  %v2262_v31 = vmax.f32 %v2250_v27, %v2254_v11  ;;  %v1523_v11 = vmax.f32 %v4631_v1, %v1521_v48  ;;  %v1410_v1 = vmax.f32 %v4569_v30, %v4827_v42 }
 0x20c   :  { %v4978_v53 = vpop.permute.xlu0 %1537  ;;  %v4981_v2 = vpop.permute.xlu1 %1672 }
 0x20e   :  { %2176 = vrot.lane.b32.xlu0 %v4892_v37, %s4109_s1  ;;  %2302 = vrot.lane.b32.xlu1 %v4983_v0, %s4109_s1 }
 0x210   :  { %v4990_v58 = vpop.permute.xlu0 %1650  ;;  %v4993_v39 = vpop.permute.xlu1 %1676 }
 0x212   :  { %2158 = vrot.lane.b32.xlu0 %v4880_v28, %s4111_s19  ;;  %2284 = vrot.lane.b32.xlu1 %v4961_v23, %s4111_s19 }
 0x214   :  { %v5000_v25 = vpop.permute.xlu0 %1654  ;;  %v5003_v33 = vpop.permute.xlu1 %1689 }
 0x216   :  { %2180 = vrot.lane.b32.xlu0 %v4892_v37, %s4110_s0  ;;  %2289 = vrot.lane.b32.xlu1 %v5005_v13, %s4109_s1  ;;  %v5025_v37 = vmax.f32 %v2262_v31, %v2266_v36  ;;  %v1384_v31 = vmax.f32 %v4573_v32, %v4832_v45  ;;  %v1549_v45 = vmax.f32 %v4641_v10, %v4890_v44 }
 0x217   :  { %v1397_v44 = vmax.f32 %v4638_v5, %v4888_v50 }
 0x218   :  { %v5012_v60 = vpop.permute.xlu0 %1680  ;;  %v5014_v23 = vpop.permute.xlu1 %1772  ;;  %v1388_v63 = vmax.f32 %v1384_v31, %v4842_v61  ;;  %v1553_v30 = vmax.f32 %v1549_v45, %v4956_v3  ;;  %v1562_v31 = vmax.f32 %v4668_v29, %v4939_v46  ;;  %v1649_v29 = vmax.f32 %v4689_v49, %v4971_v41 }
 0x219   :  { %v1401_v3 = vmax.f32 %v1397_v44, %v4900_v54  ;;  %v1775_v46 = vmax.f32 %v4724_v7, %v5014_v23  ;;  %v1675_v49 = vmax.f32 %v4698_v59, %v4981_v2 }
 0x21a   :  { %2193 = vrot.lane.b32.xlu0 %v4941_v52, %s4110_s0  ;;  %2297 = vrot.lane.b32.xlu1 %v5005_v13, %s4111_s19  ;;  %v1527_v52 = vmax.f32 %v1523_v11, %v4877_v8  ;;  %v5055_v48 = vmax.f32 %v1388_v63, %v4853_v38  ;;  %v1414_v11 = vmax.f32 %v1410_v1, %v4840_v55 }
 0x21b   :  { %v1557_v10 = vmax.f32 %v1553_v30, %v4968_v57  ;;  %v1536_v55 = vmax.f32 %v4655_v14, %v4915_v56  ;;  %v1405_v57 = vmax.f32 %v1401_v3, %v4912_v34  ;;  %v1423_v14 = vmax.f32 %v4601_v47, %v4923_v17 }
 0x21c   :  { %v5021_v18 = vpop.permute.xlu0 %1659  ;;  %v5023_v9 = vpop.permute.xlu1 %1776  ;;  %v5064_v61 = vmax.f32 %v1527_v52, %v4903_v62  ;;  %v1418_v42 = vmax.f32 %v1414_v11, %v4871_v20  ;;  %v1566_v47 = vmax.f32 %v1562_v31, %v4949_v51 }
 0x21d   :  { %v1540_v20 = vmax.f32 %v1536_v55, %v4978_v53  ;;  %v1427_v54 = vmax.f32 %v1423_v14, %v4859_v19 }
 0x21e   :  { %2306 = vrot.lane.b32.xlu0 %v4983_v0, %s4110_s0  ;;  %2315 = vrot.lane.b32.xlu1 %v5025_v37, %s4109_s1  ;;  %v1570_v1 = vmax.f32 %v1566_v47, %v4959_v12  ;;  %v1779_v12 = vmax.f32 %v1775_v46, %v5023_v9  ;;  %v5692_v47 = vld [vmem:[#allocation9_spill] sm:$0xff] }
 0x21f   :  { %v1544_v5 = vmax.f32 %v1540_v20, %v4926_v40  ;;  %v1431_v17 = vmax.f32 %v1427_v54, %v4934_v22  ;;  %v1653_v22 = vmax.f32 %v1649_v29, %v4990_v58  ;;  %v1679_v58 = vmax.f32 %v1675_v49, %v4993_v39  ;;  %v5693_v29 = vld [vmem:[#allocation10_spill] sm:$0xff] }
 0x220   :  { %v5031_v27 = vpop.permute.xlu0 %1663  ;;  %v5034_v43 = vpop.permute.xlu1 %1802  ;;  %v1662_v39 = vmax.f32 %v4732_v21, %v5021_v18 }
 0x221   :  { %v5124_v41 = vmax.f32 %v1653_v22, %v5000_v25  ;;  %v1683_v2 = vmax.f32 %v1679_v58, %v5012_v60  ;;  %v5695_v58 = vld [vmem:[#allocation8_spill] sm:$0xff] }
 0x222   :  { %2310 = vrot.lane.b32.xlu0 %v4983_v0, %s4111_s19  ;;  %2319 = vrot.lane.b32.xlu1 %v5025_v37, %s4110_s0  ;;  %v1666_v60 = vmax.f32 %v1662_v39, %v5031_v27 }
 0x224   :  { %v5042_v36 = vpop.permute.xlu0 %1667  ;;  %v5045_v28 = vpop.permute.xlu1 %1806 }
 0x226   :  { %2293 = vrot.lane.b32.xlu0 %v5005_v13, %s4110_s0  ;;  %2323 = vrot.lane.b32.xlu1 %v5025_v37, %s4111_s19 }
 0x228   :  { %v5057_v32 = vpop.permute.xlu0 %1685  ;;  %v5061_v8 = vpop.permute.xlu1 %1789 }
 0x22a   :  { %1433 = vrot.lane.b32.xlu0 %v5055_v48, %s4111_s19  ;;  %1572 = vrot.lane.b32.xlu1 %v5064_v61, %s4111_s19 }
 0x22c   :  { %v5073_v63 = vpop.permute.xlu0 %1693  ;;  %v5076_v38 = vpop.permute.xlu1 %1898 }
 0x22d   :  { %v1901_v27 = vmax.f32 %v4768_v16, %v5076_v38 }
 0x22e   :  { %1444 = vrot.lane.b32.xlu0 %v1418_v42, %s4112_s20  ;;  %1583 = vrot.lane.b32.xlu1 %v1557_v10, %s4112_s20 }
 0x230   :  { %v1799_v62 = vpop.permute.xlu0 %1798  ;;  %v5085_v52 = vpop.permute.xlu1 %1932 }
 0x231   :  { %v1801_v51 = vmax.f32 %v4742_v35, %v1799_v62 }
 0x232   :  { %1447 = vrot.lane.b32.xlu0 %v1418_v42, %s4113_s21  ;;  %1586 = vrot.lane.b32.xlu1 %v1557_v10, %s4113_s21 }
 0x233   :  { %v1805_v35 = vmax.f32 %v1801_v51, %v5034_v43  ;;  %v5694_v51 = vld [vmem:[#allocation7_spill] sm:$0xff] }
 0x234   :  { %v1781_v56 = vpop.permute.xlu0 %1780  ;;  %v5094_v50 = vpop.permute.xlu1 %1911 }
 0x235   :  { %v5127_v23 = vmax.f32 %v1779_v12, %v1781_v56  ;;  %v1809_v25 = vmax.f32 %v1805_v35, %v5045_v28  ;;  %v1688_v28 = vmax.f32 %v4715_v6, %v5057_v32  ;;  %v1914_v3 = vmax.f32 %v4785_v4, %v5094_v50 }
 0x236   :  { %1437 = vrot.lane.b32.xlu0 %v1405_v57, %s4114_s22  ;;  %1576 = vrot.lane.b32.xlu1 %v1544_v5, %s4114_s22 }
 0x237   :  { %v1692_v21 = vmax.f32 %v1688_v28, %v5003_v33 }
 0x238   :  { %v1786_v53 = vpop.permute.xlu0 %1785  ;;  %v5101_v34 = vpop.permute.xlu1 %1915 }
 0x239   :  { %v1788_v9 = vmax.f32 %v4759_v15, %v1786_v53  ;;  %v1670_v15 = vmax.f32 %v1666_v60, %v5042_v36  ;;  %v1696_v6 = vmax.f32 %v1692_v21, %v5073_v63  ;;  %v1918_v33 = vmax.f32 %v1914_v3, %v5101_v34 }
 0x23a   :  { %1440 = vrot.lane.b32.xlu0 %v1405_v57, %s4109_s1  ;;  %1579 = vrot.lane.b32.xlu1 %v1544_v5, %s4109_s1 }
 0x23b   :  { %v1792_v10 = vmax.f32 %v1788_v9, %v5061_v8 }
 0x23c   :  { %v1794_v40 = vpop.permute.xlu0 %1793  ;;  %v1920_v45 = vpop.permute.xlu1 %1919 }
 0x23d   :  { %v1796_v62 = vmax.f32 %v1792_v10, %v1794_v40  ;;  %v1922_v56 = vmax.f32 %v1918_v33, %v1920_v45 }
 0x23e   :  { %1451 = vrot.lane.b32.xlu0 %v1431_v17, %s4110_s0  ;;  %1590 = vrot.lane.b32.xlu1 %v1570_v1, %s4110_s0 }
 0x240   :  { %v1812_v19 = vpop.permute.xlu0 %1811  ;;  %v5115_v11 = vpop.permute.xlu1 %1937 }
 0x241   :  { %v1814_v16 = vmax.f32 %v4806_v26, %v1812_v19  ;;  %v1940_v22 = vmax.f32 %v5694_v51, %v5115_v11 }
 0x242   :  { %1454 = vrot.lane.b32.xlu0 %v1431_v17, %s4115_s23  ;;  %1593 = vrot.lane.b32.xlu1 %v1570_v1, %s4115_s23 }
 0x244   :  { %v1816_v7 = vpop.permute.xlu0 %1815  ;;  %v5129_v30 = vpop.permute.xlu1 %1945 }
 0x245   :  { %v1818_v63 = vmax.f32 %v1814_v16, %v1816_v7  ;;  %v5699_v16 = vld [vmem:[#allocation12_spill] sm:$0xff] }
 0x246   :  { %1698 = vrot.lane.b32.xlu0 %v5124_v41, %s4111_s19  ;;  %1824 = vrot.lane.b32.xlu1 %v5127_v23, %s4111_s19 }
 0x248   :  { %v1820_v59 = vpop.permute.xlu0 %1819  ;;  %v5139_v43 = vpop.permute.xlu1 %2028 }
 0x249   :  { %v5174_v4 = vmax.f32 %v1818_v63, %v1820_v59 }
 0x24a   :  { %1709 = vrot.lane.b32.xlu0 %v1683_v2, %s4112_s20  ;;  %1835 = vrot.lane.b32.xlu1 %v1809_v25, %s4112_s20 }
 0x24c   :  { %v1903_v42 = vpop.permute.xlu0 %1902  ;;  %v5146_v55 = vpop.permute.xlu1 %2032 }
 0x24d   :  { %v1905_v36 = vmax.f32 %v1901_v27, %v1903_v42  ;;  %v5696_v42 = vld [vmem:[#allocation14_spill] sm:$0xff] }
 0x24e   :  { %1712 = vrot.lane.b32.xlu0 %v1683_v2, %s4113_s21  ;;  %1838 = vrot.lane.b32.xlu1 %v1809_v25, %s4113_s21 }
 0x250   :  { %v1925_v44 = vpop.permute.xlu0 %1924  ;;  %v2055_v20 = vpop.permute.xlu1 %2054 }
 0x251   :  { %v1927_v54 = vmax.f32 %v4776_v24, %v1925_v44 }
 0x252   :  { %1702 = vrot.lane.b32.xlu0 %v1670_v15, %s4114_s22  ;;  %1828 = vrot.lane.b32.xlu1 %v1796_v62, %s4114_s22 }
 0x254   :  { %v1907_v18 = vpop.permute.xlu0 %1906  ;;  %v2059_v8 = vpop.permute.xlu1 %2058 }
 0x255   :  { %v5164_v57 = vmax.f32 %v1905_v36, %v1907_v18  ;;  %v5697_v18 = vld [vmem:[#allocation11_spill] sm:$0xff] }
 0x256   :  { %1705 = vrot.lane.b32.xlu0 %v1670_v15, %s4109_s1  ;;  %1831 = vrot.lane.b32.xlu1 %v1796_v62, %s4109_s1 }
 0x258   :  { %v1929_v32 = vpop.permute.xlu0 %1928  ;;  %v2042_v14 = vpop.permute.xlu1 %2041 }
 0x259   :  { %v1931_v50 = vmax.f32 %v1927_v54, %v1929_v32  ;;  %v5700_v54 = vld [vmem:[#allocation16_spill] sm:$0xff] }
 0x25a   :  { %1716 = vrot.lane.b32.xlu0 %v1696_v6, %s4110_s0  ;;  %1950 = vrot.lane.b32.xlu1 %v5164_v57, %s4111_s19 }
 0x25b   :  { %v1935_v26 = vmax.f32 %v1931_v50, %v5085_v52 }
 0x25c   :  { %v1942_v38 = vpop.permute.xlu0 %1941  ;;  %v2151_v5 = vpop.permute.xlu1 %2150 }
 0x25d   :  { %v1944_v52 = vmax.f32 %v1940_v22, %v1942_v38  ;;  %v2153_v27 = vmax.f32 %v5697_v18, %v2151_v5 }
 0x25e   :  { %1719 = vrot.lane.b32.xlu0 %v1696_v6, %s4115_s23  ;;  %1954 = vrot.lane.b32.xlu1 %v1922_v56, %s4114_s22  ;;  %v5698_v6 = vld [vmem:[#allocation13_spill] sm:$0xff] }
 0x25f   :  { %v1948_v35 = vmax.f32 %v1944_v52, %v5129_v30 }
 0x260   :  { %v2025_v53 = vpop.permute.xlu0 %2024  ;;  %v2185_v31 = vpop.permute.xlu1 %2184 }
 0x261   :  { %v2027_v2 = vmax.f32 %v5695_v58, %v2025_v53 }
 0x262   :  { %1842 = vrot.lane.b32.xlu0 %v5174_v4, %s4110_s0 }
 0x263   :  { %v2031_v11 = vmax.f32 %v2027_v2, %v5139_v43 }
 0x264   :  { %v2051_v34 = vpop.permute.xlu0 %2050  ;;  %v2164_v40 = vpop.permute.xlu1 %2163 }
 0x265   :  { %v2053_v17 = vmax.f32 %v5692_v47, %v2051_v34  ;;  %v5196_v30 = vmax.f32 %v2031_v11, %v5146_v55  ;;  %v2166_v32 = vmax.f32 %v5698_v6, %v2164_v40  ;;  %v5253_v6 = vld [vmem:[%s5662_s2] ss:$0 sm:$0xff] }
 0x266   :  { %1961 = vrot.lane.b32.xlu0 %v1935_v26, %s4112_s20 }
 0x267   :  { %v2057_v24 = vmax.f32 %v2053_v17, %v2055_v20 }
 0x268   :  { %v2038_v1 = vpop.permute.xlu0 %2037  ;;  %v2168_v46 = vpop.permute.xlu1 %2167 }
 0x269   :  { %v2061_v45 = vmax.f32 %v2057_v24, %v2059_v8  ;;  %v2040_v19 = vmax.f32 %v5693_v29, %v2038_v1  ;;  %v2170_v33 = vmax.f32 %v2166_v32, %v2168_v46  ;;  %v5701_v1 = vld [vmem:[#allocation15_spill] sm:$0xff] }
 0x26a   :  { %1964 = vrot.lane.b32.xlu0 %v1935_v26, %s4113_s21 }
 0x26b   :  { %2087 = vrot.lane.b32.xlu1 %v2061_v45, %s4112_s20  ;;  %v2044_v49 = vmax.f32 %v2040_v19, %v2042_v14 }
 0x26c   :  { %v2046_v12 = vpop.permute.xlu0 %2045  ;;  %v2172_v7 = vpop.permute.xlu1 %2171 }
 0x26d   :  { %v2048_v25 = vmax.f32 %v2044_v49, %v2046_v12  ;;  %v2174_v63 = vmax.f32 %v2170_v33, %v2172_v7 }
 0x26e   :  { %1957 = vrot.lane.b32.xlu0 %v1922_v56, %s4109_s1 }
 0x26f   :  { %2090 = vrot.lane.b32.xlu1 %v2061_v45, %s4113_s21 }
 0x270   :  { %v2064_v59 = vpop.permute.xlu0 %2063  ;;  %v2190_v9 = vpop.permute.xlu1 %2189 }
 0x271   :  { %v2066_v10 = vmax.f32 %v5696_v42, %v2064_v59  ;;  %v2192_v45 = vmax.f32 %v5701_v1, %v2190_v9  ;;  %v4116_v42 = vmov 0.0  }
 0x272   :  { %1968 = vrot.lane.b32.xlu0 %v1948_v35, %s4110_s0  ;;  %2366 = vst.msk [vmem:[#allocation2 + $0x28] sm:$0xc] %vm2365_vm5, %v4116_v42  ;;  %2361 = vst [vmem:[#allocation2] sm:$0x3] %v4116_v42  ;;  %3725 = vmatprep.subr.bf16.mxu1 %v4116_v42 }
 0x273   :  { %2083 = vrot.lane.b32.xlu1 %v2048_v25, %s4109_s1  ;;  %2364 = vst [vmem:[#allocation2 + $0x20] sm:$0xc] %v4116_v42  ;;  %2363 = vst.msk [vmem:[#allocation2 + $0x8] sm:$0x3] %vm2362_vm13, %v4116_v42 }
 0x274   :  { %v2068_v39 = vpop.permute.xlu0 %2067  ;;  %v2198_v60 = vpop.permute.xlu1 %2197  ;;  %2945 = vst.msk [vmem:[#allocation3] sm:$0x3] %vm2944_vm0, %v4116_v42  ;;  %2946 = vst.msk [vmem:[#allocation3 + $0xa] sm:$0x3] %vm2944_vm0, %v4116_v42 }
 0x275   :  { %v2070_v15 = vmax.f32 %v2066_v10, %v2068_v39 }
 0x276   :  { %1971 = vrot.lane.b32.xlu0 %v1948_v35, %s4115_s23 }
 0x278   :  { %v2072_v28 = vpop.permute.xlu0 %2071  ;;  %v2277_v62 = vpop.permute.xlu1 %2276 }
 0x279   :  { %v2074_v44 = vmax.f32 %v2070_v15, %v2072_v28  ;;  %v2279_v50 = vmax.f32 %v5700_v54, %v2277_v62 }
 0x27a   :  { %2076 = vrot.lane.b32.xlu0 %v5196_v30, %s4111_s19 }
 0x27b   :  { %2094 = vrot.lane.b32.xlu1 %v2074_v44, %s4110_s0 }
 0x27c   :  { %v2155_v20 = vpop.permute.xlu0 %2154  ;;  %v2281_v43 = vpop.permute.xlu1 %2280 }
 0x27d   :  { %v2157_v55 = vmax.f32 %v2153_v27, %v2155_v20  ;;  %v2283_v26 = vmax.f32 %v2279_v50, %v2281_v43 }
 0x27e   :  { %2080 = vrot.lane.b32.xlu0 %v2048_v25, %s4114_s22 }
 0x27f   :  { %2097 = vrot.lane.b32.xlu1 %v2074_v44, %s4115_s23 }
 0x280   :  { %v2177_v21 = vpop.permute.xlu0 %2176  ;;  %v2303_v8 = vpop.permute.xlu1 %2302 }
 0x281   :  { %v2179_v38 = vmax.f32 %v5699_v16, %v2177_v21  ;;  %v2305_v29 = vmax.f32 %v4983_v0, %v2303_v8 }
 0x284   :  { %v2159_v36 = vpop.permute.xlu0 %2158  ;;  %v2285_v14 = vpop.permute.xlu1 %2284 }
 0x285   :  { %v5205_v3 = vmax.f32 %v2157_v55, %v2159_v36  ;;  %v5212_v17 = vmax.f32 %v2283_v26, %v2285_v14 }
 0x287   :  { %2202 = vrot.lane.b32.xlu1 %v5205_v3, %s4111_s19 }
 0x288   :  { %v2181_v56 = vpop.permute.xlu0 %2180  ;;  %v2290_v5 = vpop.permute.xlu1 %2289 }
 0x289   :  { %v2183_v53 = vmax.f32 %v2179_v38, %v2181_v56  ;;  %v2292_v12 = vmax.f32 %v5005_v13, %v2290_v5 }
 0x28b   :  { %v2187_v34 = vmax.f32 %v2183_v53, %v2185_v31  ;;  %2206 = vrot.lane.b32.xlu1 %v2174_v63, %s4114_s22 }
 0x28c   :  { %v2194_v47 = vpop.permute.xlu0 %2193  ;;  %v2298_v40 = vpop.permute.xlu1 %2297 }
 0x28d   :  { %2213 = vrot.lane.b32.xlu0 %v2187_v34, %s4112_s20  ;;  %v2196_v31 = vmax.f32 %v2192_v45, %v2194_v47 }
 0x28f   :  { %2328 = vrot.lane.b32.xlu1 %v5212_v17, %s4111_s19  ;;  %v2200_v49 = vmax.f32 %v2196_v31, %v2198_v60 }
 0x290   :  { %v2307_v24 = vpop.permute.xlu0 %2306  ;;  %v2316_v19 = vpop.permute.xlu1 %2315 }
 0x291   :  { %2216 = vrot.lane.b32.xlu0 %v2187_v34, %s4113_s21  ;;  %v2309_v46 = vmax.f32 %v2305_v29, %v2307_v24  ;;  %v2318_v13 = vmax.f32 %v5025_v37, %v2316_v19 }
 0x294   :  { %v2311_v51 = vpop.permute.xlu0 %2310  ;;  %v2320_v52 = vpop.permute.xlu1 %2319 }
 0x295   :  { %v2313_v22 = vmax.f32 %v2309_v46, %v2311_v51  ;;  %2209 = vrot.lane.b32.xlu0 %v2174_v63, %s4109_s1  ;;  %v2322_v11 = vmax.f32 %v2318_v13, %v2320_v52 }
 0x297   :  { %2339 = vrot.lane.b32.xlu1 %v2313_v22, %s4112_s20 }
 0x298   :  { %v2294_v7 = vpop.permute.xlu0 %2293  ;;  %v2324_v58 = vpop.permute.xlu1 %2323 }
 0x299   :  { %v2296_v35 = vmax.f32 %v2292_v12, %v2294_v7  ;;  %2220 = vrot.lane.b32.xlu0 %v2200_v49, %s4110_s0  ;;  %v2326_v37 = vmax.f32 %v2322_v11, %v2324_v58 }
 0x29b   :  { %2342 = vrot.lane.b32.xlu1 %v2313_v22, %s4113_s21  ;;  %v2300_v2 = vmax.f32 %v2296_v35, %v2298_v40 }
 0x29c   :  { %v1434_v0 = vpop.permute.xlu0 %1433  ;;  %v1573_v59 = vpop.permute.xlu1 %1572 }
 0x29d   :  { %2223 = vrot.lane.b32.xlu0 %v2200_v49, %s4115_s23  ;;  %v1458_v15 = vsel %vm1457_vm6, %v5055_v48, %v1434_v0  ;;  %v1596_v28 = vsel %vm1457_vm6, %v5064_v61, %v1573_v59 }
 0x29f   :  { %2332 = vrot.lane.b32.xlu1 %v2300_v2, %s4114_s22 }
 0x2a0   :  { %v1445_v25 = vpop.permute.xlu0 %1444  ;;  %v1584_v9 = vpop.permute.xlu1 %1583 }
 0x2a1   :  { %1845 = vrot.lane.b32.xlu0 %v5174_v4, %s4115_s23 }
 0x2a3   :  { %2335 = vrot.lane.b32.xlu1 %v2300_v2, %s4109_s1 }
 0x2a4   :  { %v1448_v39 = vpop.permute.xlu0 %1447  ;;  %v1587_v10 = vpop.permute.xlu1 %1586 }
 0x2a7   :  { %2346 = vrot.lane.b32.xlu1 %v2326_v37, %s4110_s0 }
 0x2a8   :  { %v1438_v4 = vpop.permute.xlu0 %1437  ;;  %v1577_v60 = vpop.permute.xlu1 %1576 }
 0x2a9   :  { %v1460_v44 = vsel %vm1459_vm7, %v1458_v15, %v1438_v4  ;;  %v1597_v20 = vsel %vm1459_vm7, %v1596_v28, %v1577_v60 }
 0x2ab   :  { %2349 = vrot.lane.b32.xlu1 %v2326_v37, %s4115_s23 }
 0x2ac   :  { %v1441_v62 = vpop.permute.xlu0 %1440  ;;  %v1580_v21 = vpop.permute.xlu1 %1579 }
 0x2ad   :  { %v1462_v43 = vsel %vm1461_vm8, %v1460_v44, %v1441_v62  ;;  %v1598_v27 = vsel %vm1461_vm8, %v1597_v20, %v1580_v21 }
 0x2ae   :  { %v1464_v18 = vsel %vm1463_vm9, %v1462_v43, %v1445_v25  ;;  %v1599_v48 = vsel %vm1463_vm9, %v1598_v27, %v1584_v9 }
 0x2af   :  { %v1466_v55 = vsel %vm1465_vm10, %v1464_v18, %v1448_v39  ;;  %v1600_v36 = vsel %vm1465_vm10, %v1599_v48, %v1587_v10 }
 0x2b0   :  { %v1452_v8 = vpop.permute.xlu0 %1451  ;;  %v1591_v61 = vpop.permute.xlu1 %1590 }
 0x2b1   :  { %v1468_v32 = vsel %vm1467_vm11, %v1466_v55, %v1452_v8  ;;  %v1601_v33 = vsel %vm1467_vm11, %v1600_v36, %v1591_v61 }
 0x2b4   :  { %v1455_v14 = vpop.permute.xlu0 %1454  ;;  %v1594_v38 = vpop.permute.xlu1 %1593 }
 0x2b5   :  { %v1470_v16 = vsel %vm1469_vm12, %v1468_v32, %v1455_v14  ;;  %v1602_v63 = vsel %vm1469_vm12, %v1601_v33, %v1594_v38  ;;  %v4028_v33 = vld [vmem:[%s5663_s3 + $0x50] sm:$0xff]  }
 0x2b6   :  { %v1477_v56 = vadd.f32 %v5253_v6, %v1470_v16  ;;  %v1603_v54 = vadd.f32 %v5253_v6, %v1602_v63  ;;  %2599 = vmatpush1.bf16.msra.mxu0 %v4028_v33 }
 0x2b8   :  { %v1478_v50 = vmax.f32 %v1477_v56, 0.0  ;;  %v1699_v53 = vpop.permute.xlu0 %1698  ;;  %v1604_v5 = vmax.f32 %v1603_v54, 0.0  ;;  %v1825_v26 = vpop.permute.xlu1 %1824  ;;  %v4029_v56 = vld [vmem:[%s5663_s3 + $0x58] sm:$0xff]   ;;  %v5702_v54 = vmov 0  }
 0x2b9   :  { %v1722_v29 = vsel %vm1457_vm6, %v5124_v41, %v1699_v53  ;;  %v1848_v19 = vsel %vm1457_vm6, %v5127_v23, %v1825_v26  ;;  %2600 = vmatprep.subr.bf16.mxu0 %v5702_v54  ;;  %v4030_v26 = vld [vmem:[%s5663_s3 + $0x60] sm:$0xff]  }
 0x2ba   :  { %2368 = vrot.lane.b32.xlu0 %v1478_v50, %s4113_s21  ;;  %2382 = vrot.lane.b32.xlu1 %v1604_v5, %s4113_s21 }
 0x2bb   :  { %2601 = vmatpush1.bf16.msra.mxu0 %v4029_v56 }
 0x2bc   :  { %v1710_v34 = vpop.permute.xlu0 %1709  ;;  %v1836_v47 = vpop.permute.xlu1 %1835  ;;  %2602 = vmatprep.subr.bf16.mxu0 %v5702_v54 }
 0x2bf   :  { %2603 = vmatpush1.bf16.msra.mxu0 %v4030_v26 }
 0x2c0   :  { %v1713_v40 = vpop.permute.xlu0 %1712  ;;  %v1839_v24 = vpop.permute.xlu1 %1838  ;;  %2604 = vmatprep.subr.bf16.mxu0 %v5702_v54 }
 0x2c4   :  { %v1703_v1 = vpop.permute.xlu0 %1702  ;;  %v1829_v45 = vpop.permute.xlu1 %1828 }
 0x2c5   :  { %v1723_v31 = vsel %vm1459_vm7, %v1722_v29, %v1703_v1  ;;  %v1849_v51 = vsel %vm1459_vm7, %v1848_v19, %v1829_v45 }
 0x2c8   :  { %v1706_v46 = vpop.permute.xlu0 %1705  ;;  %v1832_v52 = vpop.permute.xlu1 %1831 }
 0x2c9   :  { %v1724_v22 = vsel %vm1461_vm8, %v1723_v31, %v1706_v46  ;;  %v1850_v49 = vsel %vm1461_vm8, %v1849_v51, %v1832_v52 }
 0x2ca   :  { %v1725_v12 = vsel %vm1463_vm9, %v1724_v22, %v1710_v34  ;;  %v1851_v7 = vsel %vm1463_vm9, %v1850_v49, %v1836_v47 }
 0x2cb   :  { %v5274_v41 = vsel %vm1465_vm10, %v1851_v7, %v1839_v24  ;;  %v1726_v23 = vsel %vm1465_vm10, %v1725_v12, %v1713_v40  ;;  %v4031_v12 = vld [vmem:[%s5663_s3 + $0x68] sm:$0xff]  }
 0x2cc   :  { %v1717_v35 = vpop.permute.xlu0 %1716  ;;  %v1951_v9 = vpop.permute.xlu1 %1950  ;;  %2605 = vmatpush1.bf16.msra.mxu0 %v4031_v12 }
 0x2cd   :  { %v1727_v58 = vsel %vm1467_vm11, %v1726_v23, %v1717_v35  ;;  %v1974_v10 = vsel %vm1457_vm6, %v5164_v57, %v1951_v9  ;;  %2606 = vmatprep.subr.bf16.mxu0 %v5702_v54 }
 0x2d0   :  { %v1720_v0 = vpop.permute.xlu0 %1719  ;;  %v1955_v39 = vpop.permute.xlu1 %1954 }
 0x2d1   :  { %v1728_v2 = vsel %vm1469_vm12, %v1727_v58, %v1720_v0  ;;  %v1975_v60 = vsel %vm1459_vm7, %v1974_v10, %v1955_v39 }
 0x2d2   :  { %v1729_v59 = vadd.f32 %v5253_v6, %v1728_v2 }
 0x2d4   :  { %v1730_v25 = vmax.f32 %v1729_v59, 0.0  ;;  %v5280_v13 = vpop.permute.xlu0 %1842  ;;  %v4033_v59 = vld [vmem:[%s5663_s3 + $0x78] sm:$0xff]  }
 0x2d6   :  { %2397 = vrot.lane.b32.xlu0 %v1730_v25, %s4113_s21  ;;  %v1853_v25 = vsel %vm1467_vm11, %v5274_v41, %v5280_v13 }
 0x2d8   :  { %v1962_v11 = vpop.permute.xlu0 %1961 }
 0x2dc   :  { %v1965_v37 = vpop.permute.xlu0 %1964 }
 0x2dd   :  { %v2088_v4 = vpop.permute.xlu1 %2087 }
 0x2e0   :  { %v1958_v15 = vpop.permute.xlu0 %1957 }
 0x2e1   :  { %v1976_v28 = vsel %vm1461_vm8, %v1975_v60, %v1958_v15  ;;  %v2091_v20 = vpop.permute.xlu1 %2090  ;;  %v4034_v15 = vld [vmem:[%s5663_s3 + $0x80] sm:$0xff]  }
 0x2e2   :  { %v1977_v44 = vsel %vm1463_vm9, %v1976_v28, %v1962_v11 }
 0x2e3   :  { %v1978_v43 = vsel %vm1465_vm10, %v1977_v44, %v1965_v37  ;;  %v4035_v44 = vld [vmem:[%s5663_s3 + $0x88] sm:$0xff]  }
 0x2e4   :  { %v1969_v62 = vpop.permute.xlu0 %1968 }
 0x2e5   :  { %v1979_v21 = vsel %vm1467_vm11, %v1978_v43, %v1969_v62  ;;  %v2084_v48 = vpop.permute.xlu1 %2083 }
 0x2e8   :  { %v1972_v18 = vpop.permute.xlu0 %1971 }
 0x2e9   :  { %v1980_v57 = vsel %vm1469_vm12, %v1979_v21, %v1972_v18  ;;  %v4036_v21 = vld [vmem:[%s5663_s3 + $0x90] sm:$0xff]  }
 0x2ea   :  { %v1981_v27 = vadd.f32 %v5253_v6, %v1980_v57 }
 0x2ec   :  { %v1982_v8 = vmax.f32 %v1981_v27, 0.0  ;;  %v2077_v55 = vpop.permute.xlu0 %2076 }
 0x2ed   :  { %v2095_v61 = vpop.permute.xlu1 %2094  ;;  %v2100_v36 = vsel %vm1457_vm6, %v5196_v30, %v2077_v55 }
 0x2ee   :  { %2420 = vrot.lane.b32.xlu1 %v1982_v8, %s4113_s21 }
 0x2f0   :  { %v2081_v32 = vpop.permute.xlu0 %2080 }
 0x2f1   :  { %v2101_v14 = vsel %vm1459_vm7, %v2100_v36, %v2081_v32  ;;  %v2098_v50 = vpop.permute.xlu1 %2097 }
 0x2f2   :  { %v2102_v16 = vsel %vm1461_vm8, %v2101_v14, %v2084_v48  ;;  %v4037_v48 = vld [vmem:[%s5663_s3 + $0x98] sm:$0xff]  }
 0x2f3   :  { %v2103_v38 = vsel %vm1463_vm9, %v2102_v16, %v2088_v4 }
 0x2f4   :  { %v2104_v63 = vsel %vm1465_vm10, %v2103_v38, %v2091_v20 }
 0x2f5   :  { %v2105_v30 = vsel %vm1467_vm11, %v2104_v63, %v2095_v61 }
 0x2f6   :  { %v2106_v53 = vsel %vm1469_vm12, %v2105_v30, %v2098_v50 }
 0x2f7   :  { %v2107_v5 = vadd.f32 %v5253_v6, %v2106_v53 }
 0x2f9   :  { %v2108_v34 = vmax.f32 %v2107_v5, 0.0  ;;  %v2203_v47 = vpop.permute.xlu1 %2202 }
 0x2fa   :  { %v2226_v29 = vsel %vm1457_vm6, %v5205_v3, %v2203_v47  ;;  %v4032_v3 = vld [vmem:[%s5663_s3 + $0x70] sm:$0xff]  }
 0x2fb   :  { %2434 = vrot.lane.b32.xlu0 %v2108_v34, %s4113_s21  ;;  %2607 = vmatpush1.bf16.msra.mxu0 %v4032_v3 }
 0x2fc   :  { %2608 = vmatprep.subr.bf16.mxu0 %v5702_v54 }
 0x2fd   :  { %v2207_v40 = vpop.permute.xlu1 %2206 }
 0x2fe   :  { %v2227_v19 = vsel %vm1459_vm7, %v2226_v29, %v2207_v40 }
 0x2ff   :  { %v2214_v24 = vpop.permute.xlu0 %2213  ;;  %2609 = vmatpush1.bf16.msra.mxu0 %v4033_v59 }
 0x300   :  { %2610 = vmatprep.subr.bf16.mxu0 %v5702_v54 }
 0x301   :  { %v2329_v45 = vpop.permute.xlu1 %2328 }
 0x302   :  { %v2352_v39 = vsel %vm1457_vm6, %v5212_v17, %v2329_v45 }
 0x303   :  { %v2217_v1 = vpop.permute.xlu0 %2216  ;;  %2611 = vmatpush1.bf16.msra.mxu0 %v4034_v15 }
 0x304   :  { %2612 = vmatprep.subr.bf16.mxu0 %v5702_v54 }
 0x307   :  { %v2210_v31 = vpop.permute.xlu0 %2209  ;;  %2613 = vmatpush1.bf16.msra.mxu0 %v4035_v44 }
 0x308   :  { %v2228_v46 = vsel %vm1461_vm8, %v2227_v19, %v2210_v31  ;;  %2614 = vmatprep.subr.bf16.mxu0 %v5702_v54 }
 0x309   :  { %v2229_v51 = vsel %vm1463_vm9, %v2228_v46, %v2214_v24  ;;  %v2340_v22 = vpop.permute.xlu1 %2339 }
 0x30a   :  { %v2230_v49 = vsel %vm1465_vm10, %v2229_v51, %v2217_v1 }
 0x30b   :  { %v2221_v52 = vpop.permute.xlu0 %2220  ;;  %2615 = vmatpush1.bf16.msra.mxu0 %v4036_v21  ;;  %v4041_v21 = vld [vmem:[%s5663_s3 + $0x18] sm:$0xff]  }
 0x30c   :  { %v2231_v35 = vsel %vm1467_vm11, %v2230_v49, %v2221_v52  ;;  %2616 = vmatprep.subr.bf16.mxu0 %v5702_v54 }
 0x30d   :  { %v2343_v7 = vpop.permute.xlu1 %2342 }
 0x30f   :  { %v2224_v23 = vpop.permute.xlu0 %2223  ;;  %2617 = vmatpush1.bf16.msra.mxu0 %v4037_v48  ;;  %v4045_v48 = vld [vmem:[%s5663_s3 + $0x38] sm:$0xff]  }
 0x310   :  { %v2232_v58 = vsel %vm1469_vm12, %v2231_v35, %v2224_v23  ;;  %2702 = vmatprep.subr.bf16.mxu0 %v5702_v54 }
 0x311   :  { %v2233_v0 = vadd.f32 %v5253_v6, %v2232_v58  ;;  %v2333_v2 = vpop.permute.xlu1 %2332 }
 0x312   :  { %v2353_v10 = vsel %vm1459_vm7, %v2352_v39, %v2333_v2 }
 0x313   :  { %v2234_v9 = vmax.f32 %v2233_v0, 0.0  ;;  %v1846_v11 = vpop.permute.xlu0 %1845 }
 0x314   :  { %v1854_v37 = vsel %vm1469_vm12, %v1853_v25, %v1846_v11 }
 0x315   :  { %v1855_v4 = vadd.f32 %v5253_v6, %v1854_v37  ;;  %2448 = vrot.lane.b32.xlu1 %v2234_v9, %s4113_s21  ;;  %v2336_v60 = vpop.permute.xlu1 %2335 }
 0x316   :  { %v2354_v41 = vsel %vm1461_vm8, %v2353_v10, %v2336_v60 }
 0x317   :  { %v1856_v13 = vmax.f32 %v1855_v4, 0.0  ;;  %v2355_v17 = vsel %vm1463_vm9, %v2354_v41, %v2340_v22 }
 0x318   :  { %v2356_v62 = vsel %vm1465_vm10, %v2355_v17, %v2343_v7 }
 0x319   :  { %2412 = vrot.lane.b32.xlu0 %v1856_v13, %s4113_s21  ;;  %v2347_v28 = vpop.permute.xlu1 %2346  ;;  %v4038_v13 = vld [vmem:[%s5663_s3] sm:$0xff]  }
 0x31a   :  { %v2357_v20 = vsel %vm1467_vm11, %v2356_v62, %v2347_v28 }
 0x31d   :  { %v2350_v43 = vpop.permute.xlu1 %2349 }
 0x31e   :  { %v2358_v18 = vsel %vm1469_vm12, %v2357_v20, %v2350_v43  ;;  %v4039_v20 = vld [vmem:[%s5663_s3 + $0x8] sm:$0xff]   ;;  %v4040_v43 = vld [vmem:[%s5663_s3 + $0x10] sm:$0xff]  }
 0x31f   :  { %v2359_v57 = vadd.f32 %v5253_v6, %v2358_v18  ;;  %v4042_v18 = vld [vmem:[%s5663_s3 + $0x20] sm:$0xff]  }
 0x321   :  { %v2360_v27 = vmax.f32 %v2359_v57, 0.0  ;;  %v4043_v57 = vld [vmem:[%s5663_s3 + $0x28] sm:$0xff]  }
 0x323   :  { %2462 = vrot.lane.b32.xlu1 %v2360_v27, %s4113_s21  ;;  %v4044_v27 = vld [vmem:[%s5663_s3 + $0x30] sm:$0xff]  }
 0x32c   :  { %v2369_v8 = vpop.permute.xlu0 %2368  ;;  %v2383_v6 = vpop.permute.xlu1 %2382 }
 0x32d   :  { %v2371_v55 = vsel %vm1457_vm6, 0.0, %v2369_v8  ;;  %v2372_v61 = vsel %vm1457_vm6, %v2369_v8, 0.0  ;;  %v2385_v14 = vsel %vm1457_vm6, 0.0, %v2383_v6  ;;  %v2386_v33 = vsel %vm1457_vm6, %v2383_v6, 0.0  ;;  %v4046_v8 = vld [vmem:[%s5663_s3 + $0x40] sm:$0xff]   ;;  %v4047_v6 = vld [vmem:[%s5663_s3 + $0x48] sm:$0xff]  }
 0x32e   :  { %v2375_v36 = vrot.slane %v2371_v55, 6  ;;  %v2376_v32 = vrot.slane %v2372_v61, 6  ;;  %v2389_v16 = vrot.slane %v2385_v14, 4  ;;  %v2390_v38 = vrot.slane %v2386_v33, 4 }
 0x330   :  { %2379 = vst [vmem:[#allocation2] sm:$0xc] %v2375_v36  ;;  %2380 = vst.msk [vmem:[#allocation2 + $0x8] sm:$0xc] %vm2365_vm5, %v2376_v32 }
 0x331   :  { %2393 = vst [vmem:[#allocation2] sm:$0x30] %v2389_v16  ;;  %2395 = vst.msk [vmem:[#allocation2 + $0x8] sm:$0x30] %vm2394_vm14, %v2390_v38  ;;  %v4048_v16 = vld [vmem:[%s5663_s3 + $0xa0] sm:$0xff]  }
 0x348   :  { %v2398_v56 = vpop.permute.xlu0 %2397 }
 0x349   :  { %v2400_v63 = vsel %vm1457_vm6, 0.0, %v2398_v56  ;;  %v2401_v30 = vsel %vm1457_vm6, %v2398_v56, 0.0 }
 0x34a   :  { %v2404_v50 = vrot.slane %v2400_v63, 2  ;;  %v2405_v53 = vrot.slane %v2401_v30, 2  ;;  %v4049_v30 = vld [vmem:[%s5663_s3 + $0xa8] sm:$0xff]  }
 0x34c   :  { %2408 = vst [vmem:[#allocation2] sm:$0xc0] %v2404_v50  ;;  %2410 = vst.msk [vmem:[#allocation2 + $0x8] sm:$0xc0] %vm2409_vm15, %v2405_v53  ;;  %v4050_v50 = vld [vmem:[%s5663_s3 + $0xb0] sm:$0xff]   ;;  %v4051_v53 = vld [vmem:[%s5663_s3 + $0xb8] sm:$0xff]  }
 0x353   :  { %v2496_v2 = vld [vmem:[#allocation2 + $0x8] sm:$0xfc]  ;;  %v2495_v59 = vld [vmem:[#allocation2] sm:$0xfc] }
 0x354   :  { %v2470_v44 = vld [vmem:[#allocation2 + $0x8] sm:$0xff]  ;;  %v2469_v33 = vld [vmem:[#allocation2] sm:$0xff] }
 0x355   :  { %v2744_v36 = vld [vmem:[#allocation2 + $0x8] sm:$0xf0] }
 0x360   :  { %v2421_v5 = vpop.permute.xlu1 %2420 }
 0x361   :  { %v2423_v26 = vsel %vm1457_vm6, 0.0, %v2421_v5  ;;  %v2424_v34 = vsel %vm1457_vm6, %v2421_v5, 0.0  ;;  %v4052_v5 = vld [vmem:[%s5663_s3 + $0xc0] sm:$0xff]  }
 0x362   :  { %v2427_v47 = vrot.slane %v2423_v26, 6  ;;  %v2428_v40 = vrot.slane %v2424_v34, 6  ;;  %v4053_v26 = vld [vmem:[%s5663_s3 + $0xc8] sm:$0xff]   ;;  %v4054_v34 = vld [vmem:[%s5663_s3 + $0xd0] sm:$0xff]  }
 0x364   :  { %2431 = vst [vmem:[#allocation2 + $0x10] sm:$0xc] %v2427_v47  ;;  %2432 = vst.msk [vmem:[#allocation2 + $0x18] sm:$0xc] %vm2365_vm5, %v2428_v40  ;;  %v4055_v47 = vld [vmem:[%s5663_s3 + $0xd8] sm:$0xff]  }
 0x36d   :  { %v2435_v24 = vpop.permute.xlu0 %2434 }
 0x36e   :  { %v2437_v1 = vsel %vm1457_vm6, 0.0, %v2435_v24  ;;  %v2438_v45 = vsel %vm1457_vm6, %v2435_v24, 0.0  ;;  %v4056_v24 = vld [vmem:[%s5663_s3 + $0xe0] sm:$0xff]  }
 0x36f   :  { %v2441_v29 = vrot.slane %v2437_v1, 4  ;;  %v2442_v19 = vrot.slane %v2438_v45, 4  ;;  %v2743_v45 = vld [vmem:[#allocation2] sm:$0xf0] }
 0x371   :  { %2445 = vst [vmem:[#allocation2 + $0x10] sm:$0x30] %v2441_v29  ;;  %2446 = vst.msk [vmem:[#allocation2 + $0x18] sm:$0x30] %vm2394_vm14, %v2442_v19  ;;  %v4057_v29 = vld [vmem:[%s5663_s3 + $0xe8] sm:$0xff]  }
 0x387   :  { %v2449_v31 = vpop.permute.xlu1 %2448 }
 0x388   :  { %v2451_v46 = vsel %vm1457_vm6, 0.0, %v2449_v31  ;;  %v2452_v51 = vsel %vm1457_vm6, %v2449_v31, 0.0 }
 0x389   :  { %v2455_v22 = vrot.slane %v2451_v46, 2  ;;  %v2456_v52 = vrot.slane %v2452_v51, 2 }
 0x38b   :  { %2459 = vst [vmem:[#allocation2 + $0x10] sm:$0xc0] %v2455_v22  ;;  %2460 = vst.msk [vmem:[#allocation2 + $0x18] sm:$0xc0] %vm2409_vm15, %v2456_v52  ;;  %v2413_v12 = vpop.permute.xlu0 %2412 }
 0x38c   :  { %v2415_v49 = vsel %vm1457_vm6, 0.0, %v2413_v12  ;;  %v2416_v7 = vsel %vm1457_vm6, %v2413_v12, 0.0 }
 0x38d   :  { %2417 = vst [vmem:[#allocation2 + $0x10] sm:$0x3] %v2415_v49  ;;  %2418 = vst.msk [vmem:[#allocation2 + $0x18] sm:$0x3] %vm2362_vm13, %v2416_v7 }
 0x394   :  { %v2472_v58 = vld [vmem:[#allocation2 + $0x18] sm:$0xff]  ;;  %v5395_v0 = vld [vmem:[#allocation2 + $0x10] sm:$0xff] }
 0x395   :  { %v2463_v3 = vpop.permute.xlu1 %2462  ;;  %v2500_v25 = vpack.c.bf16 %v2472_v58, %v2496_v2  ;;  %v2499_v9 = vpack.c.bf16 %v5395_v0, %v2495_v59  ;;  %v2474_v62 = vpack.c.bf16 %v2472_v58, %v2470_v44  ;;  %v2748_v32 = vpack.c.bf16 %v2472_v58, %v2744_v36  ;;  %v4058_v59 = vld [vmem:[%s5665_s5 + $0x30] sm:$0xff]  }
 0x396   :  { %v2465_v35 = vsel %vm1457_vm6, 0.0, %v2463_v3  ;;  %v2466_v23 = vsel %vm1457_vm6, %v2463_v3, 0.0  ;;  %v2473_v38 = vpack.c.bf16 %v5395_v0, %v2469_v33  ;;  %v2747_v19 = vpack.c.bf16 %v5395_v0, %v2743_v45  ;;  %3726 = vmatpush3.bf16.msra.mxu1 %v4058_v59  ;;  %v4062_v44 = vld [vmem:[%s5665_s5 + $0x50] sm:$0xff]  }
 0x397   :  { %2467 = vst [vmem:[#allocation2 + $0x20] sm:$0x3] %v2465_v35  ;;  %2468 = vst.msk [vmem:[#allocation2 + $0x28] sm:$0x3] %vm2362_vm13, %v2466_v23  ;;  %v2531_v4 = vrot.slane %v2500_v25, 1  ;;  %v2528_v15 = vrot.slane %v2499_v9, 1  ;;  %3727 = vmatprep.subr.bf16.mxu1 %v4116_v42 }
 0x398   :  { %v2779_v56 = vrot.slane %v2748_v32, 2  ;;  %v2776_v46 = vrot.slane %v2747_v19, 2  ;;  %v4059_v25 = vld [vmem:[%s5665_s5 + $0x38] sm:$0xff]   ;;  %v4060_v9 = vld [vmem:[%s5665_s5 + $0x40] sm:$0xff]  }
 0x39a   :  { %3728 = vmatpush3.bf16.msra.mxu1 %v4059_v25 }
 0x39b   :  { %3729 = vmatprep.subr.bf16.mxu1 %v4116_v42 }
 0x39e   :  { %v2498_v11 = vld [vmem:[#allocation2 + $0x28] sm:$0x3]  ;;  %v2497_v39 = vld [vmem:[#allocation2 + $0x20] sm:$0x3]  ;;  %3730 = vmatpush3.bf16.msra.mxu1 %v4060_v9  ;;  %v4078_v9 = vld [vmem:[%s5667_s7 + $0x10] sm:$0xff]  }
 0x39f   :  { %v2502_v37 = vpack.c.bf16 %v2498_v11, %v2498_v11  ;;  %v2501_v10 = vpack.c.bf16 %v2497_v39, %v2497_v39  ;;  %v2746_v55 = vld [vmem:[#allocation2 + $0x28] sm:$0xf]  ;;  %v2745_v40 = vld [vmem:[#allocation2 + $0x20] sm:$0xf]  ;;  %3731 = vmatprep.subr.bf16.mxu1 %v4116_v42 }
 0x3a0   :  { %v2750_v61 = vpack.c.bf16 %v2746_v55, %v2746_v55  ;;  %v2749_v1 = vpack.c.bf16 %v2745_v40, %v2745_v40  ;;  %v4067_v40 = vld [vmem:[%s5665_s5 + $0x18] sm:$0xff]  }
 0x3a1   :  { %v2532_v60 = vrot.slane %v2502_v37, 1  ;;  %v2529_v41 = vrot.slane %v2501_v10, 1  ;;  %v4061_v10 = vld [vmem:[%s5665_s5 + $0x48] sm:$0xff]  }
 0x3a2   :  { %v2780_v14 = vrot.slane %v2750_v61, 2  ;;  %v2777_v31 = vrot.slane %v2749_v1, 2  ;;  %3732 = vmatpush3.bf16.msra.mxu1 %v4061_v10  ;;  %v4069_v1 = vld [vmem:[%s5665_s5 + $0x28] sm:$0xff]   ;;  %v4082_v10 = vld [vmem:[%s5667_s7 + $0x30] sm:$0xff]  }
 0x3a3   :  { %v2533_v17 = vsel %vm74_vm1, %v2531_v4, %v2532_v60  ;;  %v2530_v28 = vsel %vm74_vm1, %v2528_v15, %v2529_v41  ;;  %v3639_v15 = vld [vmem:[%s5664_s4] ss:$0 sm:$0xff]  ;;  %3733 = vmatprep.subr.bf16.mxu1 %v4116_v42  ;;  %vm4117_vm1 = vmmov 0  }
 0x3a4   :  { %3596 = vmatprep.mubr.msk.bf16.mxu0 %vm1459_vm7, %v2533_v17  ;;  %v2781_v63 = vsel %vm537_vm2, %v2779_v56, %v2780_v14  ;;  %v2778_v51 = vsel %vm537_vm2, %v2776_v46, %v2777_v31  ;;  %3737 = vmatprep.mubr.msk.bf16.mxu1 %vm4117_vm1, %v4116_v42  ;;  %v4071_v31 = vld [vmem:[%s5665_s5 + $0x68] sm:$0xff]   ;;  %v4072_v46 = vld [vmem:[%s5665_s5 + $0x70] sm:$0xff]   ;;  %vm3399_vm2 = vcmask 517120  }
 0x3a5   :  { %2631 = vmatmul.mubr.bf16.vlgmr.msra.gmra.mrb[16].mxu0 %v2530_v28 }
 0x3a6   :  { %2703 = vmatpush1.bf16.msra.mxu0 %v4038_v13  ;;  %3607 = vmatprep.mubr.msk.bf16.mxu0 %vm1459_vm7, %v2474_v62 }
 0x3a7   :  { %2704 = vmatprep.subr.bf16.mxu0 %v5702_v54  ;;  %3734 = vmatpush3.bf16.msra.mxu1 %v4062_v44 }
 0x3a8   :  { %3735 = vmatprep.subr.bf16.mxu1 %v4116_v42 }
 0x3aa   :  { %2705 = vmatpush1.bf16.msra.mxu0 %v4039_v20 }
 0x3ab   :  { %2706 = vmatprep.subr.bf16.mxu0 %v5702_v54 }
 0x3ae   :  { %2707 = vmatpush1.bf16.msra.mxu0 %v4040_v43 }
 0x3af   :  { %2708 = vmatprep.subr.bf16.mxu0 %v5702_v54 }
 0x3b2   :  { %2709 = vmatpush1.bf16.msra.mxu0 %v4041_v21 }
 0x3b3   :  { %2710 = vmatprep.subr.bf16.mxu0 %v5702_v54 }
 0x3b6   :  { %2711 = vmatpush1.bf16.msra.mxu0 %v4042_v18  ;;  %v4063_v18 = vld [vmem:[%s5665_s5 + $0x58] sm:$0xff]  }
 0x3b7   :  { %2712 = vmatprep.subr.bf16.mxu0 %v5702_v54  ;;  %3736 = vmatpush3.bf16.msra.mxu1 %v4063_v18 }
 0x3b8   :  { %3741 = vmatprep.subr.bf16.mxu1 %v4116_v42 }
 0x3ba   :  { %2713 = vmatpush1.bf16.msra.mxu0 %v4043_v57 }
 0x3bb   :  { %2714 = vmatprep.subr.bf16.mxu0 %v5702_v54 }
 0x3be   :  { %2715 = vmatpush1.bf16.msra.mxu0 %v4044_v27 }
 0x3bf   :  { %2716 = vmatprep.subr.bf16.mxu0 %v5702_v54 }
 0x3c2   :  { %2717 = vmatpush1.bf16.msra.mxu0 %v4045_v48 }
 0x3c3   :  { %2718 = vmatprep.subr.bf16.mxu0 %v5702_v54 }
 0x3c6   :  { %2719 = vmatpush1.bf16.msra.mxu0 %v4046_v8 }
 0x3c7   :  { %2720 = vmatprep.subr.bf16.mxu0 %v5702_v54 }
 0x3ca   :  { %2721 = vmatpush1.bf16.msra.mxu0 %v4047_v6 }
 0x3cb   :  { %2846 = vmatprep.subr.bf16.mxu0 %v5702_v54 }
 0x3cd   :  { %2735 = vmatmul.mubr.bf16.vlgmr.msra.gmra.mrb[16].mxu0 %v2473_v38 }
 0x3ce   :  { %2847 = vmatpush1.bf16.msra.mxu0 %v4048_v16  ;;  %3638 = vmatprep.mubr.msk.bf16.mxu0 %vm1459_vm7, %v2781_v63 }
 0x3cf   :  { %2848 = vmatprep.subr.bf16.mxu0 %v5702_v54 }
 0x3d2   :  { %2849 = vmatpush1.bf16.msra.mxu0 %v4049_v30 }
 0x3d3   :  { %2850 = vmatprep.subr.bf16.mxu0 %v5702_v54 }
 0x3d6   :  { %2851 = vmatpush1.bf16.msra.mxu0 %v4050_v50 }
 0x3d7   :  { %2852 = vmatprep.subr.bf16.mxu0 %v5702_v54 }
 0x3da   :  { %2853 = vmatpush1.bf16.msra.mxu0 %v4051_v53 }
 0x3db   :  { %2854 = vmatprep.subr.bf16.mxu0 %v5702_v54 }
 0x3de   :  { %2855 = vmatpush1.bf16.msra.mxu0 %v4052_v5  ;;  %v4064_v5 = vld [vmem:[%s5665_s5] sm:$0xff]  }
 0x3df   :  { %2856 = vmatprep.subr.bf16.mxu0 %v5702_v54 }
 0x3e2   :  { %2857 = vmatpush1.bf16.msra.mxu0 %v4053_v26 }
 0x3e3   :  { %2858 = vmatprep.subr.bf16.mxu0 %v5702_v54 }
 0x3e6   :  { %2859 = vmatpush1.bf16.msra.mxu0 %v4054_v34  ;;  %v4065_v34 = vld [vmem:[%s5665_s5 + $0x8] sm:$0xff]  }
 0x3e7   :  { %2860 = vmatprep.subr.bf16.mxu0 %v5702_v54 }
 0x3ea   :  { %2861 = vmatpush1.bf16.msra.mxu0 %v4055_v47  ;;  %v4066_v47 = vld [vmem:[%s5665_s5 + $0x10] sm:$0xff]  }
 0x3eb   :  { %2862 = vmatprep.subr.bf16.mxu0 %v5702_v54 }
 0x3ee   :  { %2863 = vmatpush1.bf16.msra.mxu0 %v4056_v24  ;;  %v4068_v24 = vld [vmem:[%s5665_s5 + $0x20] sm:$0xff]  }
 0x3ef   :  { %2864 = vmatprep.subr.bf16.mxu0 %v5702_v54 }
 0x3f2   :  { %2865 = vmatpush1.bf16.msra.mxu0 %v4057_v29  ;;  %v4070_v29 = vld [vmem:[%s5665_s5 + $0x60] sm:$0xff]  }
 0x3f5   :  { %2879 = vmatmul.mubr.bf16.vlgmr.msra.gmra.mrb[16].mxu0 %v2778_v51  ;;  %v4073_v51 = vld [vmem:[%s5665_s5 + $0x78] sm:$0xff]  }
 0x4c8   :  { %v2880_v22 = vpop.f32.mrb[16].mxu0 }
 0x4c9   :  { %v2891_v52 = vrot.slane %v2880_v22, 2  ;;  %v2882_v12 = vpop.f32.mrb[17].mxu0 }
 0x4ca   :  { %v2883_v49 = vpop.f32.mrb[18].mxu0 }
 0x4cb   :  { %v2893_v7 = vmax.f32 %v2880_v22, %v2891_v52  ;;  %v2921_v3 = vrot.slane %v2883_v49, 2  ;;  %v2885_v35 = vpop.f32.mrb[19].mxu0  ;;  %v4074_v22 = vld [vmem:[%s5665_s5 + $0x80] sm:$0xff]   ;;  %v4075_v52 = vld [vmem:[%s5665_s5 + $0x88] sm:$0xff]  }
 0x4cd   :  { %v2923_v23 = vmax.f32 %v2883_v49, %v2921_v3  ;;  %2895 = vrot.lane.b32.xlu0 %v2893_v7, %s4109_s1 }
 0x4cf   :  { %2925 = vrot.lane.b32.xlu1 %v2923_v23, %s4109_s1 }
 0x53f   :  { %v2896_v58 = vpop.permute.xlu0 %2895 }
 0x540   :  { %v2898_v54 = vmax.f32 %v2893_v7, %v2896_v58 }
 0x541   :  { %v2926_v0 = vpop.permute.xlu1 %2925 }
 0x542   :  { %v2928_v2 = vmax.f32 %v2923_v23, %v2926_v0  ;;  %2900 = vrot.lane.b32.xlu0 %v2898_v54, %s4109_s1  ;;  %v4076_v0 = vld [vmem:[%s5667_s7] sm:$0xff]  }
 0x544   :  { %2930 = vrot.lane.b32.xlu1 %v2928_v2, %s4109_s1 }
 0x546   :  { %2903 = vrot.lane.b32.xlu0 %v2898_v54, %s4110_s0 }
 0x548   :  { %2933 = vrot.lane.b32.xlu1 %v2928_v2, %s4110_s0 }
 0x54a   :  { %2906 = vrot.lane.b32.xlu0 %v2898_v54, %s4111_s19 }
 0x54c   :  { %2936 = vrot.lane.b32.xlu1 %v2928_v2, %s4111_s19 }
 0x5b4   :  { %v2901_v11 = vpop.permute.xlu0 %2900 }
 0x5b5   :  { %v2909_v60 = vsel %vm1457_vm6, %v2898_v54, %v2901_v11  ;;  %v4079_v11 = vld [vmem:[%s5667_s7 + $0x18] sm:$0xff]  }
 0x5b6   :  { %v2931_v39 = vpop.permute.xlu1 %2930 }
 0x5b7   :  { %v2939_v17 = vsel %vm1457_vm6, %v2928_v2, %v2931_v39  ;;  %v4077_v2 = vld [vmem:[%s5667_s7 + $0x8] sm:$0xff]   ;;  %v4080_v39 = vld [vmem:[%s5667_s7 + $0x20] sm:$0xff]  }
 0x5b8   :  { %v2904_v37 = vpop.permute.xlu0 %2903 }
 0x5b9   :  { %v2910_v41 = vsel %vm1459_vm7, %v2909_v60, %v2904_v37  ;;  %v4081_v37 = vld [vmem:[%s5667_s7 + $0x28] sm:$0xff]   ;;  %v3685_v60 = vld [vmem:[%s5666_s6] ss:$0 sm:$0xff]  ;;  %s3407_s6 = sshll.u32 %s4118_s12, 4  ;;  %s3408_s6 = int_to_ptr.vmem [resolvable:$true] %s3407_s6 }
 0x5ba   :  { %v2934_v4 = vpop.permute.xlu1 %2933  ;;  %p4089_p1 = scmp.lt.s32.totalorder %s3408_s6, %s3408_s6 }
 0x5bb   :  { %v2940_v62 = vsel %vm1459_vm7, %v2939_v17, %v2934_v4  ;;  %v4083_v4 = vld [vmem:[%s5667_s7 + $0x38] sm:$0xff]  }
 0x5bc   :  { %v2907_v13 = vpop.permute.xlu0 %2906 }
 0x5bd   :  { %v2911_v28 = vsel %vm1461_vm8, %v2910_v41, %v2907_v13 }
 0x5be   :  { %v2918_v20 = vadd.f32 %v3639_v15, %v2911_v28  ;;  %v2937_v43 = vpop.permute.xlu1 %2936 }
 0x5bf   :  { %v2941_v21 = vsel %vm1461_vm8, %v2940_v62, %v2937_v43 }
 0x5c0   :  { %v2919_v57 = vmax.f32 %v2918_v20, 0.0  ;;  %v2942_v27 = vadd.f32 %v3639_v15, %v2941_v21  ;;  %v3686_v20 = vld [vmem:[%s5668_s8] ss:$0 sm:$0xff] }
 0x5c2   :  { %v2954_v48 = vrot.slane %v2919_v57, 4  ;;  %v2943_v8 = vmax.f32 %v2942_v27, 0.0  ;;  %2948 = vrot.lane.b32.xlu0 %v2919_v57, %s4113_s21 }
 0x5c4   :  { %2955 = vrot.lane.b32.xlu1 %v2954_v48, %s4113_s21  ;;  %v2968_v55 = vrot.slane %v2943_v8, 4 }
 0x5c6   :  { %2962 = vrot.lane.b32.xlu0 %v2943_v8, %s4113_s21 }
 0x5c8   :  { %2969 = vrot.lane.b32.xlu1 %v2968_v55, %s4113_s21 }
 0x634   :  { %v2949_v61 = vpop.permute.xlu0 %2948 }
 0x635   :  { %v2951_v6 = vsel %vm1457_vm6, 0.0, %v2949_v61 }
 0x636   :  { %v2952_v36 = vsel %vm1465_vm10, %v2951_v6, 0.0  ;;  %v2956_v32 = vpop.permute.xlu1 %2955 }
 0x637   :  { %2953 = vst.msk [vmem:[#allocation3 + $0x2] sm:$0x3] %vm2944_vm0, %v2952_v36  ;;  %v2958_v14 = vsel %vm1457_vm6, 0.0, %v2956_v32 }
 0x638   :  { %v2959_v33 = vsel %vm1465_vm10, %v2958_v14, 0.0  ;;  %v2963_v16 = vpop.permute.xlu0 %2962 }
 0x639   :  { %2960 = vst.msk [vmem:[#allocation3 + $0x4] sm:$0x3] %vm2944_vm0, %v2959_v33  ;;  %v2965_v38 = vsel %vm1457_vm6, 0.0, %v2963_v16 }
 0x63a   :  { %v2966_v56 = vsel %vm1465_vm10, %v2965_v38, 0.0  ;;  %v2970_v63 = vpop.permute.xlu1 %2969 }
 0x63b   :  { %2967 = vst.msk [vmem:[#allocation3 + $0x6] sm:$0x3] %vm2944_vm0, %v2966_v56  ;;  %v2972_v30 = vsel %vm1457_vm6, 0.0, %v2970_v63 }
 0x63c   :  { %v2973_v50 = vsel %vm1465_vm10, %v2972_v30, 0.0 }
 0x63d   :  { %2974 = vst.msk [vmem:[#allocation3 + $0x8] sm:$0x3] %vm2944_vm0, %v2973_v50 }
 0x642   :  { %v2975_v45 = vld [vmem:[#allocation3] sm:$0xff] }
 0x643   :  { %v2976_v19 = vpack.c.bf16 %v2975_v45, %v2975_v45 }
 0x644   :  { %v2989_v53 = vld [vmem:[#allocation3 + $0x2] sm:$0xff] }
 0x645   :  { %v2990_v26 = vpack.c.bf16 %v2989_v53, %v2989_v53  ;;  %v3162_v12 = vld [vmem:[#allocation3 + $0x4] sm:$0xff] }
 0x646   :  { %v3163_v49 = vpack.c.bf16 %v3162_v12, %v3162_v12 }
 0x647   :  { %3738 = vmatmul.mubr.msk.bf16.vlgmr.msra.gmra.mrb[16].mxu1 %vm1467_vm11, %v2990_v26 }
 0x648   :  { %3742 = vmatpush3.bf16.msra.mxu1 %v4064_v5  ;;  %3753 = vmatprep.mubr.msk.bf16.mxu1 %vm4117_vm1, %v4116_v42 }
 0x649   :  { %3743 = vmatprep.subr.bf16.mxu1 %v4116_v42 }
 0x64c   :  { %3744 = vmatpush3.bf16.msra.mxu1 %v4065_v34 }
 0x64d   :  { %3745 = vmatprep.subr.bf16.mxu1 %v4116_v42 }
 0x650   :  { %3746 = vmatpush3.bf16.msra.mxu1 %v4066_v47 }
 0x651   :  { %3747 = vmatprep.subr.bf16.mxu1 %v4116_v42 }
 0x654   :  { %3748 = vmatpush3.bf16.msra.mxu1 %v4067_v40 }
 0x655   :  { %3749 = vmatprep.subr.bf16.mxu1 %v4116_v42 }
 0x658   :  { %3750 = vmatpush3.bf16.msra.mxu1 %v4068_v24 }
 0x659   :  { %3751 = vmatprep.subr.bf16.mxu1 %v4116_v42 }
 0x65c   :  { %3752 = vmatpush3.bf16.msra.mxu1 %v4069_v1 }
 0x65d   :  { %3757 = vmatprep.subr.bf16.mxu1 %v4116_v42 }
 0x65f   :  { %3754 = vmatmul.mubr.msk.bf16.vlgmr.msra.gmra.mrb[16].mxu1 %vm1467_vm11, %v2976_v19 }
 0x660   :  { %3758 = vmatpush3.bf16.msra.mxu1 %v4070_v29  ;;  %3769 = vmatprep.mubr.msk.bf16.mxu1 %vm4117_vm1, %v4116_v42 }
 0x661   :  { %3759 = vmatprep.subr.bf16.mxu1 %v4116_v42 }
 0x664   :  { %3760 = vmatpush3.bf16.msra.mxu1 %v4071_v31 }
 0x665   :  { %3761 = vmatprep.subr.bf16.mxu1 %v4116_v42 }
 0x668   :  { %3762 = vmatpush3.bf16.msra.mxu1 %v4072_v46 }
 0x669   :  { %3763 = vmatprep.subr.bf16.mxu1 %v4116_v42 }
 0x66c   :  { %3764 = vmatpush3.bf16.msra.mxu1 %v4073_v51 }
 0x66d   :  { %3765 = vmatprep.subr.bf16.mxu1 %v4116_v42 }
 0x670   :  { %3766 = vmatpush3.bf16.msra.mxu1 %v4074_v22 }
 0x671   :  { %3767 = vmatprep.subr.bf16.mxu1 %v4116_v42 }
 0x674   :  { %3768 = vmatpush3.bf16.msra.mxu1 %v4075_v52 }
 0x675   :  { %3773 = vmatprep.subr.bf16.mxu1 %v4116_v42 }
 0x677   :  { %3770 = vmatmul.mubr.msk.bf16.vlgmr.msra.gmra.mrb[16].mxu1 %vm1467_vm11, %v3163_v49 }
 0x678   :  { %3789 = vmatprep.mubr.msk.bf16.mxu1 %vm4117_vm1, %v4116_v42  ;;  %3774 = vmatpush3.bf16.msra.mxu1 %v4076_v0 }
 0x679   :  { %3775 = vmatprep.subr.bf16.mxu1 %v4116_v42 }
 0x67c   :  { %3776 = vmatpush3.bf16.msra.mxu1 %v4077_v2 }
 0x67d   :  { %3777 = vmatprep.subr.bf16.mxu1 %v4116_v42 }
 0x680   :  { %3778 = vmatpush3.bf16.msra.mxu1 %v4078_v9 }
 0x681   :  { %3779 = vmatprep.subr.bf16.mxu1 %v4116_v42 }
 0x684   :  { %3780 = vmatpush3.bf16.msra.mxu1 %v4079_v11 }
 0x685   :  { %3781 = vmatprep.subr.bf16.mxu1 %v4116_v42 }
 0x688   :  { %3782 = vmatpush3.bf16.msra.mxu1 %v4080_v39 }
 0x689   :  { %3783 = vmatprep.subr.bf16.mxu1 %v4116_v42 }
 0x68c   :  { %3784 = vmatpush3.bf16.msra.mxu1 %v4081_v37 }
 0x68d   :  { %3785 = vmatprep.subr.bf16.mxu1 %v4116_v42 }
 0x690   :  { %3786 = vmatpush3.bf16.msra.mxu1 %v4082_v10 }
 0x691   :  { %3787 = vmatprep.subr.bf16.mxu1 %v4116_v42 }
 0x694   :  { %3788 = vmatpush3.bf16.msra.mxu1 %v4083_v4 }
 0x74a   :  { %v3250_v7 = vpop.f32.mrb[16].mxu1 }
 0x74b   :  { %v3259_v3 = vrot.slane %v3250_v7, 2  ;;  %v3771_v35 = vpop.f32.mrb[17].mxu1 }
 0x74c   :  { %v3253_v23 = vpop.f32.mrb[18].mxu1 }
 0x74d   :  { %v3261_v58 = vmax.f32 %v3250_v7, %v3259_v3  ;;  %v3772_v54 = vpop.f32.mrb[19].mxu1 }
 0x74f   :  { %3263 = vrot.lane.b32.xlu0 %v3261_v58, %s4110_s0 }
 0x7c1   :  { %v3264_v59 = vpop.permute.xlu0 %3263 }
 0x7c2   :  { %v3266_v25 = vmax.f32 %v3261_v58, %v3264_v59 }
 0x7c4   :  { %3268 = vrot.lane.b32.xlu1 %v3266_v25, %s4110_s0 }
 0x836   :  { %v3269_v15 = vpop.permute.xlu1 %3268 }
 0x837   :  { %v3271_v41 = vsel %vm1459_vm7, %v3266_v25, %v3269_v15 }
 0x838   :  { %v3278_v13 = vadd.f32 %v3685_v60, %v3271_v41 }
 0x83a   :  { %v3279_v17 = vmax.f32 %v3278_v13, 0.0 }
 0x83c   :  { %v3281_v28 = vrot.slane %v3279_v17, 4 }
 0x83e   :  { %3282 = vrot.lane.b32.xlu0 %v3281_v28, %s4112_s20  ;;  %s4084_s20 = scalar_lea.vmem %s3408_s6, 32 }
 0x83f   :  { %p4085_p0 = scmp.ne.s32.totalorder %s3408_s6, %s4084_s20  ;;  %p4090_p2 = scmp.lt.s32.totalorder %s4084_s20, %s4084_s20 }
 0x841   :  { %p4091_p3 = por %p4090_p2, %p4089_p1 }
 0x843   :  { %p4092_p4 = pnand %p4091_p3, %p4085_p0 }
 0x8b0   :  { %v3283_v44 = vpop.permute.xlu0 %3282 }
 0x8b1   :  { %v3285_v42 = vsel %vm1463_vm9, %v3279_v17, %v3283_v44 }
 0x8b2   :  { %v3286_v62 = vpack.c.bf16 %v3285_v42, %v3285_v42 }
 0x8b4   :  { %3790 = vmatmul.mubr.bf16.vlgmr.msra.gmra.mrb[20].mxu1 %v3286_v62 }
 0x987   :  { %v3392_v43 = vpop.f32.mrb[20].mxu1 }
 0x988   :  { %v3393_v21 = vadd.f32 %v3686_v20, %v3392_v43  ;;  %v3791_v18 = vpop.f32.mrb[21].mxu1 }
 0x989   :  { %v3395_v57 = vpop.f32.mrb[22].mxu1 }
 0x98a   :  { %v3398_v27 = vmax.f32 %v3393_v21, 0.0  ;;  %v3792_v48 = vpop.f32.mrb[23].mxu1 }
 0x98c   :  { %3400 = vst.msk [vmem:[#allocation4] sm:$0x3] %vm3399_vm2, %v3398_v27 }
 0x98d   :  { %4095 = shalt.err (!%p4092_p4)
}
 0x98e   :  { %s4096_s13 = scalar_lea.hbm %s5669_s9, 32 }
 0x98f   :  { %p4097_p5 = scmp.ne.s32.totalorder %s5669_s9, %s4096_s13  ;;  %p4100_p6 = scmp.lt.u32.totalorder %s4096_s13, %s5669_s9 }
 0x991   :  { %p4102_p7 = pnand %p4100_p6, %p4097_p5 }
 0x993   :  { %4105 = shalt.err (!%p4102_p7)
}
 0x994   :  { %3410 = dma.vmem_to_hbm [thread:$0]  %s3408_s6, 32, %s5669_s9, [#allocation5]  }
 0x995   :  { %4106 = dma.done.wait [#allocation5], 32  }
 0x996   :  { %4107 = vsyncadd [#allocation5], 4294967264 }
 0x997   :  { %3414 = vsyncpa [#allocation5], 1 }

</bundles_post_ra>
